<compile_context>
chip_gen: v7x
topology: tpu7x:2x2x1
jax: 0.10.0
libtpu: 0.0.40
codegen_flags: <defaults>
</compile_context>

<pallas_src>
import functools

import jax
import jax.numpy as jnp
from jax.experimental import pallas as pl
from jax.experimental.pallas import tpu as pltpu  # referenced in scaling notes


# ----------------------------------------------------------------------------- #
# Single fused kernel: whole SoftPoolingGcnEncoder forward
# ----------------------------------------------------------------------------- #
def _soft_pool_kernel(*refs, treedef, use_mask, bn, num_pooling):
    x_ref, adj_ref = refs[0], refs[1]
    idx = 2
    mask_ref = None
    if use_mask:
        mask_ref = refs[idx]
        idx += 1
    out_ref = refs[-1]
    p = jax.tree_util.tree_unflatten(treedef, refs[idx:-1])

    B, N, _ = x_ref.shape

    adj0 = [adj_ref[b] for b in range(B)]                              # B x (N, N)
    x0 = jnp.concatenate([x_ref[b] for b in range(B)], axis=0)        # (B*N, D)
    mask = (jnp.concatenate([mask_ref[b] for b in range(B)], axis=0)
            if use_mask else None)                                    # (B*N, 1)

    def gcn_chain(adjs, h, layer_dict, msk, n_nodes):
        """conv_first -> conv_block* -> conv_last, each with L2 row-normalize;
        ReLU + fresh training-mode BatchNorm1d on all but the last layer.
        Returns torch.cat(x_all, 2) * embedding_mask, stacked (B*n_nodes, F_total)."""
        layers = [layer_dict["first"]] + list(layer_dict["block"]) + [layer_dict["last"]]
        n_layers = len(layers)
        outs = []
        for li, (w_ref, b_ref) in enumerate(layers):
            w = w_ref[...]                  # (Din, Dout)
            bias = b_ref[...]               # (1, Dout)
            d = w.shape[1]
            # per-sample adjacency matmul (LHS differs per sample) ...
            y = jnp.concatenate(
                [jnp.dot(adjs[b], h[b * n_nodes:(b + 1) * n_nodes, :],
                         preferred_element_type=jnp.float32)
                 for b in range(B)], axis=0)
            # ... then ONE stacked weight matmul for the whole batch.
            y = jnp.dot(y, w, preferred_element_type=jnp.float32) + bias
            # F.normalize(p=2, dim=-1): y / max(||y||, 1e-12)   (exact)
            nrm = jnp.sqrt(jnp.sum(y * y, axis=-1, keepdims=True))
            h = y / jnp.maximum(nrm, 1e-12)
            if li < n_layers - 1:
                h = jnp.maximum(h, 0.0)     # ReLU
                if bn:
                    # fresh BatchNorm1d(num_nodes) per call (reference quirk):
                    # stats per node row over (batch, feature), biased variance,
                    # identity affine, eps = 1e-5.
                    inv = 1.0 / (B * d)
                    row_sum = jnp.sum(h, axis=-1, keepdims=True)       # (B*n, 1)
                    mean = row_sum[0:n_nodes]
                    for b in range(1, B):
                        mean = mean + row_sum[b * n_nodes:(b + 1) * n_nodes]
                    mean = mean * inv                                   # (n, 1)
                    mean_f = jnp.concatenate([mean] * B, axis=0)        # (B*n, 1)
                    c = h - mean_f
                    sq_sum = jnp.sum(c * c, axis=-1, keepdims=True)
                    var = sq_sum[0:n_nodes]
                    for b in range(1, B):
                        var = var + sq_sum[b * n_nodes:(b + 1) * n_nodes]
                    var = var * inv
                    var_f = jnp.concatenate([var] * B, axis=0)
                    h = c / jnp.sqrt(var_f + 1e-5)
            outs.append(h * msk if msk is not None else h)
        return jnp.concatenate(outs, axis=-1)                          # (B*n, F_total)

    def node_max_readout(feat, n_nodes):
        # torch.max(embedding_tensor, dim=1) on the masked concat
        return jnp.concatenate(
            [jnp.max(feat[b * n_nodes:(b + 1) * n_nodes, :], axis=0, keepdims=True)
             for b in range(B)], axis=0)                               # (B, F)

    readouts = []

    # --- embedding GCN chain --------------------------------------------------
    emb = gcn_chain(adj0, x0, p["gc"], mask, N)
    readouts.append(node_max_readout(emb, N))

    # --- pooling levels ---------------------------------------------------------
    x_a = x0
    cur_adjs = adj0
    cur_n = N
    for i in range(num_pooling):
        msk_i = mask if (use_mask and i == 0) else None
        feat_a = gcn_chain(cur_adjs, x_a, p["assign_gc"][i], msk_i, cur_n)
        wp, bp = p["assign_pred"][i]
        logits = jnp.dot(feat_a, wp[...], preferred_element_type=jnp.float32) + bp[...]
        m = jnp.max(logits, axis=-1, keepdims=True)
        e = jnp.exp(logits - m)
        s = e / jnp.sum(e, axis=-1, keepdims=True)     # exact softmax (K is tiny)
        if msk_i is not None:
            s = s * msk_i
        K = s.shape[1]
        new_x, new_adjs = [], []
        for b in range(B):
            Sb = s[b * cur_n:(b + 1) * cur_n, :]       # (n, K)
            St = Sb.T                                   # transpose once, reuse twice
            new_x.append(jnp.dot(St, emb[b * cur_n:(b + 1) * cur_n, :],
                                 preferred_element_type=jnp.float32))  # (K, F_emb)
            sta = jnp.dot(St, cur_adjs[b], preferred_element_type=jnp.float32)
            new_adjs.append(jnp.dot(sta, Sb, preferred_element_type=jnp.float32))
        x_a = jnp.concatenate(new_x, axis=0)           # (B*K, F_emb)
        cur_adjs = new_adjs
        cur_n = K
        emb = gcn_chain(cur_adjs, x_a, p["after_gc"][i], None, cur_n)
        readouts.append(node_max_readout(emb, cur_n))

    # --- prediction MLP: Linear(96,50) -> ReLU -> Linear(50,label_dim) ----------
    output = jnp.concatenate(readouts, axis=-1)        # (B, pred_input*(P+1))
    w1, b1 = p["pred"]["w1"][...], p["pred"]["b1"][...]
    w2, b2 = p["pred"]["w2"][...], p["pred"]["b2"][...]
    hidden = jnp.maximum(
        jnp.dot(output, w1, preferred_element_type=jnp.float32) + b1, 0.0)
    out_ref[...] = jnp.dot(hidden, w2, preferred_element_type=jnp.float32) + b2

    # TODO(synk): reference gcn_forward also builds adj_att_tensor; with att=False
    # it is the unmodified adjacency and is unused by the module's returned ypred.


# ----------------------------------------------------------------------------- #
# Plain-JAX glue (tiny): mask construction + wrapper around the single kernel
# ----------------------------------------------------------------------------- #
def construct_mask(max_nodes, batch_num_nodes):
    idx = jnp.arange(max_nodes)[None, :]
    return (idx < batch_num_nodes[:, None]).astype(jnp.float32)[..., None]  # (B,N,1)


def soft_pooling_gcn_forward(params, x, adj, batch_num_nodes, cfg):
    B, N, _ = x.shape
    use_mask = batch_num_nodes is not None
    mask = construct_mask(N, batch_num_nodes) if use_mask else None
    # Present every 1-D parameter as (1, D): clean 2-D VMEM layout, broadcasts in-kernel.
    params2 = jax.tree_util.tree_map(
        lambda a: a.reshape(1, -1) if a.ndim == 1 else a, params)
    leaves, treedef = jax.tree_util.tree_flatten(params2)
    inputs = [x, adj] + ([mask] if use_mask else []) + leaves
    kern = functools.partial(
        _soft_pool_kernel, treedef=treedef, use_mask=use_mask,
        bn=cfg.get("bn", True), num_pooling=cfg["num_pooling"])
    return pl.pallas_call(
        kern,
        out_shape=jax.ShapeDtypeStruct((B, cfg["label_dim"]), jnp.float32),
    )(*inputs)


# ----------------------------------------------------------------------------- #
# Parameter construction (deterministic; matches shapes implied by __init__)
# ----------------------------------------------------------------------------- #
def xavier_relu(key, in_dim, out_dim):
    gain = 2.0 ** 0.5
    limit = gain * (6.0 / (in_dim + out_dim)) ** 0.5
    return jax.random.uniform(key, (in_dim, out_dim), jnp.float32, -limit, limit)


def gconv_params(key, in_dim, out_dim):
    return xavier_relu(key, in_dim, out_dim), jnp.zeros((out_dim,), jnp.float32)


def linear_params(key, in_dim, out_dim):
    k1, k2 = jax.random.split(key)
    bound = 1.0 / (in_dim ** 0.5)
    w = jax.random.uniform(k1, (in_dim, out_dim), jnp.float32, -bound, bound)
    b = jax.random.uniform(k2, (out_dim,), jnp.float32, -bound, bound)
    return w, b


def build_params(key, cfg):
    ks = iter(jax.random.split(key, 64))
    hd, ed, nl = cfg["hidden_dim"], cfg["embedding_dim"], cfg["num_layers"]
    pred_input_dim = hd * (nl - 1) + ed
    num_pooling = cfg["num_pooling"]

    def gcn_dict(in_dim):
        return {
            "first": gconv_params(next(ks), in_dim, hd),
            "block": [gconv_params(next(ks), hd, hd) for _ in range(nl - 2)],
            "last": gconv_params(next(ks), hd, ed),
        }

    params = {"gc": gcn_dict(cfg["input_dim"])}

    assign_dim = int(cfg["max_num_nodes"] * cfg["assign_ratio"])
    assign_input_dim = cfg["input_dim"]
    ahd = cfg["assign_hidden_dim"]
    assign_gc, assign_pred, after_gc = [], [], []
    for _ in range(num_pooling):
        assign_gc.append({
            "first": gconv_params(next(ks), assign_input_dim, ahd),
            "block": [gconv_params(next(ks), ahd, ahd) for _ in range(nl - 2)],
            "last": gconv_params(next(ks), ahd, assign_dim),
        })
        assign_pred_in = ahd * (nl - 1) + assign_dim
        assign_pred.append(linear_params(next(ks), assign_pred_in, assign_dim))
        after_gc.append(gcn_dict(pred_input_dim))
        assign_input_dim = ed
        assign_dim = int(assign_dim * cfg["assign_ratio"])
    params["assign_gc"] = assign_gc
    params["assign_pred"] = assign_pred
    params["after_gc"] = after_gc

    final_in = pred_input_dim * (num_pooling + 1)
    w1, b1 = linear_params(next(ks), final_in, cfg["pred_hidden"])
    w2, b2 = linear_params(next(ks), cfg["pred_hidden"], cfg["label_dim"])
    params["pred"] = {"w1": w1, "b1": b1, "w2": w2, "b2": b2}
    return params


# ----------------------------------------------------------------------------- #
if __name__ == "__main__":
    cfg = dict(
        max_num_nodes=16,
        input_dim=8,
        hidden_dim=16,
        embedding_dim=16,
        label_dim=4,
        num_layers=3,
        assign_hidden_dim=16,
        assign_ratio=0.25,
        num_pooling=1,
        pred_hidden=50,
    )
    B, N, D = 2, cfg["max_num_nodes"], cfg["input_dim"]

    key = jax.random.PRNGKey(0)
    k_p, k_x, k_a = jax.random.split(key, 3)

    params = build_params(k_p, cfg)
    x = jax.random.normal(k_x, (B, N, D), jnp.float32)
    adj_rand = (jax.random.uniform(k_a, (B, N, N)) > 0.5).astype(jnp.float32)
    adj = jnp.maximum(adj_rand, jnp.transpose(adj_rand, (0, 2, 1)))  # symmetric adjacency
    adj = adj + jnp.eye(N, dtype=jnp.float32)[None]
    batch_num_nodes = jnp.array([16, 12], dtype=jnp.int32)

    fwd = jax.jit(lambda p, xx, aa, nn: soft_pooling_gcn_forward(p, xx, aa, nn, cfg))
    ypred = jax.block_until_ready(fwd(params, x, adj, batch_num_nodes))

    assert ypred.shape == (B, cfg["label_dim"])
    assert bool(jnp.all(jnp.isfinite(ypred)))
    print("KERNEL_OK")
</pallas_src>

<mosaic_0001>
module attributes {stable_mosaic.version = 11 : i64} {
  func.func @_soft_pool_kernel(%arg0: memref<2x16x8xf32, #tpu.memory_space<vmem>>, %arg1: memref<2x16x16xf32, #tpu.memory_space<vmem>>, %arg2: memref<2x16x1xf32, #tpu.memory_space<vmem>>, %arg3: memref<16x16xf32, #tpu.memory_space<vmem>>, %arg4: memref<1x16xf32, #tpu.memory_space<vmem>>, %arg5: memref<48x16xf32, #tpu.memory_space<vmem>>, %arg6: memref<1x16xf32, #tpu.memory_space<vmem>>, %arg7: memref<16x16xf32, #tpu.memory_space<vmem>>, %arg8: memref<1x16xf32, #tpu.memory_space<vmem>>, %arg9: memref<16x16xf32, #tpu.memory_space<vmem>>, %arg10: memref<1x16xf32, #tpu.memory_space<vmem>>, %arg11: memref<8x16xf32, #tpu.memory_space<vmem>>, %arg12: memref<1x16xf32, #tpu.memory_space<vmem>>, %arg13: memref<16x4xf32, #tpu.memory_space<vmem>>, %arg14: memref<1x4xf32, #tpu.memory_space<vmem>>, %arg15: memref<36x4xf32, #tpu.memory_space<vmem>>, %arg16: memref<1x4xf32, #tpu.memory_space<vmem>>, %arg17: memref<16x16xf32, #tpu.memory_space<vmem>>, %arg18: memref<1x16xf32, #tpu.memory_space<vmem>>, %arg19: memref<8x16xf32, #tpu.memory_space<vmem>>, %arg20: memref<1x16xf32, #tpu.memory_space<vmem>>, %arg21: memref<16x16xf32, #tpu.memory_space<vmem>>, %arg22: memref<1x16xf32, #tpu.memory_space<vmem>>, %arg23: memref<1x50xf32, #tpu.memory_space<vmem>>, %arg24: memref<1x4xf32, #tpu.memory_space<vmem>>, %arg25: memref<96x50xf32, #tpu.memory_space<vmem>>, %arg26: memref<50x4xf32, #tpu.memory_space<vmem>>, %arg27: memref<2x4xf32, #tpu.memory_space<vmem>>) attributes {dimension_semantics = [], scalar_prefetch = 0 : i64, scratch_operands = 0 : i64, tpu.core_type = #tpu.core_type<tc>} {
    %c0 = arith.constant 0 : index
    %c0_0 = arith.constant 0 : index
    %c0_1 = arith.constant 0 : index
    %0 = vector.load %arg1[%c0, %c0_0, %c0_1] : memref<2x16x16xf32, #tpu.memory_space<vmem>>, vector<1x16x16xf32>
    %1 = vector.shape_cast %0 : vector<1x16x16xf32> to vector<16x16xf32>
    %c1 = arith.constant 1 : index
    %c0_2 = arith.constant 0 : index
    %c0_3 = arith.constant 0 : index
    %2 = vector.load %arg1[%c1, %c0_2, %c0_3] : memref<2x16x16xf32, #tpu.memory_space<vmem>>, vector<1x16x16xf32>
    %3 = vector.shape_cast %2 : vector<1x16x16xf32> to vector<16x16xf32>
    %c0_4 = arith.constant 0 : index
    %c0_5 = arith.constant 0 : index
    %c0_6 = arith.constant 0 : index
    %4 = vector.load %arg0[%c0_4, %c0_5, %c0_6] : memref<2x16x8xf32, #tpu.memory_space<vmem>>, vector<1x16x8xf32>
    %5 = vector.shape_cast %4 : vector<1x16x8xf32> to vector<16x8xf32>
    %c1_7 = arith.constant 1 : index
    %c0_8 = arith.constant 0 : index
    %c0_9 = arith.constant 0 : index
    %6 = vector.load %arg0[%c1_7, %c0_8, %c0_9] : memref<2x16x8xf32, #tpu.memory_space<vmem>>, vector<1x16x8xf32>
    %7 = vector.shape_cast %6 : vector<1x16x8xf32> to vector<16x8xf32>
    %8 = tpu.concatenate %5, %7 in 0 : vector<16x8xf32>, vector<16x8xf32> -> vector<32x8xf32>
    %c0_10 = arith.constant 0 : index
    %c0_11 = arith.constant 0 : index
    %c0_12 = arith.constant 0 : index
    %9 = vector.load %arg2[%c0_10, %c0_11, %c0_12] : memref<2x16x1xf32, #tpu.memory_space<vmem>>, vector<1x16x1xf32>
    %10 = vector.shape_cast %9 : vector<1x16x1xf32> to vector<16x1xf32>
    %c1_13 = arith.constant 1 : index
    %c0_14 = arith.constant 0 : index
    %c0_15 = arith.constant 0 : index
    %11 = vector.load %arg2[%c1_13, %c0_14, %c0_15] : memref<2x16x1xf32, #tpu.memory_space<vmem>>, vector<1x16x1xf32>
    %12 = vector.shape_cast %11 : vector<1x16x1xf32> to vector<16x1xf32>
    %13 = tpu.concatenate %10, %12 in 0 : vector<16x1xf32>, vector<16x1xf32> -> vector<32x1xf32>
    %c0_16 = arith.constant 0 : index
    %c0_17 = arith.constant 0 : index
    %14 = vector.load %arg19[%c0_16, %c0_17] : memref<8x16xf32, #tpu.memory_space<vmem>>, vector<8x16xf32>
    %c0_18 = arith.constant 0 : index
    %c0_19 = arith.constant 0 : index
    %15 = vector.load %arg20[%c0_18, %c0_19] : memref<1x16xf32, #tpu.memory_space<vmem>>, vector<1x16xf32>
    %16 = vector.extract_strided_slice %8 {offsets = [0, 0], sizes = [16, 8], strides = [1, 1]} : vector<32x8xf32> to vector<16x8xf32>
    %cst = arith.constant dense<0.000000e+00> : vector<16x8xf32>
    %17 = tpu.matmul %1, %16, %cst {dimension_numbers = #tpu.dot_dimension_numbers<[1], [0], [0], [1], [0, 0, 1, 1], [], []>} : vector<16x16xf32>, vector<16x8xf32>, vector<16x8xf32> -> vector<16x8xf32>
    %18 = vector.extract_strided_slice %8 {offsets = [16, 0], sizes = [16, 8], strides = [1, 1]} : vector<32x8xf32> to vector<16x8xf32>
    %cst_20 = arith.constant dense<0.000000e+00> : vector<16x8xf32>
    %19 = tpu.matmul %3, %18, %cst_20 {dimension_numbers = #tpu.dot_dimension_numbers<[1], [0], [0], [1], [0, 0, 1, 1], [], []>} : vector<16x16xf32>, vector<16x8xf32>, vector<16x8xf32> -> vector<16x8xf32>
    %20 = tpu.concatenate %17, %19 in 0 : vector<16x8xf32>, vector<16x8xf32> -> vector<32x8xf32>
    %cst_21 = arith.constant dense<0.000000e+00> : vector<32x16xf32>
    %21 = tpu.matmul %20, %14, %cst_21 {dimension_numbers = #tpu.dot_dimension_numbers<[1], [0], [0], [1], [0, 0, 1, 1], [], []>} : vector<32x8xf32>, vector<8x16xf32>, vector<32x16xf32> -> vector<32x16xf32>
    %22 = vector.broadcast %15 : vector<1x16xf32> to vector<32x16xf32>
    %23 = arith.addf %21, %22 : vector<32x16xf32>
    %24 = arith.mulf %23, %23 : vector<32x16xf32>
    %cst_22 = arith.constant dense<0.000000e+00> : vector<32xf32>
    %25 = vector.multi_reduction <add>, %24, %cst_22 [1] : vector<32x16xf32> to vector<32xf32>
    %26 = vector.shape_cast %25 : vector<32xf32> to vector<32x1xf32>
    %27 = math.sqrt %26 : vector<32x1xf32>
    %cst_23 = arith.constant 9.99999996E-13 : f32
    %28 = vector.broadcast %cst_23 : f32 to vector<32x1xf32>
    %29 = arith.maximumf %27, %28 : vector<32x1xf32>
    %30 = vector.broadcast %29 : vector<32x1xf32> to vector<32x16xf32>
    %31 = arith.divf %23, %30 : vector<32x16xf32>
    %cst_24 = arith.constant 0.000000e+00 : f32
    %32 = vector.broadcast %cst_24 : f32 to vector<32x16xf32>
    %33 = arith.maximumf %31, %32 : vector<32x16xf32>
    %cst_25 = arith.constant dense<0.000000e+00> : vector<32xf32>
    %34 = vector.multi_reduction <add>, %33, %cst_25 [1] : vector<32x16xf32> to vector<32xf32>
    %35 = vector.shape_cast %34 : vector<32xf32> to vector<32x1xf32>
    %36 = vector.extract_strided_slice %35 {offsets = [0, 0], sizes = [16, 1], strides = [1, 1]} : vector<32x1xf32> to vector<16x1xf32>
    %37 = vector.extract_strided_slice %35 {offsets = [16, 0], sizes = [16, 1], strides = [1, 1]} : vector<32x1xf32> to vector<16x1xf32>
    %38 = arith.addf %36, %37 : vector<16x1xf32>
    %cst_26 = arith.constant 3.125000e-02 : f32
    %39 = vector.broadcast %cst_26 : f32 to vector<16x1xf32>
    %40 = arith.mulf %38, %39 : vector<16x1xf32>
    %41 = tpu.concatenate %40, %40 in 0 : vector<16x1xf32>, vector<16x1xf32> -> vector<32x1xf32>
    %42 = vector.broadcast %41 : vector<32x1xf32> to vector<32x16xf32>
    %43 = arith.subf %33, %42 : vector<32x16xf32>
    %44 = arith.mulf %43, %43 : vector<32x16xf32>
    %cst_27 = arith.constant dense<0.000000e+00> : vector<32xf32>
    %45 = vector.multi_reduction <add>, %44, %cst_27 [1] : vector<32x16xf32> to vector<32xf32>
    %46 = vector.shape_cast %45 : vector<32xf32> to vector<32x1xf32>
    %47 = vector.extract_strided_slice %46 {offsets = [0, 0], sizes = [16, 1], strides = [1, 1]} : vector<32x1xf32> to vector<16x1xf32>
    %48 = vector.extract_strided_slice %46 {offsets = [16, 0], sizes = [16, 1], strides = [1, 1]} : vector<32x1xf32> to vector<16x1xf32>
    %49 = arith.addf %47, %48 : vector<16x1xf32>
    %cst_28 = arith.constant 3.125000e-02 : f32
    %50 = vector.broadcast %cst_28 : f32 to vector<16x1xf32>
    %51 = arith.mulf %49, %50 : vector<16x1xf32>
    %52 = tpu.concatenate %51, %51 in 0 : vector<16x1xf32>, vector<16x1xf32> -> vector<32x1xf32>
    %cst_29 = arith.constant 9.99999974E-6 : f32
    %53 = vector.broadcast %cst_29 : f32 to vector<32x1xf32>
    %54 = arith.addf %52, %53 : vector<32x1xf32>
    %55 = math.sqrt %54 : vector<32x1xf32>
    %56 = vector.broadcast %55 : vector<32x1xf32> to vector<32x16xf32>
    %57 = arith.divf %43, %56 : vector<32x16xf32>
    %58 = vector.broadcast %13 : vector<32x1xf32> to vector<32x16xf32>
    %59 = arith.mulf %57, %58 : vector<32x16xf32>
    %c0_30 = arith.constant 0 : index
    %c0_31 = arith.constant 0 : index
    %60 = vector.load %arg17[%c0_30, %c0_31] : memref<16x16xf32, #tpu.memory_space<vmem>>, vector<16x16xf32>
    %c0_32 = arith.constant 0 : index
    %c0_33 = arith.constant 0 : index
    %61 = vector.load %arg18[%c0_32, %c0_33] : memref<1x16xf32, #tpu.memory_space<vmem>>, vector<1x16xf32>
    %62 = vector.extract_strided_slice %57 {offsets = [0, 0], sizes = [16, 16], strides = [1, 1]} : vector<32x16xf32> to vector<16x16xf32>
    %cst_34 = arith.constant dense<0.000000e+00> : vector<16x16xf32>
    %63 = tpu.matmul %1, %62, %cst_34 {dimension_numbers = #tpu.dot_dimension_numbers<[1], [0], [0], [1], [0, 0, 1, 1], [], []>} : vector<16x16xf32>, vector<16x16xf32>, vector<16x16xf32> -> vector<16x16xf32>
    %64 = vector.extract_strided_slice %57 {offsets = [16, 0], sizes = [16, 16], strides = [1, 1]} : vector<32x16xf32> to vector<16x16xf32>
    %cst_35 = arith.constant dense<0.000000e+00> : vector<16x16xf32>
    %65 = tpu.matmul %3, %64, %cst_35 {dimension_numbers = #tpu.dot_dimension_numbers<[1], [0], [0], [1], [0, 0, 1, 1], [], []>} : vector<16x16xf32>, vector<16x16xf32>, vector<16x16xf32> -> vector<16x16xf32>
    %66 = tpu.concatenate %63, %65 in 0 : vector<16x16xf32>, vector<16x16xf32> -> vector<32x16xf32>
    %cst_36 = arith.constant dense<0.000000e+00> : vector<32x16xf32>
    %67 = tpu.matmul %66, %60, %cst_36 {dimension_numbers = #tpu.dot_dimension_numbers<[1], [0], [0], [1], [0, 0, 1, 1], [], []>} : vector<32x16xf32>, vector<16x16xf32>, vector<32x16xf32> -> vector<32x16xf32>
    %68 = vector.broadcast %61 : vector<1x16xf32> to vector<32x16xf32>
    %69 = arith.addf %67, %68 : vector<32x16xf32>
    %70 = arith.mulf %69, %69 : vector<32x16xf32>
    %cst_37 = arith.constant dense<0.000000e+00> : vector<32xf32>
    %71 = vector.multi_reduction <add>, %70, %cst_37 [1] : vector<32x16xf32> to vector<32xf32>
    %72 = vector.shape_cast %71 : vector<32xf32> to vector<32x1xf32>
    %73 = math.sqrt %72 : vector<32x1xf32>
    %cst_38 = arith.constant 9.99999996E-13 : f32
    %74 = vector.broadcast %cst_38 : f32 to vector<32x1xf32>
    %75 = arith.maximumf %73, %74 : vector<32x1xf32>
    %76 = vector.broadcast %75 : vector<32x1xf32> to vector<32x16xf32>
    %77 = arith.divf %69, %76 : vector<32x16xf32>
    %cst_39 = arith.constant 0.000000e+00 : f32
    %78 = vector.broadcast %cst_39 : f32 to vector<32x16xf32>
    %79 = arith.maximumf %77, %78 : vector<32x16xf32>
    %cst_40 = arith.constant dense<0.000000e+00> : vector<32xf32>
    %80 = vector.multi_reduction <add>, %79, %cst_40 [1] : vector<32x16xf32> to vector<32xf32>
    %81 = vector.shape_cast %80 : vector<32xf32> to vector<32x1xf32>
    %82 = vector.extract_strided_slice %81 {offsets = [0, 0], sizes = [16, 1], strides = [1, 1]} : vector<32x1xf32> to vector<16x1xf32>
    %83 = vector.extract_strided_slice %81 {offsets = [16, 0], sizes = [16, 1], strides = [1, 1]} : vector<32x1xf32> to vector<16x1xf32>
    %84 = arith.addf %82, %83 : vector<16x1xf32>
    %cst_41 = arith.constant 3.125000e-02 : f32
    %85 = vector.broadcast %cst_41 : f32 to vector<16x1xf32>
    %86 = arith.mulf %84, %85 : vector<16x1xf32>
    %87 = tpu.concatenate %86, %86 in 0 : vector<16x1xf32>, vector<16x1xf32> -> vector<32x1xf32>
    %88 = vector.broadcast %87 : vector<32x1xf32> to vector<32x16xf32>
    %89 = arith.subf %79, %88 : vector<32x16xf32>
    %90 = arith.mulf %89, %89 : vector<32x16xf32>
    %cst_42 = arith.constant dense<0.000000e+00> : vector<32xf32>
    %91 = vector.multi_reduction <add>, %90, %cst_42 [1] : vector<32x16xf32> to vector<32xf32>
    %92 = vector.shape_cast %91 : vector<32xf32> to vector<32x1xf32>
    %93 = vector.extract_strided_slice %92 {offsets = [0, 0], sizes = [16, 1], strides = [1, 1]} : vector<32x1xf32> to vector<16x1xf32>
    %94 = vector.extract_strided_slice %92 {offsets = [16, 0], sizes = [16, 1], strides = [1, 1]} : vector<32x1xf32> to vector<16x1xf32>
    %95 = arith.addf %93, %94 : vector<16x1xf32>
    %cst_43 = arith.constant 3.125000e-02 : f32
    %96 = vector.broadcast %cst_43 : f32 to vector<16x1xf32>
    %97 = arith.mulf %95, %96 : vector<16x1xf32>
    %98 = tpu.concatenate %97, %97 in 0 : vector<16x1xf32>, vector<16x1xf32> -> vector<32x1xf32>
    %cst_44 = arith.constant 9.99999974E-6 : f32
    %99 = vector.broadcast %cst_44 : f32 to vector<32x1xf32>
    %100 = arith.addf %98, %99 : vector<32x1xf32>
    %101 = math.sqrt %100 : vector<32x1xf32>
    %102 = vector.broadcast %101 : vector<32x1xf32> to vector<32x16xf32>
    %103 = arith.divf %89, %102 : vector<32x16xf32>
    %104 = vector.broadcast %13 : vector<32x1xf32> to vector<32x16xf32>
    %105 = arith.mulf %103, %104 : vector<32x16xf32>
    %c0_45 = arith.constant 0 : index
    %c0_46 = arith.constant 0 : index
    %106 = vector.load %arg21[%c0_45, %c0_46] : memref<16x16xf32, #tpu.memory_space<vmem>>, vector<16x16xf32>
    %c0_47 = arith.constant 0 : index
    %c0_48 = arith.constant 0 : index
    %107 = vector.load %arg22[%c0_47, %c0_48] : memref<1x16xf32, #tpu.memory_space<vmem>>, vector<1x16xf32>
    %108 = vector.extract_strided_slice %103 {offsets = [0, 0], sizes = [16, 16], strides = [1, 1]} : vector<32x16xf32> to vector<16x16xf32>
    %cst_49 = arith.constant dense<0.000000e+00> : vector<16x16xf32>
    %109 = tpu.matmul %1, %108, %cst_49 {dimension_numbers = #tpu.dot_dimension_numbers<[1], [0], [0], [1], [0, 0, 1, 1], [], []>} : vector<16x16xf32>, vector<16x16xf32>, vector<16x16xf32> -> vector<16x16xf32>
    %110 = vector.extract_strided_slice %103 {offsets = [16, 0], sizes = [16, 16], strides = [1, 1]} : vector<32x16xf32> to vector<16x16xf32>
    %cst_50 = arith.constant dense<0.000000e+00> : vector<16x16xf32>
    %111 = tpu.matmul %3, %110, %cst_50 {dimension_numbers = #tpu.dot_dimension_numbers<[1], [0], [0], [1], [0, 0, 1, 1], [], []>} : vector<16x16xf32>, vector<16x16xf32>, vector<16x16xf32> -> vector<16x16xf32>
    %112 = tpu.concatenate %109, %111 in 0 : vector<16x16xf32>, vector<16x16xf32> -> vector<32x16xf32>
    %cst_51 = arith.constant dense<0.000000e+00> : vector<32x16xf32>
    %113 = tpu.matmul %112, %106, %cst_51 {dimension_numbers = #tpu.dot_dimension_numbers<[1], [0], [0], [1], [0, 0, 1, 1], [], []>} : vector<32x16xf32>, vector<16x16xf32>, vector<32x16xf32> -> vector<32x16xf32>
    %114 = vector.broadcast %107 : vector<1x16xf32> to vector<32x16xf32>
    %115 = arith.addf %113, %114 : vector<32x16xf32>
    %116 = arith.mulf %115, %115 : vector<32x16xf32>
    %cst_52 = arith.constant dense<0.000000e+00> : vector<32xf32>
    %117 = vector.multi_reduction <add>, %116, %cst_52 [1] : vector<32x16xf32> to vector<32xf32>
    %118 = vector.shape_cast %117 : vector<32xf32> to vector<32x1xf32>
    %119 = math.sqrt %118 : vector<32x1xf32>
    %cst_53 = arith.constant 9.99999996E-13 : f32
    %120 = vector.broadcast %cst_53 : f32 to vector<32x1xf32>
    %121 = arith.maximumf %119, %120 : vector<32x1xf32>
    %122 = vector.broadcast %121 : vector<32x1xf32> to vector<32x16xf32>
    %123 = arith.divf %115, %122 : vector<32x16xf32>
    %124 = vector.broadcast %13 : vector<32x1xf32> to vector<32x16xf32>
    %125 = arith.mulf %123, %124 : vector<32x16xf32>
    %126 = tpu.concatenate %59, %105, %125 in 1 : vector<32x16xf32>, vector<32x16xf32>, vector<32x16xf32> -> vector<32x48xf32>
    %127 = vector.extract_strided_slice %126 {offsets = [0, 0], sizes = [16, 48], strides = [1, 1]} : vector<32x48xf32> to vector<16x48xf32>
    %cst_54 = arith.constant dense<0xFF800000> : vector<48xf32>
    %128 = vector.multi_reduction <maximumf>, %127, %cst_54 [0] : vector<16x48xf32> to vector<48xf32>
    %129 = vector.shape_cast %128 : vector<48xf32> to vector<1x48xf32>
    %130 = vector.extract_strided_slice %126 {offsets = [16, 0], sizes = [16, 48], strides = [1, 1]} : vector<32x48xf32> to vector<16x48xf32>
    %cst_55 = arith.constant dense<0xFF800000> : vector<48xf32>
    %131 = vector.multi_reduction <maximumf>, %130, %cst_55 [0] : vector<16x48xf32> to vector<48xf32>
    %132 = vector.shape_cast %131 : vector<48xf32> to vector<1x48xf32>
    %133 = tpu.concatenate %129, %132 in 0 : vector<1x48xf32>, vector<1x48xf32> -> vector<2x48xf32>
    %c0_56 = arith.constant 0 : index
    %c0_57 = arith.constant 0 : index
    %134 = vector.load %arg11[%c0_56, %c0_57] : memref<8x16xf32, #tpu.memory_space<vmem>>, vector<8x16xf32>
    %c0_58 = arith.constant 0 : index
    %c0_59 = arith.constant 0 : index
    %135 = vector.load %arg12[%c0_58, %c0_59] : memref<1x16xf32, #tpu.memory_space<vmem>>, vector<1x16xf32>
    %136 = vector.extract_strided_slice %8 {offsets = [0, 0], sizes = [16, 8], strides = [1, 1]} : vector<32x8xf32> to vector<16x8xf32>
    %cst_60 = arith.constant dense<0.000000e+00> : vector<16x8xf32>
    %137 = tpu.matmul %1, %136, %cst_60 {dimension_numbers = #tpu.dot_dimension_numbers<[1], [0], [0], [1], [0, 0, 1, 1], [], []>} : vector<16x16xf32>, vector<16x8xf32>, vector<16x8xf32> -> vector<16x8xf32>
    %138 = vector.extract_strided_slice %8 {offsets = [16, 0], sizes = [16, 8], strides = [1, 1]} : vector<32x8xf32> to vector<16x8xf32>
    %cst_61 = arith.constant dense<0.000000e+00> : vector<16x8xf32>
    %139 = tpu.matmul %3, %138, %cst_61 {dimension_numbers = #tpu.dot_dimension_numbers<[1], [0], [0], [1], [0, 0, 1, 1], [], []>} : vector<16x16xf32>, vector<16x8xf32>, vector<16x8xf32> -> vector<16x8xf32>
    %140 = tpu.concatenate %137, %139 in 0 : vector<16x8xf32>, vector<16x8xf32> -> vector<32x8xf32>
    %cst_62 = arith.constant dense<0.000000e+00> : vector<32x16xf32>
    %141 = tpu.matmul %140, %134, %cst_62 {dimension_numbers = #tpu.dot_dimension_numbers<[1], [0], [0], [1], [0, 0, 1, 1], [], []>} : vector<32x8xf32>, vector<8x16xf32>, vector<32x16xf32> -> vector<32x16xf32>
    %142 = vector.broadcast %135 : vector<1x16xf32> to vector<32x16xf32>
    %143 = arith.addf %141, %142 : vector<32x16xf32>
    %144 = arith.mulf %143, %143 : vector<32x16xf32>
    %cst_63 = arith.constant dense<0.000000e+00> : vector<32xf32>
    %145 = vector.multi_reduction <add>, %144, %cst_63 [1] : vector<32x16xf32> to vector<32xf32>
    %146 = vector.shape_cast %145 : vector<32xf32> to vector<32x1xf32>
    %147 = math.sqrt %146 : vector<32x1xf32>
    %cst_64 = arith.constant 9.99999996E-13 : f32
    %148 = vector.broadcast %cst_64 : f32 to vector<32x1xf32>
    %149 = arith.maximumf %147, %148 : vector<32x1xf32>
    %150 = vector.broadcast %149 : vector<32x1xf32> to vector<32x16xf32>
    %151 = arith.divf %143, %150 : vector<32x16xf32>
    %cst_65 = arith.constant 0.000000e+00 : f32
    %152 = vector.broadcast %cst_65 : f32 to vector<32x16xf32>
    %153 = arith.maximumf %151, %152 : vector<32x16xf32>
    %cst_66 = arith.constant dense<0.000000e+00> : vector<32xf32>
    %154 = vector.multi_reduction <add>, %153, %cst_66 [1] : vector<32x16xf32> to vector<32xf32>
    %155 = vector.shape_cast %154 : vector<32xf32> to vector<32x1xf32>
    %156 = vector.extract_strided_slice %155 {offsets = [0, 0], sizes = [16, 1], strides = [1, 1]} : vector<32x1xf32> to vector<16x1xf32>
    %157 = vector.extract_strided_slice %155 {offsets = [16, 0], sizes = [16, 1], strides = [1, 1]} : vector<32x1xf32> to vector<16x1xf32>
    %158 = arith.addf %156, %157 : vector<16x1xf32>
    %cst_67 = arith.constant 3.125000e-02 : f32
    %159 = vector.broadcast %cst_67 : f32 to vector<16x1xf32>
    %160 = arith.mulf %158, %159 : vector<16x1xf32>
    %161 = tpu.concatenate %160, %160 in 0 : vector<16x1xf32>, vector<16x1xf32> -> vector<32x1xf32>
    %162 = vector.broadcast %161 : vector<32x1xf32> to vector<32x16xf32>
    %163 = arith.subf %153, %162 : vector<32x16xf32>
    %164 = arith.mulf %163, %163 : vector<32x16xf32>
    %cst_68 = arith.constant dense<0.000000e+00> : vector<32xf32>
    %165 = vector.multi_reduction <add>, %164, %cst_68 [1] : vector<32x16xf32> to vector<32xf32>
    %166 = vector.shape_cast %165 : vector<32xf32> to vector<32x1xf32>
    %167 = vector.extract_strided_slice %166 {offsets = [0, 0], sizes = [16, 1], strides = [1, 1]} : vector<32x1xf32> to vector<16x1xf32>
    %168 = vector.extract_strided_slice %166 {offsets = [16, 0], sizes = [16, 1], strides = [1, 1]} : vector<32x1xf32> to vector<16x1xf32>
    %169 = arith.addf %167, %168 : vector<16x1xf32>
    %cst_69 = arith.constant 3.125000e-02 : f32
    %170 = vector.broadcast %cst_69 : f32 to vector<16x1xf32>
    %171 = arith.mulf %169, %170 : vector<16x1xf32>
    %172 = tpu.concatenate %171, %171 in 0 : vector<16x1xf32>, vector<16x1xf32> -> vector<32x1xf32>
    %cst_70 = arith.constant 9.99999974E-6 : f32
    %173 = vector.broadcast %cst_70 : f32 to vector<32x1xf32>
    %174 = arith.addf %172, %173 : vector<32x1xf32>
    %175 = math.sqrt %174 : vector<32x1xf32>
    %176 = vector.broadcast %175 : vector<32x1xf32> to vector<32x16xf32>
    %177 = arith.divf %163, %176 : vector<32x16xf32>
    %178 = vector.broadcast %13 : vector<32x1xf32> to vector<32x16xf32>
    %179 = arith.mulf %177, %178 : vector<32x16xf32>
    %c0_71 = arith.constant 0 : index
    %c0_72 = arith.constant 0 : index
    %180 = vector.load %arg9[%c0_71, %c0_72] : memref<16x16xf32, #tpu.memory_space<vmem>>, vector<16x16xf32>
    %c0_73 = arith.constant 0 : index
    %c0_74 = arith.constant 0 : index
    %181 = vector.load %arg10[%c0_73, %c0_74] : memref<1x16xf32, #tpu.memory_space<vmem>>, vector<1x16xf32>
    %182 = vector.extract_strided_slice %177 {offsets = [0, 0], sizes = [16, 16], strides = [1, 1]} : vector<32x16xf32> to vector<16x16xf32>
    %cst_75 = arith.constant dense<0.000000e+00> : vector<16x16xf32>
    %183 = tpu.matmul %1, %182, %cst_75 {dimension_numbers = #tpu.dot_dimension_numbers<[1], [0], [0], [1], [0, 0, 1, 1], [], []>} : vector<16x16xf32>, vector<16x16xf32>, vector<16x16xf32> -> vector<16x16xf32>
    %184 = vector.extract_strided_slice %177 {offsets = [16, 0], sizes = [16, 16], strides = [1, 1]} : vector<32x16xf32> to vector<16x16xf32>
    %cst_76 = arith.constant dense<0.000000e+00> : vector<16x16xf32>
    %185 = tpu.matmul %3, %184, %cst_76 {dimension_numbers = #tpu.dot_dimension_numbers<[1], [0], [0], [1], [0, 0, 1, 1], [], []>} : vector<16x16xf32>, vector<16x16xf32>, vector<16x16xf32> -> vector<16x16xf32>
    %186 = tpu.concatenate %183, %185 in 0 : vector<16x16xf32>, vector<16x16xf32> -> vector<32x16xf32>
    %cst_77 = arith.constant dense<0.000000e+00> : vector<32x16xf32>
    %187 = tpu.matmul %186, %180, %cst_77 {dimension_numbers = #tpu.dot_dimension_numbers<[1], [0], [0], [1], [0, 0, 1, 1], [], []>} : vector<32x16xf32>, vector<16x16xf32>, vector<32x16xf32> -> vector<32x16xf32>
    %188 = vector.broadcast %181 : vector<1x16xf32> to vector<32x16xf32>
    %189 = arith.addf %187, %188 : vector<32x16xf32>
    %190 = arith.mulf %189, %189 : vector<32x16xf32>
    %cst_78 = arith.constant dense<0.000000e+00> : vector<32xf32>
    %191 = vector.multi_reduction <add>, %190, %cst_78 [1] : vector<32x16xf32> to vector<32xf32>
    %192 = vector.shape_cast %191 : vector<32xf32> to vector<32x1xf32>
    %193 = math.sqrt %192 : vector<32x1xf32>
    %cst_79 = arith.constant 9.99999996E-13 : f32
    %194 = vector.broadcast %cst_79 : f32 to vector<32x1xf32>
    %195 = arith.maximumf %193, %194 : vector<32x1xf32>
    %196 = vector.broadcast %195 : vector<32x1xf32> to vector<32x16xf32>
    %197 = arith.divf %189, %196 : vector<32x16xf32>
    %cst_80 = arith.constant 0.000000e+00 : f32
    %198 = vector.broadcast %cst_80 : f32 to vector<32x16xf32>
    %199 = arith.maximumf %197, %198 : vector<32x16xf32>
    %cst_81 = arith.constant dense<0.000000e+00> : vector<32xf32>
    %200 = vector.multi_reduction <add>, %199, %cst_81 [1] : vector<32x16xf32> to vector<32xf32>
    %201 = vector.shape_cast %200 : vector<32xf32> to vector<32x1xf32>
    %202 = vector.extract_strided_slice %201 {offsets = [0, 0], sizes = [16, 1], strides = [1, 1]} : vector<32x1xf32> to vector<16x1xf32>
    %203 = vector.extract_strided_slice %201 {offsets = [16, 0], sizes = [16, 1], strides = [1, 1]} : vector<32x1xf32> to vector<16x1xf32>
    %204 = arith.addf %202, %203 : vector<16x1xf32>
    %cst_82 = arith.constant 3.125000e-02 : f32
    %205 = vector.broadcast %cst_82 : f32 to vector<16x1xf32>
    %206 = arith.mulf %204, %205 : vector<16x1xf32>
    %207 = tpu.concatenate %206, %206 in 0 : vector<16x1xf32>, vector<16x1xf32> -> vector<32x1xf32>
    %208 = vector.broadcast %207 : vector<32x1xf32> to vector<32x16xf32>
    %209 = arith.subf %199, %208 : vector<32x16xf32>
    %210 = arith.mulf %209, %209 : vector<32x16xf32>
    %cst_83 = arith.constant dense<0.000000e+00> : vector<32xf32>
    %211 = vector.multi_reduction <add>, %210, %cst_83 [1] : vector<32x16xf32> to vector<32xf32>
    %212 = vector.shape_cast %211 : vector<32xf32> to vector<32x1xf32>
    %213 = vector.extract_strided_slice %212 {offsets = [0, 0], sizes = [16, 1], strides = [1, 1]} : vector<32x1xf32> to vector<16x1xf32>
    %214 = vector.extract_strided_slice %212 {offsets = [16, 0], sizes = [16, 1], strides = [1, 1]} : vector<32x1xf32> to vector<16x1xf32>
    %215 = arith.addf %213, %214 : vector<16x1xf32>
    %cst_84 = arith.constant 3.125000e-02 : f32
    %216 = vector.broadcast %cst_84 : f32 to vector<16x1xf32>
    %217 = arith.mulf %215, %216 : vector<16x1xf32>
    %218 = tpu.concatenate %217, %217 in 0 : vector<16x1xf32>, vector<16x1xf32> -> vector<32x1xf32>
    %cst_85 = arith.constant 9.99999974E-6 : f32
    %219 = vector.broadcast %cst_85 : f32 to vector<32x1xf32>
    %220 = arith.addf %218, %219 : vector<32x1xf32>
    %221 = math.sqrt %220 : vector<32x1xf32>
    %222 = vector.broadcast %221 : vector<32x1xf32> to vector<32x16xf32>
    %223 = arith.divf %209, %222 : vector<32x16xf32>
    %224 = vector.broadcast %13 : vector<32x1xf32> to vector<32x16xf32>
    %225 = arith.mulf %223, %224 : vector<32x16xf32>
    %c0_86 = arith.constant 0 : index
    %c0_87 = arith.constant 0 : index
    %226 = vector.load %arg13[%c0_86, %c0_87] : memref<16x4xf32, #tpu.memory_space<vmem>>, vector<16x4xf32>
    %c0_88 = arith.constant 0 : index
    %c0_89 = arith.constant 0 : index
    %227 = vector.load %arg14[%c0_88, %c0_89] : memref<1x4xf32, #tpu.memory_space<vmem>>, vector<1x4xf32>
    %228 = vector.extract_strided_slice %223 {offsets = [0, 0], sizes = [16, 16], strides = [1, 1]} : vector<32x16xf32> to vector<16x16xf32>
    %cst_90 = arith.constant dense<0.000000e+00> : vector<16x16xf32>
    %229 = tpu.matmul %1, %228, %cst_90 {dimension_numbers = #tpu.dot_dimension_numbers<[1], [0], [0], [1], [0, 0, 1, 1], [], []>} : vector<16x16xf32>, vector<16x16xf32>, vector<16x16xf32> -> vector<16x16xf32>
    %230 = vector.extract_strided_slice %223 {offsets = [16, 0], sizes = [16, 16], strides = [1, 1]} : vector<32x16xf32> to vector<16x16xf32>
    %cst_91 = arith.constant dense<0.000000e+00> : vector<16x16xf32>
    %231 = tpu.matmul %3, %230, %cst_91 {dimension_numbers = #tpu.dot_dimension_numbers<[1], [0], [0], [1], [0, 0, 1, 1], [], []>} : vector<16x16xf32>, vector<16x16xf32>, vector<16x16xf32> -> vector<16x16xf32>
    %232 = tpu.concatenate %229, %231 in 0 : vector<16x16xf32>, vector<16x16xf32> -> vector<32x16xf32>
    %cst_92 = arith.constant dense<0.000000e+00> : vector<32x4xf32>
    %233 = tpu.matmul %232, %226, %cst_92 {dimension_numbers = #tpu.dot_dimension_numbers<[1], [0], [0], [1], [0, 0, 1, 1], [], []>} : vector<32x16xf32>, vector<16x4xf32>, vector<32x4xf32> -> vector<32x4xf32>
    %234 = vector.broadcast %227 : vector<1x4xf32> to vector<32x4xf32>
    %235 = arith.addf %233, %234 : vector<32x4xf32>
    %236 = arith.mulf %235, %235 : vector<32x4xf32>
    %cst_93 = arith.constant dense<0.000000e+00> : vector<32xf32>
    %237 = vector.multi_reduction <add>, %236, %cst_93 [1] : vector<32x4xf32> to vector<32xf32>
    %238 = vector.shape_cast %237 : vector<32xf32> to vector<32x1xf32>
    %239 = math.sqrt %238 : vector<32x1xf32>
    %cst_94 = arith.constant 9.99999996E-13 : f32
    %240 = vector.broadcast %cst_94 : f32 to vector<32x1xf32>
    %241 = arith.maximumf %239, %240 : vector<32x1xf32>
    %242 = vector.broadcast %241 : vector<32x1xf32> to vector<32x4xf32>
    %243 = arith.divf %235, %242 : vector<32x4xf32>
    %244 = vector.broadcast %13 : vector<32x1xf32> to vector<32x4xf32>
    %245 = arith.mulf %243, %244 : vector<32x4xf32>
    %246 = tpu.concatenate %179, %225, %245 in 1 : vector<32x16xf32>, vector<32x16xf32>, vector<32x4xf32> -> vector<32x36xf32>
    %c0_95 = arith.constant 0 : index
    %c0_96 = arith.constant 0 : index
    %247 = vector.load %arg15[%c0_95, %c0_96] : memref<36x4xf32, #tpu.memory_space<vmem>>, vector<36x4xf32>
    %cst_97 = arith.constant dense<0.000000e+00> : vector<32x4xf32>
    %248 = tpu.matmul %246, %247, %cst_97 {dimension_numbers = #tpu.dot_dimension_numbers<[1], [0], [0], [1], [0, 0, 1, 1], [], []>} : vector<32x36xf32>, vector<36x4xf32>, vector<32x4xf32> -> vector<32x4xf32>
    %c0_98 = arith.constant 0 : index
    %c0_99 = arith.constant 0 : index
    %249 = vector.load %arg16[%c0_98, %c0_99] : memref<1x4xf32, #tpu.memory_space<vmem>>, vector<1x4xf32>
    %250 = vector.broadcast %249 : vector<1x4xf32> to vector<32x4xf32>
    %251 = arith.addf %248, %250 : vector<32x4xf32>
    %cst_100 = arith.constant dense<0xFF800000> : vector<32xf32>
    %252 = vector.multi_reduction <maximumf>, %251, %cst_100 [1] : vector<32x4xf32> to vector<32xf32>
    %253 = vector.shape_cast %252 : vector<32xf32> to vector<32x1xf32>
    %254 = vector.broadcast %253 : vector<32x1xf32> to vector<32x4xf32>
    %255 = arith.subf %251, %254 : vector<32x4xf32>
    %256 = math.exp %255 : vector<32x4xf32>
    %cst_101 = arith.constant dense<0.000000e+00> : vector<32xf32>
    %257 = vector.multi_reduction <add>, %256, %cst_101 [1] : vector<32x4xf32> to vector<32xf32>
    %258 = vector.shape_cast %257 : vector<32xf32> to vector<32x1xf32>
    %259 = vector.broadcast %258 : vector<32x1xf32> to vector<32x4xf32>
    %260 = arith.divf %256, %259 : vector<32x4xf32>
    %261 = vector.broadcast %13 : vector<32x1xf32> to vector<32x4xf32>
    %262 = arith.mulf %260, %261 : vector<32x4xf32>
    %263 = vector.extract_strided_slice %262 {offsets = [0, 0], sizes = [16, 4], strides = [1, 1]} : vector<32x4xf32> to vector<16x4xf32>
    %264 = tpu.transpose %263, [1, 0] : vector<16x4xf32> -> vector<4x16xf32>
    %265 = vector.extract_strided_slice %126 {offsets = [0, 0], sizes = [16, 48], strides = [1, 1]} : vector<32x48xf32> to vector<16x48xf32>
    %cst_102 = arith.constant dense<0.000000e+00> : vector<4x48xf32>
    %266 = tpu.matmul %264, %265, %cst_102 {dimension_numbers = #tpu.dot_dimension_numbers<[1], [0], [0], [1], [0, 0, 1, 1], [], []>} : vector<4x16xf32>, vector<16x48xf32>, vector<4x48xf32> -> vector<4x48xf32>
    %cst_103 = arith.constant dense<0.000000e+00> : vector<4x16xf32>
    %267 = tpu.matmul %264, %1, %cst_103 {dimension_numbers = #tpu.dot_dimension_numbers<[1], [0], [0], [1], [0, 0, 1, 1], [], []>} : vector<4x16xf32>, vector<16x16xf32>, vector<4x16xf32> -> vector<4x16xf32>
    %cst_104 = arith.constant dense<0.000000e+00> : vector<4x4xf32>
    %268 = tpu.matmul %267, %263, %cst_104 {dimension_numbers = #tpu.dot_dimension_numbers<[1], [0], [0], [1], [0, 0, 1, 1], [], []>} : vector<4x16xf32>, vector<16x4xf32>, vector<4x4xf32> -> vector<4x4xf32>
    %269 = vector.extract_strided_slice %262 {offsets = [16, 0], sizes = [16, 4], strides = [1, 1]} : vector<32x4xf32> to vector<16x4xf32>
    %270 = tpu.transpose %269, [1, 0] : vector<16x4xf32> -> vector<4x16xf32>
    %271 = vector.extract_strided_slice %126 {offsets = [16, 0], sizes = [16, 48], strides = [1, 1]} : vector<32x48xf32> to vector<16x48xf32>
    %cst_105 = arith.constant dense<0.000000e+00> : vector<4x48xf32>
    %272 = tpu.matmul %270, %271, %cst_105 {dimension_numbers = #tpu.dot_dimension_numbers<[1], [0], [0], [1], [0, 0, 1, 1], [], []>} : vector<4x16xf32>, vector<16x48xf32>, vector<4x48xf32> -> vector<4x48xf32>
    %cst_106 = arith.constant dense<0.000000e+00> : vector<4x16xf32>
    %273 = tpu.matmul %270, %3, %cst_106 {dimension_numbers = #tpu.dot_dimension_numbers<[1], [0], [0], [1], [0, 0, 1, 1], [], []>} : vector<4x16xf32>, vector<16x16xf32>, vector<4x16xf32> -> vector<4x16xf32>
    %cst_107 = arith.constant dense<0.000000e+00> : vector<4x4xf32>
    %274 = tpu.matmul %273, %269, %cst_107 {dimension_numbers = #tpu.dot_dimension_numbers<[1], [0], [0], [1], [0, 0, 1, 1], [], []>} : vector<4x16xf32>, vector<16x4xf32>, vector<4x4xf32> -> vector<4x4xf32>
    %275 = tpu.concatenate %266, %272 in 0 : vector<4x48xf32>, vector<4x48xf32> -> vector<8x48xf32>
    %c0_108 = arith.constant 0 : index
    %c0_109 = arith.constant 0 : index
    %276 = vector.load %arg5[%c0_108, %c0_109] : memref<48x16xf32, #tpu.memory_space<vmem>>, vector<48x16xf32>
    %c0_110 = arith.constant 0 : index
    %c0_111 = arith.constant 0 : index
    %277 = vector.load %arg6[%c0_110, %c0_111] : memref<1x16xf32, #tpu.memory_space<vmem>>, vector<1x16xf32>
    %278 = vector.extract_strided_slice %275 {offsets = [0, 0], sizes = [4, 48], strides = [1, 1]} : vector<8x48xf32> to vector<4x48xf32>
    %cst_112 = arith.constant dense<0.000000e+00> : vector<4x48xf32>
    %279 = tpu.matmul %268, %278, %cst_112 {dimension_numbers = #tpu.dot_dimension_numbers<[1], [0], [0], [1], [0, 0, 1, 1], [], []>} : vector<4x4xf32>, vector<4x48xf32>, vector<4x48xf32> -> vector<4x48xf32>
    %280 = vector.extract_strided_slice %275 {offsets = [4, 0], sizes = [4, 48], strides = [1, 1]} : vector<8x48xf32> to vector<4x48xf32>
    %cst_113 = arith.constant dense<0.000000e+00> : vector<4x48xf32>
    %281 = tpu.matmul %274, %280, %cst_113 {dimension_numbers = #tpu.dot_dimension_numbers<[1], [0], [0], [1], [0, 0, 1, 1], [], []>} : vector<4x4xf32>, vector<4x48xf32>, vector<4x48xf32> -> vector<4x48xf32>
    %282 = tpu.concatenate %279, %281 in 0 : vector<4x48xf32>, vector<4x48xf32> -> vector<8x48xf32>
    %cst_114 = arith.constant dense<0.000000e+00> : vector<8x16xf32>
    %283 = tpu.matmul %282, %276, %cst_114 {dimension_numbers = #tpu.dot_dimension_numbers<[1], [0], [0], [1], [0, 0, 1, 1], [], []>} : vector<8x48xf32>, vector<48x16xf32>, vector<8x16xf32> -> vector<8x16xf32>
    %284 = vector.broadcast %277 : vector<1x16xf32> to vector<8x16xf32>
    %285 = arith.addf %283, %284 : vector<8x16xf32>
    %286 = arith.mulf %285, %285 : vector<8x16xf32>
    %cst_115 = arith.constant dense<0.000000e+00> : vector<8xf32>
    %287 = vector.multi_reduction <add>, %286, %cst_115 [1] : vector<8x16xf32> to vector<8xf32>
    %288 = vector.shape_cast %287 : vector<8xf32> to vector<8x1xf32>
    %289 = math.sqrt %288 : vector<8x1xf32>
    %cst_116 = arith.constant 9.99999996E-13 : f32
    %290 = vector.broadcast %cst_116 : f32 to vector<8x1xf32>
    %291 = arith.maximumf %289, %290 : vector<8x1xf32>
    %292 = vector.broadcast %291 : vector<8x1xf32> to vector<8x16xf32>
    %293 = arith.divf %285, %292 : vector<8x16xf32>
    %cst_117 = arith.constant 0.000000e+00 : f32
    %294 = vector.broadcast %cst_117 : f32 to vector<8x16xf32>
    %295 = arith.maximumf %293, %294 : vector<8x16xf32>
    %cst_118 = arith.constant dense<0.000000e+00> : vector<8xf32>
    %296 = vector.multi_reduction <add>, %295, %cst_118 [1] : vector<8x16xf32> to vector<8xf32>
    %297 = vector.shape_cast %296 : vector<8xf32> to vector<8x1xf32>
    %298 = vector.extract_strided_slice %297 {offsets = [0, 0], sizes = [4, 1], strides = [1, 1]} : vector<8x1xf32> to vector<4x1xf32>
    %299 = vector.extract_strided_slice %297 {offsets = [4, 0], sizes = [4, 1], strides = [1, 1]} : vector<8x1xf32> to vector<4x1xf32>
    %300 = arith.addf %298, %299 : vector<4x1xf32>
    %cst_119 = arith.constant 3.125000e-02 : f32
    %301 = vector.broadcast %cst_119 : f32 to vector<4x1xf32>
    %302 = arith.mulf %300, %301 : vector<4x1xf32>
    %303 = tpu.concatenate %302, %302 in 0 : vector<4x1xf32>, vector<4x1xf32> -> vector<8x1xf32>
    %304 = vector.broadcast %303 : vector<8x1xf32> to vector<8x16xf32>
    %305 = arith.subf %295, %304 : vector<8x16xf32>
    %306 = arith.mulf %305, %305 : vector<8x16xf32>
    %cst_120 = arith.constant dense<0.000000e+00> : vector<8xf32>
    %307 = vector.multi_reduction <add>, %306, %cst_120 [1] : vector<8x16xf32> to vector<8xf32>
    %308 = vector.shape_cast %307 : vector<8xf32> to vector<8x1xf32>
    %309 = vector.extract_strided_slice %308 {offsets = [0, 0], sizes = [4, 1], strides = [1, 1]} : vector<8x1xf32> to vector<4x1xf32>
    %310 = vector.extract_strided_slice %308 {offsets = [4, 0], sizes = [4, 1], strides = [1, 1]} : vector<8x1xf32> to vector<4x1xf32>
    %311 = arith.addf %309, %310 : vector<4x1xf32>
    %cst_121 = arith.constant 3.125000e-02 : f32
    %312 = vector.broadcast %cst_121 : f32 to vector<4x1xf32>
    %313 = arith.mulf %311, %312 : vector<4x1xf32>
    %314 = tpu.concatenate %313, %313 in 0 : vector<4x1xf32>, vector<4x1xf32> -> vector<8x1xf32>
    %cst_122 = arith.constant 9.99999974E-6 : f32
    %315 = vector.broadcast %cst_122 : f32 to vector<8x1xf32>
    %316 = arith.addf %314, %315 : vector<8x1xf32>
    %317 = math.sqrt %316 : vector<8x1xf32>
    %318 = vector.broadcast %317 : vector<8x1xf32> to vector<8x16xf32>
    %319 = arith.divf %305, %318 : vector<8x16xf32>
    %c0_123 = arith.constant 0 : index
    %c0_124 = arith.constant 0 : index
    %320 = vector.load %arg3[%c0_123, %c0_124] : memref<16x16xf32, #tpu.memory_space<vmem>>, vector<16x16xf32>
    %c0_125 = arith.constant 0 : index
    %c0_126 = arith.constant 0 : index
    %321 = vector.load %arg4[%c0_125, %c0_126] : memref<1x16xf32, #tpu.memory_space<vmem>>, vector<1x16xf32>
    %322 = vector.extract_strided_slice %319 {offsets = [0, 0], sizes = [4, 16], strides = [1, 1]} : vector<8x16xf32> to vector<4x16xf32>
    %cst_127 = arith.constant dense<0.000000e+00> : vector<4x16xf32>
    %323 = tpu.matmul %268, %322, %cst_127 {dimension_numbers = #tpu.dot_dimension_numbers<[1], [0], [0], [1], [0, 0, 1, 1], [], []>} : vector<4x4xf32>, vector<4x16xf32>, vector<4x16xf32> -> vector<4x16xf32>
    %324 = vector.extract_strided_slice %319 {offsets = [4, 0], sizes = [4, 16], strides = [1, 1]} : vector<8x16xf32> to vector<4x16xf32>
    %cst_128 = arith.constant dense<0.000000e+00> : vector<4x16xf32>
    %325 = tpu.matmul %274, %324, %cst_128 {dimension_numbers = #tpu.dot_dimension_numbers<[1], [0], [0], [1], [0, 0, 1, 1], [], []>} : vector<4x4xf32>, vector<4x16xf32>, vector<4x16xf32> -> vector<4x16xf32>
    %326 = tpu.concatenate %323, %325 in 0 : vector<4x16xf32>, vector<4x16xf32> -> vector<8x16xf32>
    %cst_129 = arith.constant dense<0.000000e+00> : vector<8x16xf32>
    %327 = tpu.matmul %326, %320, %cst_129 {dimension_numbers = #tpu.dot_dimension_numbers<[1], [0], [0], [1], [0, 0, 1, 1], [], []>} : vector<8x16xf32>, vector<16x16xf32>, vector<8x16xf32> -> vector<8x16xf32>
    %328 = vector.broadcast %321 : vector<1x16xf32> to vector<8x16xf32>
    %329 = arith.addf %327, %328 : vector<8x16xf32>
    %330 = arith.mulf %329, %329 : vector<8x16xf32>
    %cst_130 = arith.constant dense<0.000000e+00> : vector<8xf32>
    %331 = vector.multi_reduction <add>, %330, %cst_130 [1] : vector<8x16xf32> to vector<8xf32>
    %332 = vector.shape_cast %331 : vector<8xf32> to vector<8x1xf32>
    %333 = math.sqrt %332 : vector<8x1xf32>
    %cst_131 = arith.constant 9.99999996E-13 : f32
    %334 = vector.broadcast %cst_131 : f32 to vector<8x1xf32>
    %335 = arith.maximumf %333, %334 : vector<8x1xf32>
    %336 = vector.broadcast %335 : vector<8x1xf32> to vector<8x16xf32>
    %337 = arith.divf %329, %336 : vector<8x16xf32>
    %cst_132 = arith.constant 0.000000e+00 : f32
    %338 = vector.broadcast %cst_132 : f32 to vector<8x16xf32>
    %339 = arith.maximumf %337, %338 : vector<8x16xf32>
    %cst_133 = arith.constant dense<0.000000e+00> : vector<8xf32>
    %340 = vector.multi_reduction <add>, %339, %cst_133 [1] : vector<8x16xf32> to vector<8xf32>
    %341 = vector.shape_cast %340 : vector<8xf32> to vector<8x1xf32>
    %342 = vector.extract_strided_slice %341 {offsets = [0, 0], sizes = [4, 1], strides = [1, 1]} : vector<8x1xf32> to vector<4x1xf32>
    %343 = vector.extract_strided_slice %341 {offsets = [4, 0], sizes = [4, 1], strides = [1, 1]} : vector<8x1xf32> to vector<4x1xf32>
    %344 = arith.addf %342, %343 : vector<4x1xf32>
    %cst_134 = arith.constant 3.125000e-02 : f32
    %345 = vector.broadcast %cst_134 : f32 to vector<4x1xf32>
    %346 = arith.mulf %344, %345 : vector<4x1xf32>
    %347 = tpu.concatenate %346, %346 in 0 : vector<4x1xf32>, vector<4x1xf32> -> vector<8x1xf32>
    %348 = vector.broadcast %347 : vector<8x1xf32> to vector<8x16xf32>
    %349 = arith.subf %339, %348 : vector<8x16xf32>
    %350 = arith.mulf %349, %349 : vector<8x16xf32>
    %cst_135 = arith.constant dense<0.000000e+00> : vector<8xf32>
    %351 = vector.multi_reduction <add>, %350, %cst_135 [1] : vector<8x16xf32> to vector<8xf32>
    %352 = vector.shape_cast %351 : vector<8xf32> to vector<8x1xf32>
    %353 = vector.extract_strided_slice %352 {offsets = [0, 0], sizes = [4, 1], strides = [1, 1]} : vector<8x1xf32> to vector<4x1xf32>
    %354 = vector.extract_strided_slice %352 {offsets = [4, 0], sizes = [4, 1], strides = [1, 1]} : vector<8x1xf32> to vector<4x1xf32>
    %355 = arith.addf %353, %354 : vector<4x1xf32>
    %cst_136 = arith.constant 3.125000e-02 : f32
    %356 = vector.broadcast %cst_136 : f32 to vector<4x1xf32>
    %357 = arith.mulf %355, %356 : vector<4x1xf32>
    %358 = tpu.concatenate %357, %357 in 0 : vector<4x1xf32>, vector<4x1xf32> -> vector<8x1xf32>
    %cst_137 = arith.constant 9.99999974E-6 : f32
    %359 = vector.broadcast %cst_137 : f32 to vector<8x1xf32>
    %360 = arith.addf %358, %359 : vector<8x1xf32>
    %361 = math.sqrt %360 : vector<8x1xf32>
    %362 = vector.broadcast %361 : vector<8x1xf32> to vector<8x16xf32>
    %363 = arith.divf %349, %362 : vector<8x16xf32>
    %c0_138 = arith.constant 0 : index
    %c0_139 = arith.constant 0 : index
    %364 = vector.load %arg7[%c0_138, %c0_139] : memref<16x16xf32, #tpu.memory_space<vmem>>, vector<16x16xf32>
    %c0_140 = arith.constant 0 : index
    %c0_141 = arith.constant 0 : index
    %365 = vector.load %arg8[%c0_140, %c0_141] : memref<1x16xf32, #tpu.memory_space<vmem>>, vector<1x16xf32>
    %366 = vector.extract_strided_slice %363 {offsets = [0, 0], sizes = [4, 16], strides = [1, 1]} : vector<8x16xf32> to vector<4x16xf32>
    %cst_142 = arith.constant dense<0.000000e+00> : vector<4x16xf32>
    %367 = tpu.matmul %268, %366, %cst_142 {dimension_numbers = #tpu.dot_dimension_numbers<[1], [0], [0], [1], [0, 0, 1, 1], [], []>} : vector<4x4xf32>, vector<4x16xf32>, vector<4x16xf32> -> vector<4x16xf32>
    %368 = vector.extract_strided_slice %363 {offsets = [4, 0], sizes = [4, 16], strides = [1, 1]} : vector<8x16xf32> to vector<4x16xf32>
    %cst_143 = arith.constant dense<0.000000e+00> : vector<4x16xf32>
    %369 = tpu.matmul %274, %368, %cst_143 {dimension_numbers = #tpu.dot_dimension_numbers<[1], [0], [0], [1], [0, 0, 1, 1], [], []>} : vector<4x4xf32>, vector<4x16xf32>, vector<4x16xf32> -> vector<4x16xf32>
    %370 = tpu.concatenate %367, %369 in 0 : vector<4x16xf32>, vector<4x16xf32> -> vector<8x16xf32>
    %cst_144 = arith.constant dense<0.000000e+00> : vector<8x16xf32>
    %371 = tpu.matmul %370, %364, %cst_144 {dimension_numbers = #tpu.dot_dimension_numbers<[1], [0], [0], [1], [0, 0, 1, 1], [], []>} : vector<8x16xf32>, vector<16x16xf32>, vector<8x16xf32> -> vector<8x16xf32>
    %372 = vector.broadcast %365 : vector<1x16xf32> to vector<8x16xf32>
    %373 = arith.addf %371, %372 : vector<8x16xf32>
    %374 = arith.mulf %373, %373 : vector<8x16xf32>
    %cst_145 = arith.constant dense<0.000000e+00> : vector<8xf32>
    %375 = vector.multi_reduction <add>, %374, %cst_145 [1] : vector<8x16xf32> to vector<8xf32>
    %376 = vector.shape_cast %375 : vector<8xf32> to vector<8x1xf32>
    %377 = math.sqrt %376 : vector<8x1xf32>
    %cst_146 = arith.constant 9.99999996E-13 : f32
    %378 = vector.broadcast %cst_146 : f32 to vector<8x1xf32>
    %379 = arith.maximumf %377, %378 : vector<8x1xf32>
    %380 = vector.broadcast %379 : vector<8x1xf32> to vector<8x16xf32>
    %381 = arith.divf %373, %380 : vector<8x16xf32>
    %382 = tpu.concatenate %319, %363, %381 in 1 : vector<8x16xf32>, vector<8x16xf32>, vector<8x16xf32> -> vector<8x48xf32>
    %383 = vector.extract_strided_slice %382 {offsets = [0, 0], sizes = [4, 48], strides = [1, 1]} : vector<8x48xf32> to vector<4x48xf32>
    %cst_147 = arith.constant dense<0xFF800000> : vector<48xf32>
    %384 = vector.multi_reduction <maximumf>, %383, %cst_147 [0] : vector<4x48xf32> to vector<48xf32>
    %385 = vector.shape_cast %384 : vector<48xf32> to vector<1x48xf32>
    %386 = vector.extract_strided_slice %382 {offsets = [4, 0], sizes = [4, 48], strides = [1, 1]} : vector<8x48xf32> to vector<4x48xf32>
    %cst_148 = arith.constant dense<0xFF800000> : vector<48xf32>
    %387 = vector.multi_reduction <maximumf>, %386, %cst_148 [0] : vector<4x48xf32> to vector<48xf32>
    %388 = vector.shape_cast %387 : vector<48xf32> to vector<1x48xf32>
    %389 = tpu.concatenate %385, %388 in 0 : vector<1x48xf32>, vector<1x48xf32> -> vector<2x48xf32>
    %390 = tpu.concatenate %133, %389 in 1 : vector<2x48xf32>, vector<2x48xf32> -> vector<2x96xf32>
    %c0_149 = arith.constant 0 : index
    %c0_150 = arith.constant 0 : index
    %391 = vector.load %arg25[%c0_149, %c0_150] : memref<96x50xf32, #tpu.memory_space<vmem>>, vector<96x50xf32>
    %c0_151 = arith.constant 0 : index
    %c0_152 = arith.constant 0 : index
    %392 = vector.load %arg23[%c0_151, %c0_152] : memref<1x50xf32, #tpu.memory_space<vmem>>, vector<1x50xf32>
    %c0_153 = arith.constant 0 : index
    %c0_154 = arith.constant 0 : index
    %393 = vector.load %arg26[%c0_153, %c0_154] : memref<50x4xf32, #tpu.memory_space<vmem>>, vector<50x4xf32>
    %c0_155 = arith.constant 0 : index
    %c0_156 = arith.constant 0 : index
    %394 = vector.load %arg24[%c0_155, %c0_156] : memref<1x4xf32, #tpu.memory_space<vmem>>, vector<1x4xf32>
    %cst_157 = arith.constant dense<0.000000e+00> : vector<2x50xf32>
    %395 = tpu.matmul %390, %391, %cst_157 {dimension_numbers = #tpu.dot_dimension_numbers<[1], [0], [0], [1], [0, 0, 1, 1], [], []>} : vector<2x96xf32>, vector<96x50xf32>, vector<2x50xf32> -> vector<2x50xf32>
    %396 = vector.broadcast %392 : vector<1x50xf32> to vector<2x50xf32>
    %397 = arith.addf %395, %396 : vector<2x50xf32>
    %cst_158 = arith.constant 0.000000e+00 : f32
    %398 = vector.broadcast %cst_158 : f32 to vector<2x50xf32>
    %399 = arith.maximumf %397, %398 : vector<2x50xf32>
    %cst_159 = arith.constant dense<0.000000e+00> : vector<2x4xf32>
    %400 = tpu.matmul %399, %393, %cst_159 {dimension_numbers = #tpu.dot_dimension_numbers<[1], [0], [0], [1], [0, 0, 1, 1], [], []>} : vector<2x50xf32>, vector<50x4xf32>, vector<2x4xf32> -> vector<2x4xf32>
    %401 = vector.broadcast %394 : vector<1x4xf32> to vector<2x4xf32>
    %402 = arith.addf %400, %401 : vector<2x4xf32>
    %c0_160 = arith.constant 0 : index
    %c0_161 = arith.constant 0 : index
    %403 = vector.load %arg27[%c0_160, %c0_161] : memref<2x4xf32, #tpu.memory_space<vmem>>, vector<2x4xf32>
    tpu.vector_store %arg27[%c0_160, %c0_161], %402 {strides = array<i32>} : memref<2x4xf32, #tpu.memory_space<vmem>>, vector<2x4xf32>,
    return
  }
}

</mosaic_0001>

<bundles_post_ra>
// kernel: _lambda_.1
= control target key start
LH: loop header
LB: loop body
LE: loop exit
PB: predicated region body
PF: predicated region fallthrough
CT: control target
= control target key end

     0   :  { %s5834_s0 = inlined_call_operand.vmem [shape: f32[2,16,8], index: 0, kind: input, shape index: {}]   ;;  %s5835_s1 = inlined_call_operand.vmem [shape: f32[2,16,16], index: 1, kind: input, shape index: {}]   ;;  %s5836_s2 = inlined_call_operand.vmem [shape: f32[2,16,1], index: 2, kind: input, shape index: {}]   ;;  %s5837_s3 = inlined_call_operand.vmem [shape: f32[16,16], index: 3, kind: input, shape index: {}]   ;;  %s5838_s4 = inlined_call_operand.vmem [shape: f32[1,16], index: 4, kind: input, shape index: {}]   ;;  %s5839_s5 = inlined_call_operand.vmem [shape: f32[48,16], index: 5, kind: input, shape index: {}]   ;;  %s5840_s6 = inlined_call_operand.vmem [shape: f32[1,16], index: 6, kind: input, shape index: {}]   ;;  %s5841_s7 = inlined_call_operand.vmem [shape: f32[16,16], index: 7, kind: input, shape index: {}]   ;;  %s5842_s8 = inlined_call_operand.vmem [shape: f32[1,16], index: 8, kind: input, shape index: {}]   ;;  %s5843_s9 = inlined_call_operand.vmem [shape: f32[16,16], index: 9, kind: input, shape index: {}]   ;;  %s5844_s10 = inlined_call_operand.vmem [shape: f32[1,16], index: 10, kind: input, shape index: {}]   ;;  %s5845_s11 = inlined_call_operand.vmem [shape: f32[8,16], index: 11, kind: input, shape index: {}]   ;;  %s5846_s12 = inlined_call_operand.vmem [shape: f32[1,16], index: 12, kind: input, shape index: {}]   ;;  %s5847_s13 = inlined_call_operand.vmem [shape: f32[16,4], index: 13, kind: input, shape index: {}]   ;;  %s5848_s14 = inlined_call_operand.vmem [shape: f32[1,4], index: 14, kind: input, shape index: {}]   ;;  %s5849_s15 = inlined_call_operand.vmem [shape: f32[36,4], index: 15, kind: input, shape index: {}]   ;;  %s5850_s16 = inlined_call_operand.vmem [shape: f32[1,4], index: 16, kind: input, shape index: {}]   ;;  %s5851_s17 = inlined_call_operand.vmem [shape: f32[16,16], index: 17, kind: input, shape index: {}]   ;;  %s5852_s18 = inlined_call_operand.vmem [shape: f32[1,16], index: 18, kind: input, shape index: {}]   ;;  %s5853_s19 = inlined_call_operand.vmem [shape: f32[8,16], index: 19, kind: input, shape index: {}]   ;;  %s5854_s20 = inlined_call_operand.vmem [shape: f32[1,16], index: 20, kind: input, shape index: {}]   ;;  %s5855_s21 = inlined_call_operand.vmem [shape: f32[16,16], index: 21, kind: input, shape index: {}]   ;;  %s5856_s22 = inlined_call_operand.vmem [shape: f32[1,16], index: 22, kind: input, shape index: {}]   ;;  %s5857_s23 = inlined_call_operand.vmem [shape: f32[1,50], index: 23, kind: input, shape index: {}]   ;;  %s5858_s24 = inlined_call_operand.vmem [shape: f32[1,4], index: 24, kind: input, shape index: {}]   ;;  %s5859_s25 = inlined_call_operand.vmem [shape: f32[96,50], index: 25, kind: input, shape index: {}]   ;;  %s5860_s26 = inlined_call_operand.vmem [shape: f32[50,4], index: 26, kind: input, shape index: {}]   ;;  %s5861_s27 = inlined_call_operand.hbm [shape: f32[2,4], index: 27, kind: output, shape index: {}]  }
   0x1   :  { %5869 = sst [smem:[#allocation5_spill]] %s5834_s0 }
   0x2   :  { %5870 = sst [smem:[#allocation6_spill]] %s5835_s1 }
   0x3   :  { %5871 = sst [smem:[#allocation7_spill]] %s5836_s2 }
   0x4   :  { %5872 = sst [smem:[#allocation8_spill]] %s5837_s3 }
   0x5   :  { %5873 = sst [smem:[#allocation9_spill]] %s5838_s4 }
   0x6   :  { %5874 = sst [smem:[#allocation10_spill]] %s5839_s5 }
   0x7   :  { %5875 = sst [smem:[#allocation11_spill]] %s5840_s6 }
   0x8   :  { %5876 = sst [smem:[#allocation12_spill]] %s5841_s7 }
   0x9   :  { %5877 = sst [smem:[#allocation13_spill]] %s5842_s8 }
   0xa   :  { %5878 = sst [smem:[#allocation14_spill]] %s5843_s9 }
   0xb   :  { %5879 = sst [smem:[#allocation15_spill]] %s5844_s10 }
   0xc   :  { %5880 = sst [smem:[#allocation16_spill]] %s5845_s11 }
   0xd   :  { %s5881_s8 = sld [smem:[#allocation5_spill]]  ;;  %s5882_s0 = sld [smem:[#allocation6_spill]]  ;;  %vm104_vm0 = vcmask 130048  }
  0x13   :  { %v92_v0 = vld [vmem:[%s5881_s8] sm:$0xff]  ;;  %v93_v1 = vld [vmem:[%s5881_s8 + $0x8] sm:$0xff]  ;;  %v4054_v4 = vld [vmem:[%s5881_s8 + $0x10] sm:$0xff] }
  0x14   :  { %v5061_v2 = vld [vmem:[%s5882_s0] sm:$0xff]  ;;  %v4577_v3 = vpack.c.bf16 %v93_v1, %v92_v0  ;;  %v4055_v5 = vld [vmem:[%s5881_s8 + $0x18] sm:$0xff] }
  0x15   :  { %4294 = vmatprep.mubr.msk.f32.mxu1 %vm104_vm0, %v5061_v2  ;;  %v4581_v6 = vpack.c.bf16 %v4055_v5, %v4054_v4 }
  0x16   :  { %32 = vsyncpa [#allocation3], 0  ;;  %4578 = vmatprep.subr.bf16.mxu1 %v4577_v3  ;;  %v5074_v7 = vld [vmem:[%s5882_s0 + $0x8] sm:$0xff]  ;;  %v5079_v8 = vld [vmem:[%s5882_s0 + $0x10] sm:$0xff]  ;;  %vm273_vm1 = vcmask 64512   ;;  %s5883_s7 = sld [smem:[#allocation16_spill]] }
  0x17   :  { %4580 = vmatpush3.bf16.msra.mxu1 %v4577_v3  ;;  %v5088_v9 = vld [vmem:[%s5882_s0 + $0x18] sm:$0xff]  ;;  %v102_v10 = vld [vmem:[%s5853_s19] sm:$0xff]  ;;  %s5884_s19 = sld [smem:[#allocation14_spill]]  ;;  %s5885_s2 = sld [smem:[#allocation15_spill]] }
  0x18   :  { %4582 = vmatprep.subr.bf16.mxu1 %v4581_v6  ;;  %4304 = vmatprep.subr.mxu0 %v102_v10  ;;  %v4062_v15 = vld [vmem:[%s5854_s20] ss:$0 sm:$0xff]  ;;  %s4905_s11 = smov 16   ;;  %s4906_s3 = smov 32  }
  0x19   :  { %4305 = vmatpush3.msra.mxu0 %v102_v10  ;;  %s5887_s9 = sld [smem:[#allocation10_spill]]  ;;  %s5889_s4 = sld [smem:[#allocation8_spill]] }
  0x1a   :  { %4295 = vmatmul.mubr.msk.f32.vlgmr.msra.gmra.mrb[0].mxu1 %vm104_vm0, %v5074_v7  ;;  %s5890_s30 = sld [smem:[#allocation9_spill]]  ;;  %s5892_s20 = sld [smem:[#allocation13_spill]] }
  0x1b   :  { %4584 = vmatpush3.bf16.msra.mxu1 %v4581_v6  ;;  %4301 = vmatprep.mubr.msk.f32.mxu1 %vm104_vm0, %v5079_v8 }
  0x1e   :  { %4302 = vmatmul.mubr.msk.f32.vlgmr.msra.gmra.mrb[2].mxu1 %vm104_vm0, %v5088_v9 }
  0x1f   :  { %4316 = vmatprep.mubr.msk.f32.mxu1 %vm104_vm0, %v5061_v2 }
  0xed   :  { %v5097_v11 = vpop.f32.mrb[0].mxu1 }
  0xee   :  { %v5099_v12 = vpop.f32.mrb[1].mxu1 }
  0xef   :  { %4306 = vmatprep.mubr.msk.f32.mxu0 %vm273_vm1, %v5099_v12 }
  0xf0   :  { %4307 = vmatmul.mubr.msk.f32.vlgmr.msra.gmra.mrb[0].mxu0 %vm273_vm1, %v5097_v11 }
  0xf1   :  { %v5105_v13 = vpop.f32.mrb[2].mxu1 }
  0xf2   :  { %v5107_v14 = vpop.f32.mrb[3].mxu1 }
  0xf3   :  { %4309 = vmatprep.mubr.msk.f32.mxu0 %vm273_vm1, %v5107_v14 }
  0xf4   :  { %4310 = vmatmul.mubr.msk.f32.gmra.mrb[2].mxu0 %vm273_vm1, %v5105_v13 }
 0x1c3   :  { %v4308_v16 = vpop.f32.mrb[0].mxu0 }
 0x1c4   :  { %v352_v17 = vpop.f32.mrb[1].mxu0  ;;  %v5116_v18 = vadd.f32 %v4308_v16, %v4062_v15 }
 0x1c5   :  { %v353_v19 = vadd.f32 %v4062_v15, %v352_v17 }
 0x1c6   :  { %v372_v26 = vmul.f32 %v5116_v18, %v5116_v18 }
 0x1c7   :  { %v4311_v20 = vpop.f32.mrb[2].mxu0  ;;  %v371_v21 = vmul.f32 %v353_v19, %v353_v19 }
 0x1c8   :  { %v362_v22 = vpop.f32.mrb[3].mxu0  ;;  %v5118_v23 = vadd.f32 %v4311_v20, %v4062_v15  ;;  %v378_v28 = vsel %vm104_vm0, %v372_v26, 0.0 }
 0x1c9   :  { %v5120_v24 = vadd.f32 %v4062_v15, %v362_v22  ;;  %v375_v25 = vsel %vm104_vm0, %v371_v21, 0.0  ;;  %v4904_v21 = vmov 0  }
 0x1ca   :  { %376 = vadd.xlane.f32.xlu0 %v375_v25  ;;  %v374_v30 = vmul.f32 %v5118_v23, %v5118_v23  ;;  %4710 = vset.pattern.permute.xlu1 %v4904_v21 }
 0x1cb   :  { %v373_v27 = vmul.f32 %v5120_v24, %v5120_v24  ;;  %4709 = vset.pattern.permute.xlu0 %v4904_v21 }
 0x1cc   :  { %v384_v31 = vsel %vm104_vm0, %v374_v30, 0.0 }
 0x1cd   :  { %v381_v29 = vsel %vm104_vm0, %v373_v27, 0.0 }
 0x1ce   :  { %379 = vadd.xlane.f32.xlu0 %v378_v28  ;;  %382 = vadd.xlane.f32.xlu1 %v381_v29 }
 0x1d2   :  { %385 = vadd.xlane.f32.xlu1 %v384_v31 }
 0x257   :  { %v377_v32 = vpop.xlane.xlu0 %376 }
 0x258   :  { %4711 = vrsqrt.f32 %v377_v32  ;;  %vm389_vm2 = vcmp.eq.f32.partialorder %v377_v32, inf  ;;  %v392_v38 = vand.u32 2147483648, %v377_v32  ;;  %vm391_vm3 = vcmp.eq.f32.partialorder %v377_v32, 0.0 }
 0x25b   :  { %v380_v33 = vpop.xlane.xlu0 %379  ;;  %v383_v34 = vpop.xlane.xlu1 %382 }
 0x25c   :  { %4713 = vrsqrt.f32 %v380_v33  ;;  %vm396_vm4 = vcmp.eq.f32.partialorder %v380_v33, inf  ;;  %vm398_vm5 = vcmp.eq.f32.partialorder %v380_v33, 0.0  ;;  %v399_v45 = vand.u32 2147483648, %v380_v33 }
 0x25d   :  { %4715 = vrsqrt.f32 %v383_v34  ;;  %vm403_vm6 = vcmp.eq.f32.partialorder %v383_v34, inf  ;;  %v406_v48 = vand.u32 2147483648, %v383_v34  ;;  %vm405_vm7 = vcmp.eq.f32.partialorder %v383_v34, 0.0 }
 0x25f   :  { %v386_v35 = vpop.xlane.xlu1 %385 }
 0x260   :  { %4717 = vrsqrt.f32 %v386_v35  ;;  %vm410_vm8 = vcmp.eq.f32.partialorder %v386_v35, inf  ;;  %v413_v55 = vand.u32 2147483648, %v386_v35  ;;  %vm412_vm9 = vcmp.eq.f32.partialorder %v386_v35, 0.0 }
 0x262   :  { %v4712_v36 = vpop.eup %4711 }
 0x263   :  { %v388_v37 = vmul.f32 %v4712_v36, %v377_v32 }
 0x265   :  { %v390_v39 = vsel %vm389_vm2, %v377_v32, %v388_v37 }
 0x266   :  { %v4714_v40 = vpop.eup %4713  ;;  %v393_v41 = vsel %vm391_vm3, %v392_v38, %v390_v39 }
 0x267   :  { %v4716_v42 = vpop.eup %4715  ;;  %v395_v43 = vmul.f32 %v4714_v40, %v380_v33  ;;  %v415_v44 = vmax.f32 %v393_v41, 1e-12 }
 0x268   :  { %v402_v46 = vmul.f32 %v4716_v42, %v383_v34 }
 0x269   :  { %v397_v47 = vsel %vm396_vm4, %v380_v33, %v395_v43  ;;  %4719 = vrcp.f32 %v415_v44 }
 0x26a   :  { %v4718_v49 = vpop.eup %4717  ;;  %v404_v50 = vsel %vm403_vm6, %v383_v34, %v402_v46  ;;  %v400_v51 = vsel %vm398_vm5, %v399_v45, %v397_v47 }
 0x26b   :  { %v409_v52 = vmul.f32 %v4718_v49, %v386_v35  ;;  %v416_v53 = vmax.f32 %v400_v51, 1e-12  ;;  %v407_v54 = vsel %vm405_vm7, %v406_v48, %v404_v50 }
 0x26c   :  { %v417_v56 = vmax.f32 %v407_v54, 1e-12 }
 0x26d   :  { %v411_v57 = vsel %vm410_vm8, %v386_v35, %v409_v52  ;;  %4721 = vrcp.f32 %v416_v53 }
 0x26e   :  { %4723 = vrcp.f32 %v417_v56  ;;  %v414_v58 = vsel %vm412_vm9, %v413_v55, %v411_v57 }
 0x26f   :  { %v418_v59 = vmax.f32 %v414_v58, 1e-12 }
 0x271   :  { %4725 = vrcp.f32 %v418_v59 }
 0x273   :  { %v4720_v60 = vpop.eup %4719 }
 0x274   :  { %v420_v61 = vmul.f32 %v4720_v60, %v353_v19 }
 0x276   :  { %v427_v62 = vmax.f32 %v420_v61, 0.0 }
 0x277   :  { %v4722_v63 = vpop.eup %4721 }
 0x278   :  { %v4724_v0 = vpop.eup %4723  ;;  %v431_v1 = vsel %vm104_vm0, %v427_v62, 0.0  ;;  %v422_v3 = vmul.f32 %v4722_v63, %v5116_v18  ;;  %v537_v63 = vld [vmem:[%s5851_s17] sm:$0xff] }
 0x279   :  { %432 = vadd.xlane.f32.xlu0 %v431_v1  ;;  %v424_v4 = vmul.f32 %v4724_v0, %v5120_v24  ;;  %v538_v0 = vld [vmem:[%s5851_s17 + $0x8] sm:$0xff] }
 0x27a   :  { %v428_v5 = vmax.f32 %v422_v3, 0.0  ;;  %v4593_v1 = vpack.c.bf16 %v538_v0, %v537_v63 }
 0x27b   :  { %v4726_v6 = vpop.eup %4725  ;;  %v429_v10 = vmax.f32 %v424_v4, 0.0 }
 0x27c   :  { %v434_v15 = vsel %vm104_vm0, %v428_v5, 0.0  ;;  %v426_v16 = vmul.f32 %v4726_v6, %v5118_v23  ;;  %4594 = vmatprep.subr.bf16.mxu0 %v4593_v1 }
 0x27d   :  { %435 = vadd.xlane.f32.xlu1 %v434_v15  ;;  %v437_v17 = vsel %vm104_vm0, %v429_v10, 0.0  ;;  %4596 = vmatpush3.bf16.msra.mxu0 %v4593_v1 }
 0x27e   :  { %438 = vadd.xlane.f32.xlu0 %v437_v17  ;;  %v430_v19 = vmax.f32 %v426_v16, 0.0 }
 0x280   :  { %v440_v20 = vsel %vm104_vm0, %v430_v19, 0.0 }
 0x281   :  { %441 = vadd.xlane.f32.xlu1 %v440_v20 }
 0x306   :  { %v433_v18 = vpop.xlane.xlu0 %432 }
 0x30a   :  { %v436_v22 = vpop.xlane.xlu1 %435 }
 0x30b   :  { %v439_v24 = vpop.xlane.xlu0 %438 }
 0x30c   :  { %v443_v25 = vadd.f32 %v439_v24, %v433_v18 }
 0x30e   :  { %v445_v26 = vmul.f32 0.03125, %v443_v25  ;;  %v442_v27 = vpop.xlane.xlu1 %441  ;;  %v4071_v25 = vld [vmem:[%s5852_s18] ss:$0 sm:$0xff]  ;;  %s4910_s18 = smov 48  }
 0x30f   :  { %v444_v28 = vadd.f32 %v442_v27, %v436_v22 }
 0x310   :  { %449 = vperm.xlu0 %4709, %v445_v26  }
 0x311   :  { %v446_v23 = vmul.f32 0.03125, %v444_v28 }
 0x313   :  { %454 = vperm.xlu1 %4710, %v446_v23  }
 0x38f   :  { %v450_v29 = vpop.permute.xlu0 %449 }
 0x390   :  { %v457_v30 = vsub.f32 %v427_v62, %v450_v29  ;;  %v459_v31 = vsub.f32 %v429_v10, %v450_v29 }
 0x392   :  { %v455_v32 = vpop.permute.xlu1 %454  ;;  %v461_v33 = vmul.f32 %v457_v30, %v457_v30  ;;  %v463_v37 = vmul.f32 %v459_v31, %v459_v31 }
 0x393   :  { %v458_v34 = vsub.f32 %v428_v5, %v455_v32  ;;  %v460_v35 = vsub.f32 %v430_v19, %v455_v32 }
 0x394   :  { %v465_v36 = vsel %vm104_vm0, %v461_v33, 0.0  ;;  %v471_v40 = vsel %vm104_vm0, %v463_v37, 0.0 }
 0x395   :  { %466 = vadd.xlane.f32.xlu1 %v465_v36  ;;  %v462_v38 = vmul.f32 %v458_v34, %v458_v34  ;;  %v464_v41 = vmul.f32 %v460_v35, %v460_v35 }
 0x397   :  { %v468_v39 = vsel %vm104_vm0, %v462_v38, 0.0  ;;  %v474_v42 = vsel %vm104_vm0, %v464_v41, 0.0 }
 0x398   :  { %469 = vadd.xlane.f32.xlu0 %v468_v39 }
 0x399   :  { %472 = vadd.xlane.f32.xlu1 %v471_v40 }
 0x39d   :  { %475 = vadd.xlane.f32.xlu1 %v474_v42 }
 0x422   :  { %v467_v43 = vpop.xlane.xlu1 %466 }
 0x425   :  { %v470_v47 = vpop.xlane.xlu0 %469 }
 0x426   :  { %v473_v44 = vpop.xlane.xlu1 %472 }
 0x427   :  { %v477_v45 = vadd.f32 %v473_v44, %v467_v43 }
 0x429   :  { %v479_v46 = vmul.f32 0.03125, %v477_v45 }
 0x42a   :  { %v476_v48 = vpop.xlane.xlu1 %475 }
 0x42b   :  { %v481_v49 = vadd.f32 1e-05, %v479_v46  ;;  %v478_v50 = vadd.f32 %v476_v48, %v470_v47 }
 0x42d   :  { %v480_v51 = vmul.f32 0.03125, %v478_v50  ;;  %4727 = vrsqrt.f32 %v481_v49  ;;  %vm485_vm10 = vcmp.eq.f32.partialorder %v481_v49, inf  ;;  %v488_v55 = vand.u32 2147483648, %v481_v49 }
 0x42e   :  { %vm487_vm11 = vcmp.eq.f32.partialorder %v481_v49, 0.0 }
 0x42f   :  { %v482_v52 = vadd.f32 1e-05, %v480_v51 }
 0x431   :  { %4729 = vrsqrt.f32 %v482_v52  ;;  %vm492_vm12 = vcmp.eq.f32.partialorder %v482_v52, inf  ;;  %v495_v60 = vand.u32 2147483648, %v482_v52  ;;  %vm494_vm13 = vcmp.eq.f32.partialorder %v482_v52, 0.0 }
 0x437   :  { %v4728_v53 = vpop.eup %4727 }
 0x438   :  { %v484_v54 = vmul.f32 %v4728_v53, %v481_v49 }
 0x43a   :  { %v486_v56 = vsel %vm485_vm10, %v481_v49, %v484_v54 }
 0x43b   :  { %v4730_v57 = vpop.eup %4729  ;;  %v489_v58 = vsel %vm487_vm11, %v488_v55, %v486_v56 }
 0x43c   :  { %499 = vperm.xlu1 %4710, %v489_v58   ;;  %v491_v59 = vmul.f32 %v4730_v57, %v482_v52 }
 0x43e   :  { %v493_v61 = vsel %vm492_vm12, %v482_v52, %v491_v59 }
 0x43f   :  { %v496_v62 = vsel %vm494_vm13, %v495_v60, %v493_v61 }
 0x440   :  { %504 = vperm.xlu0 %4709, %v496_v62  }
 0x4bb   :  { %v500_v3 = vpop.permute.xlu1 %499 }
 0x4bc   :  { %4731 = vrcp.f32 %v500_v3 }
 0x4bf   :  { %v505_v4 = vpop.permute.xlu0 %504 }
 0x4c0   :  { %4733 = vrcp.f32 %v505_v4 }
 0x4c6   :  { %v4732_v5 = vpop.eup %4731 }
 0x4c7   :  { %v5149_v10 = vmul.f32 %v4732_v5, %v457_v30  ;;  %v5157_v19 = vmul.f32 %v4732_v5, %v459_v31 }
 0x4ca   :  { %v4734_v6 = vpop.eup %4733 }
 0x4cb   :  { %v5151_v15 = vmul.f32 %v4734_v6, %v458_v34  ;;  %v5153_v16 = vmul.f32 %v4734_v6, %v460_v35 }
 0x4cd   :  { %v4585_v17 = vpack.c.bf16 %v5151_v15, %v5149_v10  ;;  %v4589_v20 = vpack.c.bf16 %v5153_v16, %v5157_v19 }
 0x4cf   :  { %4586 = vmatprep.subr.bf16.mxu1 %v4585_v17 }
 0x4d0   :  { %4588 = vmatpush3.bf16.msra.mxu1 %v4585_v17 }
 0x4d1   :  { %4590 = vmatprep.subr.bf16.mxu1 %v4589_v20 }
 0x4d3   :  { %4317 = vmatmul.mubr.msk.f32.vlgmr.msra.gmra.mrb[4].mxu1 %vm104_vm0, %v5074_v7 }
 0x4d4   :  { %4592 = vmatpush3.bf16.msra.mxu1 %v4589_v20  ;;  %4323 = vmatprep.mubr.msk.f32.mxu1 %vm104_vm0, %v5079_v8 }
 0x4d7   :  { %4324 = vmatmul.mubr.msk.f32.vlgmr.msra.gmra.mrb[6].mxu1 %vm104_vm0, %v5088_v9 }
 0x4d8   :  { %4340 = vmatprep.mubr.msk.f32.mxu1 %vm104_vm0, %v5061_v2 }
 0x5a6   :  { %v4318_v21 = vpop.f32.mrb[4].mxu1 }
 0x5a7   :  { %v606_v18 = vpop.f32.mrb[5].mxu1 }
 0x5a8   :  { %4330 = vmatprep.mubr.msk.f32.mxu0 %vm104_vm0, %v606_v18 }
 0x5a9   :  { %4331 = vmatmul.mubr.msk.f32.vlgmr.msra.gmra.mrb[4].mxu0 %vm104_vm0, %v4318_v21 }
 0x5aa   :  { %v4325_v22 = vpop.f32.mrb[6].mxu1 }
 0x5ab   :  { %v681_v24 = vpop.f32.mrb[7].mxu1 }
 0x5ac   :  { %4333 = vmatprep.mubr.msk.f32.mxu0 %vm104_vm0, %v681_v24 }
 0x5ad   :  { %4334 = vmatmul.mubr.msk.f32.gmra.mrb[6].mxu0 %vm104_vm0, %v4325_v22 }
 0x67c   :  { %v4332_v26 = vpop.f32.mrb[4].mxu0 }
 0x67d   :  { %v5176_v27 = vadd.f32 %v4332_v26, %v4071_v25  ;;  %v774_v28 = vpop.f32.mrb[5].mxu0 }
 0x67e   :  { %v5178_v23 = vadd.f32 %v4071_v25, %v774_v28 }
 0x67f   :  { %v794_v29 = vmul.f32 %v5176_v27, %v5176_v27 }
 0x680   :  { %v4335_v30 = vpop.f32.mrb[6].mxu0  ;;  %v793_v31 = vmul.f32 %v5178_v23, %v5178_v23 }
 0x681   :  { %v784_v32 = vpop.f32.mrb[7].mxu0  ;;  %v800_v33 = vsel %vm104_vm0, %v794_v29, 0.0  ;;  %v5185_v34 = vadd.f32 %v4335_v30, %v4071_v25 }
 0x682   :  { %v5187_v35 = vadd.f32 %v4071_v25, %v784_v32  ;;  %801 = vadd.xlane.f32.xlu0 %v800_v33  ;;  %v797_v36 = vsel %vm104_vm0, %v793_v31, 0.0 }
 0x683   :  { %798 = vadd.xlane.f32.xlu1 %v797_v36  ;;  %v796_v39 = vmul.f32 %v5185_v34, %v5185_v34 }
 0x684   :  { %v795_v37 = vmul.f32 %v5187_v35, %v5187_v35 }
 0x685   :  { %v806_v40 = vsel %vm104_vm0, %v796_v39, 0.0 }
 0x686   :  { %v803_v38 = vsel %vm104_vm0, %v795_v37, 0.0 }
 0x687   :  { %804 = vadd.xlane.f32.xlu1 %v803_v38 }
 0x68b   :  { %807 = vadd.xlane.f32.xlu1 %v806_v40 }
 0x70f   :  { %v802_v41 = vpop.xlane.xlu0 %801 }
 0x710   :  { %4735 = vrsqrt.f32 %v802_v41  ;;  %v799_v42 = vpop.xlane.xlu1 %798  ;;  %vm818_vm14 = vcmp.eq.f32.partialorder %v802_v41, inf  ;;  %v821_v48 = vand.u32 2147483648, %v802_v41  ;;  %vm820_vm15 = vcmp.eq.f32.partialorder %v802_v41, 0.0 }
 0x711   :  { %4737 = vrsqrt.f32 %v799_v42  ;;  %vm811_vm2 = vcmp.eq.f32.partialorder %v799_v42, inf  ;;  %v814_v51 = vand.u32 2147483648, %v799_v42  ;;  %vm813_vm3 = vcmp.eq.f32.partialorder %v799_v42, 0.0 }
 0x714   :  { %v805_v43 = vpop.xlane.xlu1 %804 }
 0x715   :  { %4739 = vrsqrt.f32 %v805_v43  ;;  %vm825_vm4 = vcmp.eq.f32.partialorder %v805_v43, inf  ;;  %v828_v59 = vand.u32 2147483648, %v805_v43  ;;  %vm827_vm5 = vcmp.eq.f32.partialorder %v805_v43, 0.0 }
 0x718   :  { %v808_v44 = vpop.xlane.xlu1 %807 }
 0x719   :  { %4741 = vrsqrt.f32 %v808_v44  ;;  %vm832_vm6 = vcmp.eq.f32.partialorder %v808_v44, inf  ;;  %v835_v1 = vand.u32 2147483648, %v808_v44  ;;  %vm834_vm7 = vcmp.eq.f32.partialorder %v808_v44, 0.0 }
 0x71a   :  { %v4736_v45 = vpop.eup %4735 }
 0x71b   :  { %v4738_v46 = vpop.eup %4737  ;;  %v817_v47 = vmul.f32 %v4736_v45, %v802_v41 }
 0x71c   :  { %v810_v49 = vmul.f32 %v4738_v46, %v799_v42 }
 0x71d   :  { %v819_v50 = vsel %vm818_vm14, %v802_v41, %v817_v47 }
 0x71e   :  { %v822_v52 = vsel %vm820_vm15, %v821_v48, %v819_v50  ;;  %v812_v53 = vsel %vm811_vm2, %v799_v42, %v810_v49 }
 0x71f   :  { %v4740_v54 = vpop.eup %4739  ;;  %v838_v55 = vmax.f32 %v822_v52, 1e-12  ;;  %v815_v56 = vsel %vm813_vm3, %v814_v51, %v812_v53 }
 0x720   :  { %v824_v57 = vmul.f32 %v4740_v54, %v805_v43  ;;  %v837_v58 = vmax.f32 %v815_v56, 1e-12 }
 0x721   :  { %4743 = vrcp.f32 %v838_v55 }
 0x722   :  { %v826_v60 = vsel %vm825_vm4, %v805_v43, %v824_v57  ;;  %4745 = vrcp.f32 %v837_v58 }
 0x723   :  { %v4742_v61 = vpop.eup %4741  ;;  %v829_v62 = vsel %vm827_vm5, %v828_v59, %v826_v60 }
 0x724   :  { %v831_v63 = vmul.f32 %v4742_v61, %v808_v44  ;;  %v839_v0 = vmax.f32 %v829_v62, 1e-12 }
 0x726   :  { %v833_v3 = vsel %vm832_vm6, %v808_v44, %v831_v63  ;;  %4747 = vrcp.f32 %v839_v0 }
 0x727   :  { %v836_v4 = vsel %vm834_vm7, %v835_v1, %v833_v3 }
 0x728   :  { %v840_v5 = vmax.f32 %v836_v4, 1e-12 }
 0x72a   :  { %4749 = vrcp.f32 %v840_v5 }
 0x72b   :  { %v4744_v6 = vpop.eup %4743 }
 0x72c   :  { %v4746_v17 = vpop.eup %4745  ;;  %v844_v20 = vmul.f32 %v4744_v6, %v5176_v27 }
 0x72d   :  { %v842_v21 = vmul.f32 %v4746_v17, %v5178_v23 }
 0x72e   :  { %v850_v18 = vmax.f32 %v844_v20, 0.0 }
 0x72f   :  { %v849_v25 = vmax.f32 %v842_v21, 0.0 }
 0x730   :  { %v4748_v22 = vpop.eup %4747  ;;  %v856_v24 = vsel %vm104_vm0, %v850_v18, 0.0 }
 0x731   :  { %857 = vadd.xlane.f32.xlu1 %v856_v24  ;;  %v846_v26 = vmul.f32 %v4748_v22, %v5187_v35  ;;  %v853_v30 = vsel %vm104_vm0, %v849_v25, 0.0  ;;  %v939_v24 = vld [vmem:[%s5855_s21] sm:$0xff] }
 0x733   :  { %v851_v28 = vmax.f32 %v846_v26, 0.0 }
 0x734   :  { %v4750_v29 = vpop.eup %4749 }
 0x735   :  { %854 = vadd.xlane.f32.xlu1 %v853_v30  ;;  %v859_v31 = vsel %vm104_vm0, %v851_v28, 0.0  ;;  %v848_v32 = vmul.f32 %v4750_v29, %v5185_v34 }
 0x736   :  { %860 = vadd.xlane.f32.xlu0 %v859_v31 }
 0x737   :  { %v852_v27 = vmax.f32 %v848_v32, 0.0 }
 0x739   :  { %v862_v23 = vsel %vm104_vm0, %v852_v27, 0.0 }
 0x73a   :  { %863 = vadd.xlane.f32.xlu1 %v862_v23 }
 0x7be   :  { %v858_v33 = vpop.xlane.xlu1 %857 }
 0x7c2   :  { %v855_v36 = vpop.xlane.xlu1 %854 }
 0x7c3   :  { %v861_v37 = vpop.xlane.xlu0 %860 }
 0x7c4   :  { %v865_v38 = vadd.f32 %v861_v37, %v855_v36 }
 0x7c6   :  { %v867_v39 = vmul.f32 0.03125, %v865_v38  ;;  %v1317_v38 = vld [vmem:[%s5883_s7] sm:$0xff] }
 0x7c7   :  { %v864_v35 = vpop.xlane.xlu1 %863 }
 0x7c8   :  { %v866_v40 = vadd.f32 %v864_v35, %v858_v33  ;;  %871 = vperm.xlu0 %4709, %v867_v39  }
 0x7ca   :  { %v868_v41 = vmul.f32 0.03125, %v866_v40 }
 0x7cc   :  { %876 = vperm.xlu1 %4710, %v868_v41  }
 0x847   :  { %v872_v42 = vpop.permute.xlu0 %871 }
 0x848   :  { %v879_v43 = vsub.f32 %v849_v25, %v872_v42  ;;  %v881_v34 = vsub.f32 %v851_v28, %v872_v42  ;;  %v940_v25 = vld [vmem:[%s5855_s21 + $0x8] sm:$0xff]  ;;  %s5888_s21 = sld [smem:[#allocation11_spill]] }
 0x849   :  { %v4605_v26 = vpack.c.bf16 %v940_v25, %v939_v24 }
 0x84a   :  { %v883_v44 = vmul.f32 %v879_v43, %v879_v43  ;;  %v885_v53 = vmul.f32 %v881_v34, %v881_v34 }
 0x84b   :  { %v877_v45 = vpop.permute.xlu1 %876  ;;  %4606 = vmatprep.subr.bf16.mxu0 %v4605_v26 }
 0x84c   :  { %v880_v46 = vsub.f32 %v850_v18, %v877_v45  ;;  %v882_v47 = vsub.f32 %v852_v27, %v877_v45  ;;  %v887_v48 = vsel %vm104_vm0, %v883_v44, 0.0  ;;  %v893_v54 = vsel %vm104_vm0, %v885_v53, 0.0  ;;  %4608 = vmatpush3.bf16.msra.mxu0 %v4605_v26 }
 0x84d   :  { %888 = vadd.xlane.f32.xlu1 %v887_v48 }
 0x84e   :  { %v886_v49 = vmul.f32 %v882_v47, %v882_v47  ;;  %v884_v50 = vmul.f32 %v880_v46, %v880_v46 }
 0x850   :  { %v896_v51 = vsel %vm104_vm0, %v886_v49, 0.0  ;;  %v890_v52 = vsel %vm104_vm0, %v884_v50, 0.0 }
 0x851   :  { %897 = vadd.xlane.f32.xlu1 %v896_v51  ;;  %891 = vadd.xlane.f32.xlu0 %v890_v52 }
 0x855   :  { %894 = vadd.xlane.f32.xlu0 %v893_v54 }
 0x8da   :  { %v889_v55 = vpop.xlane.xlu1 %888 }
 0x8de   :  { %v892_v56 = vpop.xlane.xlu0 %891  ;;  %v898_v57 = vpop.xlane.xlu1 %897 }
 0x8df   :  { %v900_v58 = vadd.f32 %v898_v57, %v892_v56 }
 0x8e1   :  { %v902_v59 = vmul.f32 0.03125, %v900_v58 }
 0x8e2   :  { %v895_v60 = vpop.xlane.xlu0 %894 }
 0x8e3   :  { %v904_v61 = vadd.f32 1e-05, %v902_v59  ;;  %v899_v62 = vadd.f32 %v895_v60, %v889_v55 }
 0x8e5   :  { %v901_v63 = vmul.f32 0.03125, %v899_v62  ;;  %4751 = vrsqrt.f32 %v904_v61  ;;  %vm914_vm8 = vcmp.eq.f32.partialorder %v904_v61, inf  ;;  %v917_v4 = vand.u32 2147483648, %v904_v61 }
 0x8e6   :  { %vm916_vm9 = vcmp.eq.f32.partialorder %v904_v61, 0.0 }
 0x8e7   :  { %v903_v0 = vadd.f32 1e-05, %v901_v63 }
 0x8e9   :  { %4753 = vrsqrt.f32 %v903_v0  ;;  %vm907_vm10 = vcmp.eq.f32.partialorder %v903_v0, inf  ;;  %v910_v21 = vand.u32 2147483648, %v903_v0  ;;  %vm909_vm11 = vcmp.eq.f32.partialorder %v903_v0, 0.0 }
 0x8ef   :  { %v4752_v1 = vpop.eup %4751 }
 0x8f0   :  { %v913_v3 = vmul.f32 %v4752_v1, %v904_v61 }
 0x8f2   :  { %v915_v5 = vsel %vm914_vm8, %v904_v61, %v913_v3 }
 0x8f3   :  { %v4754_v6 = vpop.eup %4753  ;;  %v918_v17 = vsel %vm916_vm9, %v917_v4, %v915_v5 }
 0x8f4   :  { %926 = vperm.xlu1 %4710, %v918_v17   ;;  %v906_v20 = vmul.f32 %v4754_v6, %v903_v0 }
 0x8f6   :  { %v908_v18 = vsel %vm907_vm10, %v903_v0, %v906_v20 }
 0x8f7   :  { %v911_v22 = vsel %vm909_vm11, %v910_v21, %v908_v18 }
 0x8f8   :  { %921 = vperm.xlu0 %4709, %v911_v22  }
 0x973   :  { %v927_v28 = vpop.permute.xlu1 %926 }
 0x974   :  { %4755 = vrcp.f32 %v927_v28 }
 0x977   :  { %v922_v29 = vpop.permute.xlu0 %921 }
 0x978   :  { %4757 = vrcp.f32 %v922_v29 }
 0x97e   :  { %v4756_v30 = vpop.eup %4755 }
 0x97f   :  { %v5216_v27 = vmul.f32 %v4756_v30, %v880_v46  ;;  %v5222_v36 = vmul.f32 %v4756_v30, %v882_v47 }
 0x982   :  { %v4758_v31 = vpop.eup %4757 }
 0x983   :  { %v5214_v32 = vmul.f32 %v4758_v31, %v879_v43  ;;  %v5218_v23 = vmul.f32 %v4758_v31, %v881_v34 }
 0x985   :  { %v4597_v33 = vpack.c.bf16 %v5216_v27, %v5214_v32  ;;  %v4601_v37 = vpack.c.bf16 %v5222_v36, %v5218_v23 }
 0x987   :  { %4598 = vmatprep.subr.bf16.mxu1 %v4597_v33 }
 0x988   :  { %4600 = vmatpush3.bf16.msra.mxu1 %v4597_v33 }
 0x989   :  { %4602 = vmatprep.subr.bf16.mxu1 %v4601_v37 }
 0x98b   :  { %4341 = vmatmul.mubr.msk.f32.vlgmr.msra.gmra.mrb[8].mxu1 %vm104_vm0, %v5074_v7 }
 0x98c   :  { %4604 = vmatpush3.bf16.msra.mxu1 %v4601_v37  ;;  %4347 = vmatprep.mubr.msk.f32.mxu1 %vm104_vm0, %v5079_v8 }
 0x98d   :  { %4360 = vmatprep.subr.mxu1 %v1317_v38 }
 0x98f   :  { %4348 = vmatmul.mubr.msk.f32.vlgmr.msra.gmra.mrb[10].mxu1 %vm104_vm0, %v5088_v9 }
 0x990   :  { %4362 = vmatprep.mubr.msk.f32.mxu1 %vm273_vm1, %v5099_v12  ;;  %4361 = vmatpush3.msra.mxu1 %v1317_v38 }
 0x993   :  { %4363 = vmatmul.mubr.msk.f32.vlgmr.msra.gmra.mrb[12].mxu1 %vm273_vm1, %v5097_v11  ;;  %v4085_v11 = vld [vmem:[%s5846_s12] ss:$0 sm:$0xff] }
 0x994   :  { %4365 = vmatprep.mubr.msk.f32.mxu1 %vm273_vm1, %v5107_v14 }
 0x997   :  { %4366 = vmatmul.mubr.msk.f32.gmra.mrb[14].mxu1 %vm273_vm1, %v5105_v13 }
 0x998   :  { %4379 = vmatprep.mubr.msk.f32.mxu1 %vm104_vm0, %v5079_v8 }
 0xa5e   :  { %v4342_v7 = vpop.f32.mrb[8].mxu1 }
 0xa5f   :  { %v1008_v39 = vpop.f32.mrb[9].mxu1 }
 0xa60   :  { %4354 = vmatprep.mubr.msk.f32.mxu0 %vm104_vm0, %v1008_v39 }
 0xa61   :  { %4355 = vmatmul.mubr.msk.f32.vlgmr.msra.gmra.mrb[8].mxu0 %vm104_vm0, %v4342_v7 }
 0xa62   :  { %v4349_v9 = vpop.f32.mrb[10].mxu1 }
 0xa63   :  { %v1083_v12 = vpop.f32.mrb[11].mxu1 }
 0xa64   :  { %4357 = vmatprep.mubr.msk.f32.mxu0 %vm104_vm0, %v1083_v12 }
 0xa65   :  { %4358 = vmatmul.mubr.msk.f32.gmra.mrb[10].mxu0 %vm104_vm0, %v4349_v9 }
 0xa66   :  { %v4364_v13 = vpop.f32.mrb[12].mxu1  ;;  %4372 = vmatprep.mubr.msk.f32.mxu0 %vm104_vm0, %v5061_v2 }
 0xa67   :  { %v5254_v8 = vadd.f32 %v4364_v13, %v4085_v11  ;;  %v1391_v14 = vpop.f32.mrb[13].mxu1 }
 0xa68   :  { %v5256_v35 = vadd.f32 %v4085_v11, %v1391_v14 }
 0xa69   :  { %v1411_v40 = vmul.f32 %v5254_v8, %v5254_v8 }
 0xa6a   :  { %v4367_v41 = vpop.f32.mrb[14].mxu1  ;;  %v1410_v42 = vmul.f32 %v5256_v35, %v5256_v35 }
 0xa6b   :  { %v5262_v43 = vadd.f32 %v4367_v41, %v4085_v11  ;;  %v1401_v44 = vpop.f32.mrb[15].mxu1  ;;  %v1417_v45 = vsel %vm104_vm0, %v1411_v40, 0.0 }
 0xa6c   :  { %v5265_v34 = vadd.f32 %v4085_v11, %v1401_v44  ;;  %1418 = vadd.xlane.f32.xlu0 %v1417_v45  ;;  %v1414_v2 = vsel %vm104_vm0, %v1410_v42, 0.0  ;;  %v5289_v42 = vld [vmem:[%s5856_s22] ss:$0 sm:$0xff]  ;;  %s5891_s22 = sld [smem:[#allocation12_spill]] }
 0xa6d   :  { %1415 = vadd.xlane.f32.xlu1 %v1414_v2  ;;  %v1413_v46 = vmul.f32 %v5262_v43, %v5262_v43 }
 0xa6e   :  { %v1412_v47 = vmul.f32 %v5265_v34, %v5265_v34 }
 0xa6f   :  { %v1423_v48 = vsel %vm104_vm0, %v1413_v46, 0.0 }
 0xa70   :  { %v1420_v49 = vsel %vm104_vm0, %v1412_v47, 0.0 }
 0xa71   :  { %1421 = vadd.xlane.f32.xlu0 %v1420_v49  ;;  %1424 = vadd.xlane.f32.xlu1 %v1423_v48 }
 0xaf9   :  { %v1419_v50 = vpop.xlane.xlu0 %1418 }
 0xafa   :  { %4759 = vrsqrt.f32 %v1419_v50  ;;  %v1416_v51 = vpop.xlane.xlu1 %1415  ;;  %vm1435_vm1 = vcmp.eq.f32.partialorder %v1419_v50, inf  ;;  %v1438_v57 = vand.u32 2147483648, %v1419_v50  ;;  %vm1437_vm12 = vcmp.eq.f32.partialorder %v1419_v50, 0.0 }
 0xafb   :  { %4761 = vrsqrt.f32 %v1416_v51  ;;  %vm1428_vm13 = vcmp.eq.f32.partialorder %v1416_v51, inf  ;;  %v1431_v60 = vand.u32 2147483648, %v1416_v51  ;;  %vm1430_vm14 = vcmp.eq.f32.partialorder %v1416_v51, 0.0 }
 0xafe   :  { %v1422_v52 = vpop.xlane.xlu0 %1421  ;;  %v1425_v53 = vpop.xlane.xlu1 %1424 }
 0xaff   :  { %4763 = vrsqrt.f32 %v1422_v52  ;;  %vm1442_vm15 = vcmp.eq.f32.partialorder %v1422_v52, inf  ;;  %vm1444_vm2 = vcmp.eq.f32.partialorder %v1422_v52, 0.0  ;;  %v1445_v6 = vand.u32 2147483648, %v1422_v52 }
 0xb00   :  { %4765 = vrsqrt.f32 %v1425_v53  ;;  %vm1449_vm3 = vcmp.eq.f32.partialorder %v1425_v53, inf  ;;  %v1452_v21 = vand.u32 2147483648, %v1425_v53  ;;  %vm1451_vm4 = vcmp.eq.f32.partialorder %v1425_v53, 0.0 }
 0xb04   :  { %v4760_v54 = vpop.eup %4759 }
 0xb05   :  { %v4762_v55 = vpop.eup %4761  ;;  %v1434_v56 = vmul.f32 %v4760_v54, %v1419_v50 }
 0xb06   :  { %v1427_v58 = vmul.f32 %v4762_v55, %v1416_v51 }
 0xb07   :  { %v1436_v59 = vsel %vm1435_vm1, %v1419_v50, %v1434_v56 }
 0xb08   :  { %v1439_v61 = vsel %vm1437_vm12, %v1438_v57, %v1436_v59  ;;  %v1429_v62 = vsel %vm1428_vm13, %v1416_v51, %v1427_v58 }
 0xb09   :  { %v4764_v63 = vpop.eup %4763  ;;  %v1455_v0 = vmax.f32 %v1439_v61, 1e-12  ;;  %v1432_v1 = vsel %vm1430_vm14, %v1431_v60, %v1429_v62 }
 0xb0a   :  { %v4766_v3 = vpop.eup %4765  ;;  %v1454_v4 = vmax.f32 %v1432_v1, 1e-12  ;;  %v1441_v5 = vmul.f32 %v4764_v63, %v1422_v52 }
 0xb0b   :  { %v1448_v17 = vmul.f32 %v4766_v3, %v1425_v53  ;;  %4767 = vrcp.f32 %v1455_v0 }
 0xb0c   :  { %v1443_v20 = vsel %vm1442_vm15, %v1422_v52, %v1441_v5  ;;  %4769 = vrcp.f32 %v1454_v4 }
 0xb0d   :  { %v1446_v18 = vsel %vm1444_vm2, %v1445_v6, %v1443_v20  ;;  %v1450_v22 = vsel %vm1449_vm3, %v1425_v53, %v1448_v17 }
 0xb0e   :  { %v1456_v24 = vmax.f32 %v1446_v18, 1e-12  ;;  %v1453_v25 = vsel %vm1451_vm4, %v1452_v21, %v1450_v22 }
 0xb0f   :  { %v1457_v26 = vmax.f32 %v1453_v25, 1e-12 }
 0xb10   :  { %4771 = vrcp.f32 %v1456_v24 }
 0xb11   :  { %4773 = vrcp.f32 %v1457_v26 }
 0xb15   :  { %v4768_v28 = vpop.eup %4767 }
 0xb16   :  { %v4770_v29 = vpop.eup %4769  ;;  %v1461_v30 = vmul.f32 %v4768_v28, %v5254_v8 }
 0xb17   :  { %v1459_v31 = vmul.f32 %v4770_v29, %v5256_v35 }
 0xb18   :  { %v1467_v33 = vmax.f32 %v1461_v30, 0.0 }
 0xb19   :  { %v1466_v37 = vmax.f32 %v1459_v31, 0.0 }
 0xb1a   :  { %v4772_v38 = vpop.eup %4771  ;;  %v1473_v7 = vsel %vm104_vm0, %v1467_v33, 0.0 }
 0xb1b   :  { %v4774_v39 = vpop.eup %4773  ;;  %1474 = vadd.xlane.f32.xlu1 %v1473_v7  ;;  %v1470_v9 = vsel %vm104_vm0, %v1466_v37, 0.0  ;;  %v1463_v12 = vmul.f32 %v4772_v38, %v5265_v34 }
 0xb1c   :  { %1471 = vadd.xlane.f32.xlu0 %v1470_v9  ;;  %v1465_v11 = vmul.f32 %v4774_v39, %v5262_v43 }
 0xb1d   :  { %v1468_v13 = vmax.f32 %v1463_v12, 0.0 }
 0xb1e   :  { %v1469_v14 = vmax.f32 %v1465_v11, 0.0 }
 0xb1f   :  { %v1476_v8 = vsel %vm104_vm0, %v1468_v13, 0.0 }
 0xb20   :  { %1477 = vadd.xlane.f32.xlu0 %v1476_v8  ;;  %v1479_v35 = vsel %vm104_vm0, %v1469_v14, 0.0 }
 0xb21   :  { %1480 = vadd.xlane.f32.xlu1 %v1479_v35  ;;  %v1556_v35 = vld [vmem:[%s5884_s19] sm:$0xff] }
 0xb34   :  { %v5282_v40 = vpop.f32.mrb[8].mxu0 }
 0xb35   :  { %v5284_v41 = vpop.f32.mrb[9].mxu0 }
 0xb38   :  { %v4359_v44 = vpop.f32.mrb[10].mxu0 }
 0xb39   :  { %v5292_v43 = vadd.f32 %v4359_v44, %v5289_v42  ;;  %v1186_v45 = vpop.f32.mrb[11].mxu0  ;;  %v1557_v44 = vld [vmem:[%s5884_s19 + $0x8] sm:$0xff]  ;;  %s5886_s19 = sld [smem:[#allocation7_spill]] }
 0xb3a   :  { %v5295_v34 = vadd.f32 %v5289_v42, %v1186_v45 }
 0xba8   :  { %v1475_v2 = vpop.xlane.xlu1 %1474 }
 0xba9   :  { %v1472_v46 = vpop.xlane.xlu0 %1471 }
 0xbad   :  { %v1478_v47 = vpop.xlane.xlu0 %1477 }
 0xbae   :  { %v1482_v48 = vadd.f32 %v1478_v47, %v1472_v46  ;;  %v1481_v49 = vpop.xlane.xlu1 %1480 }
 0xbaf   :  { %v1483_v50 = vadd.f32 %v1481_v49, %v1475_v2  ;;  %v5322_v49 = vld [vmem:[%s5882_s0 + $0x8] sm:$0xff] }
 0xbb0   :  { %v1484_v51 = vmul.f32 0.03125, %v1482_v48  ;;  %v4617_v48 = vpack.c.bf16 %v1557_v44, %v1556_v35 }
 0xbb1   :  { %v1485_v52 = vmul.f32 0.03125, %v1483_v50  ;;  %v5329_v50 = vld [vmem:[%s5882_s0 + $0x18] sm:$0xff] }
 0xbb2   :  { %1488 = vperm.xlu0 %4709, %v1484_v51   ;;  %v5336_v51 = vld [vmem:[%s5882_s0] sm:$0xff] }
 0xbb3   :  { %1493 = vperm.xlu1 %4710, %v1485_v52  }
 0xc31   :  { %v1489_v53 = vpop.permute.xlu0 %1488 }
 0xc32   :  { %v1496_v54 = vsub.f32 %v1466_v37, %v1489_v53  ;;  %v1494_v55 = vpop.permute.xlu1 %1493  ;;  %v1498_v56 = vsub.f32 %v1468_v13, %v1489_v53 }
 0xc33   :  { %v1497_v57 = vsub.f32 %v1467_v33, %v1494_v55  ;;  %v1499_v58 = vsub.f32 %v1469_v14, %v1494_v55 }
 0xc34   :  { %v1500_v59 = vmul.f32 %v1496_v54, %v1496_v54  ;;  %v1502_v0 = vmul.f32 %v1498_v56, %v1498_v56 }
 0xc35   :  { %v1501_v60 = vmul.f32 %v1497_v57, %v1497_v57  ;;  %v1503_v62 = vmul.f32 %v1499_v58, %v1499_v58 }
 0xc36   :  { %v1504_v61 = vsel %vm104_vm0, %v1500_v59, 0.0  ;;  %v1510_v3 = vsel %vm104_vm0, %v1502_v0, 0.0 }
 0xc37   :  { %1505 = vadd.xlane.f32.xlu1 %v1504_v61  ;;  %v1507_v63 = vsel %vm104_vm0, %v1501_v60, 0.0  ;;  %v1513_v1 = vsel %vm104_vm0, %v1503_v62, 0.0 }
 0xc38   :  { %1508 = vadd.xlane.f32.xlu0 %v1507_v63 }
 0xc3b   :  { %1514 = vadd.xlane.f32.xlu1 %v1513_v1 }
 0xc3c   :  { %1511 = vadd.xlane.f32.xlu0 %v1510_v3 }
 0xcc4   :  { %v1506_v4 = vpop.xlane.xlu1 %1505 }
 0xcc5   :  { %v1509_v5 = vpop.xlane.xlu0 %1508 }
 0xcc8   :  { %v1515_v6 = vpop.xlane.xlu1 %1514 }
 0xcc9   :  { %v1512_v17 = vpop.xlane.xlu0 %1511  ;;  %v1517_v20 = vadd.f32 %v1515_v6, %v1509_v5 }
 0xcca   :  { %v1516_v21 = vadd.f32 %v1512_v17, %v1506_v4 }
 0xccb   :  { %v1519_v18 = vmul.f32 0.03125, %v1517_v20 }
 0xccc   :  { %v1518_v22 = vmul.f32 0.03125, %v1516_v21 }
 0xccd   :  { %v1521_v24 = vadd.f32 1e-05, %v1519_v18 }
 0xcce   :  { %v1520_v25 = vadd.f32 1e-05, %v1518_v22 }
 0xccf   :  { %4775 = vrsqrt.f32 %v1521_v24  ;;  %vm1531_vm5 = vcmp.eq.f32.partialorder %v1521_v24, inf  ;;  %v1534_v31 = vand.u32 2147483648, %v1521_v24  ;;  %vm1533_vm7 = vcmp.eq.f32.partialorder %v1521_v24, 0.0 }
 0xcd0   :  { %4777 = vrsqrt.f32 %v1520_v25  ;;  %vm1524_vm6 = vcmp.eq.f32.partialorder %v1520_v25, inf  ;;  %v1527_v33 = vand.u32 2147483648, %v1520_v25  ;;  %vm1526_vm8 = vcmp.eq.f32.partialorder %v1520_v25, 0.0 }
 0xcd9   :  { %v4776_v26 = vpop.eup %4775 }
 0xcda   :  { %v4778_v28 = vpop.eup %4777  ;;  %v1530_v29 = vmul.f32 %v4776_v26, %v1521_v24 }
 0xcdb   :  { %v1523_v30 = vmul.f32 %v4778_v28, %v1520_v25 }
 0xcdc   :  { %v1532_v37 = vsel %vm1531_vm5, %v1521_v24, %v1530_v29 }
 0xcdd   :  { %v1525_v38 = vsel %vm1524_vm6, %v1520_v25, %v1523_v30  ;;  %v1535_v7 = vsel %vm1533_vm7, %v1534_v31, %v1532_v37  ;;  %vm2218_vm6 = vcmask 31744  }
 0xcde   :  { %v1528_v39 = vsel %vm1526_vm8, %v1527_v33, %v1525_v38  ;;  %1543 = vperm.xlu1 %4710, %v1535_v7  }
 0xcdf   :  { %1538 = vperm.xlu0 %4709, %v1528_v39  }
 0xd5d   :  { %v1544_v9 = vpop.permute.xlu1 %1543 }
 0xd5e   :  { %v1539_v12 = vpop.permute.xlu0 %1538  ;;  %4779 = vrcp.f32 %v1544_v9 }
 0xd5f   :  { %4781 = vrcp.f32 %v1539_v12 }
 0xd68   :  { %v4780_v11 = vpop.eup %4779 }
 0xd69   :  { %v4782_v13 = vpop.eup %4781  ;;  %v5301_v14 = vmul.f32 %v4780_v11, %v1497_v57  ;;  %v5303_v8 = vmul.f32 %v4780_v11, %v1499_v58 }
 0xd6a   :  { %v5311_v45 = vmul.f32 %v4782_v13, %v1496_v54  ;;  %v5313_v2 = vmul.f32 %v4782_v13, %v1498_v56  ;;  %v4094_v56 = vld [vmem:[%s5885_s2] ss:$0 sm:$0xff] }
 0xd6c   :  { %v4609_v46 = vpack.c.bf16 %v5301_v14, %v5311_v45  ;;  %v4613_v47 = vpack.c.bf16 %v5303_v8, %v5313_v2 }
 0xd6e   :  { %4610 = vmatprep.subr.bf16.mxu0 %v4609_v46  ;;  %4614 = vmatprep.subr.bf16.mxu1 %v4613_v47 }
 0xd6f   :  { %4612 = vmatpush3.bf16.msra.mxu0 %v4609_v46  ;;  %4616 = vmatpush3.bf16.msra.mxu1 %v4613_v47 }
 0xd70   :  { %4618 = vmatprep.subr.bf16.mxu0 %v4617_v48 }
 0xd72   :  { %4373 = vmatmul.mubr.msk.f32.vlgmr.msra.gmra.mrb[12].mxu0 %vm104_vm0, %v5322_v49  ;;  %4380 = vmatmul.mubr.msk.f32.vlgmr.msra.gmra.mrb[16].mxu1 %vm104_vm0, %v5329_v50 }
 0xd73   :  { %4620 = vmatpush3.bf16.msra.mxu0 %v4617_v48  ;;  %4396 = vmatprep.mubr.msk.f32.mxu1 %vm104_vm0, %v5336_v51 }
 0xe45   :  { %v4374_v52 = vpop.f32.mrb[12].mxu0  ;;  %v4381_v53 = vpop.f32.mrb[16].mxu1 }
 0xe46   :  { %v1625_v54 = vpop.f32.mrb[13].mxu0  ;;  %v1700_v55 = vpop.f32.mrb[17].mxu1 }
 0xe47   :  { %4386 = vmatprep.mubr.msk.f32.mxu0 %vm104_vm0, %v1625_v54 }
 0xe48   :  { %4387 = vmatmul.mubr.msk.f32.vlgmr.msra.gmra.mrb[14].mxu0 %vm104_vm0, %v4374_v52 }
 0xe49   :  { %4389 = vmatprep.mubr.msk.f32.mxu0 %vm104_vm0, %v1700_v55 }
 0xe4c   :  { %4390 = vmatmul.mubr.msk.f32.gmra.mrb[16].mxu0 %vm104_vm0, %v4381_v53 }
 0xf1b   :  { %v4388_v57 = vpop.f32.mrb[14].mxu0 }
 0xf1c   :  { %v5347_v58 = vadd.f32 %v4388_v57, %v4094_v56  ;;  %v1793_v59 = vpop.f32.mrb[15].mxu0 }
 0xf1d   :  { %v5349_v60 = vadd.f32 %v4094_v56, %v1793_v59 }
 0xf1e   :  { %v1813_v61 = vmul.f32 %v5347_v58, %v5347_v58 }
 0xf1f   :  { %v4391_v62 = vpop.f32.mrb[16].mxu0  ;;  %v1812_v63 = vmul.f32 %v5349_v60, %v5349_v60 }
 0xf20   :  { %v5355_v0 = vadd.f32 %v4391_v62, %v4094_v56  ;;  %v1803_v1 = vpop.f32.mrb[17].mxu0  ;;  %v1819_v3 = vsel %vm104_vm0, %v1813_v61, 0.0 }
 0xf21   :  { %v5358_v4 = vadd.f32 %v4094_v56, %v1803_v1  ;;  %1820 = vadd.xlane.f32.xlu0 %v1819_v3  ;;  %v1816_v5 = vsel %vm104_vm0, %v1812_v63, 0.0 }
 0xf22   :  { %1817 = vadd.xlane.f32.xlu1 %v1816_v5  ;;  %v1815_v6 = vmul.f32 %v5355_v0, %v5355_v0 }
 0xf23   :  { %v1814_v17 = vmul.f32 %v5358_v4, %v5358_v4 }
 0xf24   :  { %v1825_v20 = vsel %vm104_vm0, %v1815_v6, 0.0 }
 0xf25   :  { %v1822_v21 = vsel %vm104_vm0, %v1814_v17, 0.0 }
 0xf26   :  { %1823 = vadd.xlane.f32.xlu0 %v1822_v21  ;;  %1826 = vadd.xlane.f32.xlu1 %v1825_v20 }
 0xfae   :  { %v1821_v18 = vpop.xlane.xlu0 %1820 }
 0xfaf   :  { %4783 = vrsqrt.f32 %v1821_v18  ;;  %v1818_v22 = vpop.xlane.xlu1 %1817  ;;  %vm1837_vm9 = vcmp.eq.f32.partialorder %v1821_v18, inf  ;;  %v1840_v30 = vand.u32 2147483648, %v1821_v18  ;;  %vm1839_vm10 = vcmp.eq.f32.partialorder %v1821_v18, 0.0 }
 0xfb0   :  { %4785 = vrsqrt.f32 %v1818_v22  ;;  %vm1830_vm11 = vcmp.eq.f32.partialorder %v1818_v22, inf  ;;  %v1833_v37 = vand.u32 2147483648, %v1818_v22  ;;  %vm1832_vm1 = vcmp.eq.f32.partialorder %v1818_v22, 0.0 }
 0xfb3   :  { %v1824_v24 = vpop.xlane.xlu0 %1823  ;;  %v1827_v25 = vpop.xlane.xlu1 %1826 }
 0xfb4   :  { %4787 = vrsqrt.f32 %v1824_v24  ;;  %vm1844_vm12 = vcmp.eq.f32.partialorder %v1824_v24, inf  ;;  %vm1846_vm13 = vcmp.eq.f32.partialorder %v1824_v24, 0.0  ;;  %v1847_v44 = vand.u32 2147483648, %v1824_v24 }
 0xfb5   :  { %4789 = vrsqrt.f32 %v1827_v25  ;;  %vm1851_vm14 = vcmp.eq.f32.partialorder %v1827_v25, inf  ;;  %v1854_v48 = vand.u32 2147483648, %v1827_v25  ;;  %vm1853_vm15 = vcmp.eq.f32.partialorder %v1827_v25, 0.0 }
 0xfb9   :  { %v4784_v26 = vpop.eup %4783 }
 0xfba   :  { %v4786_v28 = vpop.eup %4785  ;;  %v1836_v29 = vmul.f32 %v4784_v26, %v1821_v18 }
 0xfbb   :  { %v1829_v31 = vmul.f32 %v4786_v28, %v1818_v22 }
 0xfbc   :  { %v1838_v33 = vsel %vm1837_vm9, %v1821_v18, %v1836_v29 }
 0xfbd   :  { %v1841_v38 = vsel %vm1839_vm10, %v1840_v30, %v1838_v33  ;;  %v1831_v7 = vsel %vm1830_vm11, %v1818_v22, %v1829_v31  ;;  %vm2340_vm11 = vcmask 1043456  }
 0xfbe   :  { %v4788_v39 = vpop.eup %4787  ;;  %v1857_v9 = vmax.f32 %v1841_v38, 1e-12  ;;  %v1834_v12 = vsel %vm1832_vm1, %v1833_v37, %v1831_v7  ;;  %vm1291_vm1 = vcmask 261120  }
 0xfbf   :  { %v4790_v11 = vpop.eup %4789  ;;  %v1856_v13 = vmax.f32 %v1834_v12, 1e-12  ;;  %v1843_v35 = vmul.f32 %v4788_v39, %v1824_v24 }
 0xfc0   :  { %v1850_v46 = vmul.f32 %v4790_v11, %v1827_v25  ;;  %4791 = vrcp.f32 %v1857_v9 }
 0xfc1   :  { %v1845_v47 = vsel %vm1844_vm12, %v1824_v24, %v1843_v35  ;;  %4793 = vrcp.f32 %v1856_v13  ;;  %vm2327_vm12 = vcmask 293888  }
 0xfc2   :  { %v1848_v52 = vsel %vm1846_vm13, %v1847_v44, %v1845_v47  ;;  %v1852_v53 = vsel %vm1851_vm14, %v1827_v25, %v1850_v46 }
 0xfc3   :  { %v1858_v54 = vmax.f32 %v1848_v52, 1e-12  ;;  %v1855_v55 = vsel %vm1853_vm15, %v1854_v48, %v1852_v53 }
 0xfc4   :  { %v1859_v56 = vmax.f32 %v1855_v55, 1e-12 }
 0xfc5   :  { %4795 = vrcp.f32 %v1858_v54 }
 0xfc6   :  { %4797 = vrcp.f32 %v1859_v56 }
 0xfca   :  { %v4792_v57 = vpop.eup %4791 }
 0xfcb   :  { %v4794_v59 = vpop.eup %4793  ;;  %v1863_v61 = vmul.f32 %v4792_v57, %v5347_v58 }
 0xfcc   :  { %v1861_v62 = vmul.f32 %v4794_v59, %v5349_v60 }
 0xfcd   :  { %v1869_v63 = vmax.f32 %v1863_v61, 0.0 }
 0xfce   :  { %v1868_v1 = vmax.f32 %v1861_v62, 0.0 }
 0xfcf   :  { %v4796_v3 = vpop.eup %4795  ;;  %v1875_v5 = vsel %vm104_vm0, %v1869_v63, 0.0 }
 0xfd0   :  { %v4798_v6 = vpop.eup %4797  ;;  %1876 = vadd.xlane.f32.xlu1 %v1875_v5  ;;  %v1872_v17 = vsel %vm104_vm0, %v1868_v1, 0.0  ;;  %v1865_v20 = vmul.f32 %v4796_v3, %v5358_v4 }
 0xfd1   :  { %1873 = vadd.xlane.f32.xlu0 %v1872_v17  ;;  %v1867_v21 = vmul.f32 %v4798_v6, %v5355_v0 }
 0xfd2   :  { %v1870_v18 = vmax.f32 %v1865_v20, 0.0 }
 0xfd3   :  { %v1871_v22 = vmax.f32 %v1867_v21, 0.0 }
 0xfd4   :  { %v1878_v58 = vsel %vm104_vm0, %v1870_v18, 0.0 }
 0xfd5   :  { %1879 = vadd.xlane.f32.xlu0 %v1878_v58  ;;  %v1881_v60 = vsel %vm104_vm0, %v1871_v22, 0.0  ;;  %v1958_v58 = vld [vmem:[%s5847_s13] sm:$0xff] }
 0xfd6   :  { %1882 = vadd.xlane.f32.xlu1 %v1881_v60  ;;  %v1959_v60 = vld [vmem:[%s5847_s13 + $0x8] sm:$0xff] }
0x105d   :  { %v1877_v24 = vpop.xlane.xlu1 %1876 }
0x105e   :  { %v1874_v25 = vpop.xlane.xlu0 %1873 }
0x1062   :  { %v1880_v26 = vpop.xlane.xlu0 %1879 }
0x1063   :  { %v1884_v28 = vadd.f32 %v1880_v26, %v1874_v25  ;;  %v1883_v29 = vpop.xlane.xlu1 %1882 }
0x1064   :  { %v1885_v30 = vadd.f32 %v1883_v29, %v1877_v24  ;;  %v4629_v24 = vpack.c.bf16 %v1959_v60, %v1958_v58 }
0x1065   :  { %v1886_v31 = vmul.f32 0.03125, %v1884_v28 }
0x1066   :  { %v1887_v33 = vmul.f32 0.03125, %v1885_v30  ;;  %4630 = vmatprep.subr.bf16.mxu0 %v4629_v24 }
0x1067   :  { %1890 = vperm.xlu0 %4709, %v1886_v31   ;;  %4632 = vmatpush3.bf16.msra.mxu0 %v4629_v24 }
0x1068   :  { %1895 = vperm.xlu1 %4710, %v1887_v33  }
0x10e6   :  { %v1891_v4 = vpop.permute.xlu0 %1890 }
0x10e7   :  { %v1898_v0 = vsub.f32 %v1868_v1, %v1891_v4  ;;  %v1896_v37 = vpop.permute.xlu1 %1895  ;;  %v1900_v38 = vsub.f32 %v1870_v18, %v1891_v4 }
0x10e8   :  { %v1899_v7 = vsub.f32 %v1869_v63, %v1896_v37  ;;  %v1901_v39 = vsub.f32 %v1871_v22, %v1896_v37 }
0x10e9   :  { %v1902_v9 = vmul.f32 %v1898_v0, %v1898_v0  ;;  %v1904_v44 = vmul.f32 %v1900_v38, %v1900_v38 }
0x10ea   :  { %v1903_v12 = vmul.f32 %v1899_v7, %v1899_v7  ;;  %v1905_v13 = vmul.f32 %v1901_v39, %v1901_v39 }
0x10eb   :  { %v1906_v11 = vsel %vm104_vm0, %v1902_v9, 0.0  ;;  %v1912_v47 = vsel %vm104_vm0, %v1904_v44, 0.0 }
0x10ec   :  { %1907 = vadd.xlane.f32.xlu1 %v1906_v11  ;;  %v1909_v35 = vsel %vm104_vm0, %v1903_v12, 0.0  ;;  %v1915_v46 = vsel %vm104_vm0, %v1905_v13, 0.0  ;;  %v5409_v11 = vld [vmem:[%s5848_s14] ss:$0 sm:$0xff] }
0x10ed   :  { %1910 = vadd.xlane.f32.xlu0 %v1909_v35 }
0x10f0   :  { %1916 = vadd.xlane.f32.xlu1 %v1915_v46 }
0x10f1   :  { %1913 = vadd.xlane.f32.xlu0 %v1912_v47 }
0x1179   :  { %v1908_v48 = vpop.xlane.xlu1 %1907 }
0x117a   :  { %v1911_v52 = vpop.xlane.xlu0 %1910 }
0x117d   :  { %v1917_v53 = vpop.xlane.xlu1 %1916 }
0x117e   :  { %v1914_v54 = vpop.xlane.xlu0 %1913  ;;  %v1919_v55 = vadd.f32 %v1917_v53, %v1911_v52  ;;  %v98_v53 = vld [vmem:[%s5886_s19 + $0x8] sm:$0xff] }
0x117f   :  { %v1918_v56 = vadd.f32 %v1914_v54, %v1908_v48  ;;  %v97_v54 = vld [vmem:[%s5886_s19] sm:$0xff] }
0x1180   :  { %v1921_v57 = vmul.f32 0.03125, %v1919_v55 }
0x1181   :  { %v1920_v59 = vmul.f32 0.03125, %v1918_v56 }
0x1182   :  { %v1923_v61 = vadd.f32 1e-05, %v1921_v57  ;;  %v2315_v57 = vld [vmem:[%s5849_s15] sm:$0xff] }
0x1183   :  { %v1922_v62 = vadd.f32 1e-05, %v1920_v59  ;;  %v2316_v59 = vld [vmem:[%s5849_s15 + $0x8] sm:$0xff] }
0x1184   :  { %4799 = vrsqrt.f32 %v1923_v61  ;;  %vm1933_vm2 = vcmp.eq.f32.partialorder %v1923_v61, inf  ;;  %v1936_v6 = vand.u32 2147483648, %v1923_v61  ;;  %vm1935_vm4 = vcmp.eq.f32.partialorder %v1923_v61, 0.0 }
0x1185   :  { %4801 = vrsqrt.f32 %v1922_v62  ;;  %vm1926_vm3 = vcmp.eq.f32.partialorder %v1922_v62, inf  ;;  %v1929_v17 = vand.u32 2147483648, %v1922_v62  ;;  %vm1928_vm5 = vcmp.eq.f32.partialorder %v1922_v62, 0.0 }
0x118e   :  { %v4800_v63 = vpop.eup %4799 }
0x118f   :  { %v4802_v1 = vpop.eup %4801  ;;  %v1932_v3 = vmul.f32 %v4800_v63, %v1923_v61  ;;  %v2318_v63 = vld [vmem:[%s5849_s15 + $0x18] sm:$0xff] }
0x1190   :  { %v1925_v5 = vmul.f32 %v4802_v1, %v1922_v62 }
0x1191   :  { %v1934_v20 = vsel %vm1933_vm2, %v1923_v61, %v1932_v3  ;;  %v2317_v61 = vld [vmem:[%s5849_s15 + $0x10] sm:$0xff] }
0x1192   :  { %v1927_v21 = vsel %vm1926_vm3, %v1922_v62, %v1925_v5  ;;  %v1937_v18 = vsel %vm1935_vm4, %v1936_v6, %v1934_v20  ;;  %v4633_v62 = vpack.c.bf16 %v2316_v59, %v2315_v57  ;;  %v4637_v3 = vpack.c.bf16 %v2318_v63, %v2317_v61 }
0x1193   :  { %v1930_v22 = vsel %vm1928_vm5, %v1929_v17, %v1927_v21  ;;  %1945 = vperm.xlu1 %4710, %v1937_v18  }
0x1194   :  { %1940 = vperm.xlu0 %4709, %v1930_v22  }
0x1212   :  { %v1946_v25 = vpop.permute.xlu1 %1945 }
0x1213   :  { %v1941_v26 = vpop.permute.xlu0 %1940  ;;  %4803 = vrcp.f32 %v1946_v25 }
0x1214   :  { %4805 = vrcp.f32 %v1941_v26 }
0x121d   :  { %v4804_v28 = vpop.eup %4803 }
0x121e   :  { %v4806_v29 = vpop.eup %4805  ;;  %v1951_v30 = vmul.f32 %v4804_v28, %v1899_v7  ;;  %v5387_v4 = vmul.f32 %v4804_v28, %v1901_v39  ;;  %v5396_v7 = vld [vmem:[%s5882_s0 + $0x10] sm:$0xff] }
0x121f   :  { %v1949_v31 = vmul.f32 %v4806_v29, %v1898_v0  ;;  %v5385_v33 = vmul.f32 %v4806_v29, %v1900_v38 }
0x1221   :  { %v4621_v37 = vpack.c.bf16 %v1951_v30, %v1949_v31  ;;  %v4625_v9 = vpack.c.bf16 %v5387_v4, %v5385_v33 }
0x1223   :  { %4622 = vmatprep.subr.bf16.mxu1 %v4621_v37 }
0x1224   :  { %4624 = vmatpush3.bf16.msra.mxu1 %v4621_v37 }
0x1225   :  { %4626 = vmatprep.subr.bf16.mxu1 %v4625_v9 }
0x1227   :  { %4397 = vmatmul.mubr.msk.f32.vlgmr.msra.gmra.mrb[18].mxu1 %vm104_vm0, %v5322_v49 }
0x1228   :  { %4628 = vmatpush3.bf16.msra.mxu1 %v4625_v9  ;;  %4403 = vmatprep.mubr.msk.f32.mxu1 %vm104_vm0, %v5396_v7 }
0x1229   :  { %4634 = vmatprep.subr.bf16.mxu1 %v4633_v62 }
0x122b   :  { %4404 = vmatmul.mubr.msk.f32.vlgmr.msra.gmra.mrb[20].mxu1 %vm104_vm0, %v5329_v50 }
0x122c   :  { %4636 = vmatpush3.bf16.msra.mxu1 %v4633_v62 }
0x122d   :  { %4638 = vmatprep.subr.bf16.mxu1 %v4637_v3 }
0x1230   :  { %4640 = vmatpush3.bf16.msra.mxu1 %v4637_v3 }
0x12fa   :  { %v4398_v0 = vpop.f32.mrb[18].mxu1 }
0x12fb   :  { %v2027_v38 = vpop.f32.mrb[19].mxu1 }
0x12fc   :  { %4410 = vmatprep.mubr.msk.f32.mxu0 %vm104_vm0, %v2027_v38 }
0x12fd   :  { %4411 = vmatmul.mubr.msk.f32.vlgmr.msra.gmra.mrb[18].mxu0 %vm104_vm0, %v4398_v0 }
0x12fe   :  { %v4405_v39 = vpop.f32.mrb[20].mxu1 }
0x12ff   :  { %v2102_v12 = vpop.f32.mrb[21].mxu1 }
0x1300   :  { %4413 = vmatprep.mubr.msk.f32.mxu0 %vm104_vm0, %v2102_v12 }
0x1301   :  { %4414 = vmatmul.mubr.msk.f32.gmra.mrb[20].mxu0 %vm104_vm0, %v4405_v39 }
0x13d0   :  { %v4412_v13 = vpop.f32.mrb[18].mxu0 }
0x13d1   :  { %v2201_v50 = vadd.f32 %v4412_v13, %v5409_v11  ;;  %v2195_v35 = vpop.f32.mrb[19].mxu0 }
0x13d2   :  { %v2196_v44 = vadd.f32 %v5409_v11, %v2195_v35 }
0x13d3   :  { %v2215_v46 = vmul.f32 %v2201_v50, %v2201_v50 }
0x13d4   :  { %v2214_v47 = vmul.f32 %v2196_v44, %v2196_v44  ;;  %v4415_v55 = vpop.f32.mrb[20].mxu0 }
0x13d5   :  { %v2222_v48 = vsel %vm2218_vm6, %v2215_v46, 0.0  ;;  %v2205_v56 = vpop.f32.mrb[21].mxu0  ;;  %v2211_v46 = vadd.f32 %v4415_v55, %v5409_v11 }
0x13d6   :  { %2223 = vadd.xlane.f32.xlu0 %v2222_v48  ;;  %v2219_v52 = vsel %vm2218_vm6, %v2214_v47, 0.0  ;;  %v2206_v48 = vadd.f32 %v5409_v11, %v2205_v56 }
0x13d7   :  { %2220 = vadd.xlane.f32.xlu1 %v2219_v52  ;;  %v2217_v47 = vmul.f32 %v2211_v46, %v2211_v46 }
0x13d9   :  { %v2228_v52 = vsel %vm2218_vm6, %v2217_v47, 0.0 }
0x13e8   :  { %520 = vperm.xlu1 %4710, %v98_v53   ;;  %v2216_v53 = vmul.f32 %v2206_v48, %v2206_v48 }
0x13ec   :  { %515 = vperm.xlu0 %4709, %v97_v54   ;;  %v4057_v54 = vld [vmem:[%s5886_s19 + $0x18] sm:$0xff] }
0x1463   :  { %v2224_v1 = vpop.xlane.xlu0 %2223 }
0x1464   :  { %4807 = vrsqrt.f32 %v2224_v1  ;;  %v2221_v5 = vpop.xlane.xlu1 %2220  ;;  %vm2240_vm7 = vcmp.eq.f32.partialorder %v2224_v1, inf  ;;  %v2243_v60 = vand.u32 2147483648, %v2224_v1  ;;  %vm2242_vm8 = vcmp.eq.f32.partialorder %v2224_v1, 0.0 }
0x1465   :  { %4809 = vrsqrt.f32 %v2221_v5  ;;  %vm2233_vm9 = vcmp.eq.f32.partialorder %v2221_v5, inf  ;;  %v2236_v26 = vand.u32 2147483648, %v2221_v5  ;;  %vm2235_vm10 = vcmp.eq.f32.partialorder %v2221_v5, 0.0 }
0x1468   :  { %v5433_v6 = vpop.permute.xlu1 %520 }
0x1469   :  { %v1955_v17 = vmul.f32 %v1951_v30, %v5433_v6  ;;  %v1553_v56 = vmul.f32 %v5301_v14, %v5433_v6 }
0x146b   :  { %v5436_v20 = vpop.permute.xlu0 %515  ;;  %2281 = vrot.lane.b32.xlu0 %v1955_v17, %s4905_s11 }
0x146c   :  { %v1954_v21 = vmul.f32 %v1949_v31, %v5436_v20  ;;  %v2319_v31 = vld [vmem:[%s5849_s15 + $0x20] sm:$0xf]  ;;  %v1552_v11 = vmul.f32 %v5311_v45, %v5436_v20 }
0x146d   :  { %4424 = vmatprep.subr.msk.mxu1 %vm2340_vm11, %v2319_v31 }
0x146e   :  { %v4808_v18 = vpop.eup %4807  ;;  %2279 = vrot.lane.b32.xlu1 %v1954_v21, %s4905_s11  ;;  %4425 = vmatpush3.msk.msra.mxu1 %vm2340_vm11, %v2319_v31 }
0x146f   :  { %v4810_v22 = vpop.eup %4809  ;;  %v2239_v58 = vmul.f32 %v4808_v18, %v2224_v1 }
0x1470   :  { %v2232_v24 = vmul.f32 %v4810_v22, %v2221_v5 }
0x1471   :  { %v2241_v25 = vsel %vm2240_vm7, %v2224_v1, %v2239_v58 }
0x1472   :  { %v2244_v28 = vsel %vm2242_vm8, %v2243_v60, %v2241_v25  ;;  %v2234_v29 = vsel %vm2233_vm9, %v2221_v5, %v2232_v24  ;;  %vm4908_vm8 = vmmov 0   ;;  %vm1296_vm9 = vcmask 392192  }
0x1473   :  { %v2260_v30 = vmax.f32 %v2244_v28, 1e-12  ;;  %v2237_v37 = vsel %vm2235_vm10, %v2236_v26, %v2234_v29 }
0x1474   :  { %v2259_v9 = vmax.f32 %v2237_v37, 1e-12 }
0x1475   :  { %4811 = vrcp.f32 %v2260_v30 }
0x1476   :  { %4813 = vrcp.f32 %v2259_v9 }
0x147f   :  { %v4812_v0 = vpop.eup %4811 }
0x1480   :  { %v4814_v38 = vpop.eup %4813  ;;  %v2266_v39 = vmul.f32 %v4812_v0, %v2201_v50  ;;  %v2225_v50 = vsel %vm2218_vm6, %v2216_v53, 0.0 }
0x1481   :  { %v2264_v12 = vmul.f32 %v4814_v38, %v2196_v44  ;;  %v4056_v44 = vld [vmem:[%s5886_s19 + $0x10] sm:$0xff] }
0x1482   :  { %v2272_v13 = vmul.f32 %v2266_v39, %v5433_v6 }
0x1483   :  { %v2271_v35 = vmul.f32 %v2264_v12, %v5436_v20 }
0x1484   :  { %2297 = vrot.lane.b32.xlu0 %v2272_v13, %s4906_s3 }
0x1485   :  { %2295 = vrot.lane.b32.xlu1 %v2271_v35, %s4906_s3 }
0x14a3   :  { %2229 = vadd.xlane.f32.xlu0 %v2228_v52 }
0x14a9   :  { %2226 = vadd.xlane.f32.xlu1 %v2225_v50 }
0x14b9   :  { %525 = vperm.xlu0 %4709, %v4056_v44  }
0x14ba   :  { %530 = vperm.xlu1 %4710, %v4057_v54  }
0x14dd   :  { %v2282_v55 = vpop.permute.xlu0 %2281 }
0x14de   :  { %v2308_v63 = vsel %vm104_vm0, %v1553_v56, %v2282_v55  ;;  %v5496_v55 = vld [vmem:[%s5850_s16] ss:$0 sm:$0xff]  ;;  %s4911_s16 = smov [#allocation2]  }
0x14e0   :  { %v2280_v57 = vpop.permute.xlu1 %2279 }
0x14e1   :  { %v2307_v61 = vsel %vm104_vm0, %v1552_v11, %v2280_v57 }
0x14f6   :  { %v2298_v59 = vpop.permute.xlu0 %2297 }
0x14f7   :  { %v2296_v62 = vpop.permute.xlu1 %2295  ;;  %v2312_v3 = vsel %vm1291_vm1, %v2308_v63, %v2298_v59 }
0x14f8   :  { %v2311_v1 = vsel %vm1291_vm1, %v2307_v61, %v2296_v62 }
0x14f9   :  { %4426 = vmatprep.mubr.msk.f32.mxu1 %vm2327_vm12, %v2311_v1 }
0x14fa   :  { %4427 = vmatmul.mubr.msk.f32.vlgmr.msra.gmra.mrb[22].mxu1 %vm2327_vm12, %v2312_v3 }
0x1530   :  { %v2230_v45 = vpop.xlane.xlu0 %2229 }
0x1531   :  { %4815 = vrsqrt.f32 %v2230_v45  ;;  %vm2254_vm13 = vcmp.eq.f32.partialorder %v2230_v45, inf  ;;  %v2257_v22 = vand.u32 2147483648, %v2230_v45  ;;  %vm2256_vm14 = vcmp.eq.f32.partialorder %v2230_v45, 0.0 }
0x1536   :  { %v2227_v5 = vpop.xlane.xlu1 %2226 }
0x1537   :  { %4817 = vrsqrt.f32 %v2227_v5  ;;  %vm2247_vm15 = vcmp.eq.f32.partialorder %v2227_v5, inf  ;;  %v2250_v29 = vand.u32 2147483648, %v2227_v5  ;;  %vm2249_vm2 = vcmp.eq.f32.partialorder %v2227_v5, 0.0 }
0x1538   :  { %v5470_v14 = vpop.permute.xlu0 %525 }
0x1539   :  { %v1956_v17 = vmul.f32 %v5385_v33, %v5470_v14  ;;  %v1554_v47 = vmul.f32 %v5313_v2, %v5470_v14  ;;  %v1182_v2 = vadd.f32 %v5282_v40, %v5289_v42 }
0x153a   :  { %v5474_v21 = vpop.permute.xlu1 %530 }
0x153b   :  { %v4816_v18 = vpop.eup %4815  ;;  %2283 = vrot.lane.b32.xlu1 %v1956_v17, %s4905_s11  ;;  %v1957_v58 = vmul.f32 %v5387_v4, %v5474_v21  ;;  %v1555_v52 = vmul.f32 %v5303_v8, %v5474_v21  ;;  %v1177_v8 = vadd.f32 %v5289_v42, %v5284_v41  ;;  %v1196_v1 = vmul.f32 %v1182_v2, %v1182_v2 }
0x153c   :  { %v2253_v60 = vmul.f32 %v4816_v18, %v2230_v45 }
0x153d   :  { %2285 = vrot.lane.b32.xlu0 %v1957_v58, %s4905_s11  ;;  %v1195_v62 = vmul.f32 %v1177_v8, %v1177_v8  ;;  %v1202_v3 = vsel %vm104_vm0, %v1196_v1, 0.0 }
0x153e   :  { %v2255_v24 = vsel %vm2254_vm13, %v2230_v45, %v2253_v60 }
0x153f   :  { %v2258_v25 = vsel %vm2256_vm14, %v2257_v22, %v2255_v24  ;;  %v1199_v41 = vsel %vm104_vm0, %v1195_v62, 0.0  ;;  %v533_v62 = vmul.f32 %v5436_v20, %v5149_v10 }
0x1540   :  { %v2262_v26 = vmax.f32 %v2258_v25, 1e-12 }
0x1541   :  { %v4818_v28 = vpop.eup %4817 }
0x1542   :  { %4819 = vrcp.f32 %v2262_v26  ;;  %v2246_v33 = vmul.f32 %v4818_v28, %v2227_v5 }
0x1544   :  { %v2248_v30 = vsel %vm2247_vm15, %v2227_v5, %v2246_v33  ;;  %vm1315_vm15 = vcmask 1040384  }
0x1545   :  { %v2251_v37 = vsel %vm2249_vm2, %v2250_v29, %v2248_v30 }
0x1546   :  { %v2261_v9 = vmax.f32 %v2251_v37, 1e-12 }
0x1548   :  { %4821 = vrcp.f32 %v2261_v9 }
0x154c   :  { %v4820_v31 = vpop.eup %4819 }
0x154d   :  { %v2270_v0 = vmul.f32 %v4820_v31, %v2211_v46 }
0x154f   :  { %v2274_v4 = vmul.f32 %v2270_v0, %v5474_v21 }
0x1551   :  { %2301 = vrot.lane.b32.xlu0 %v2274_v4, %s4906_s3 }
0x1552   :  { %v4822_v38 = vpop.eup %4821 }
0x1553   :  { %v2268_v39 = vmul.f32 %v4822_v38, %v2206_v48 }
0x1555   :  { %v2273_v12 = vmul.f32 %v2268_v39, %v5470_v14 }
0x1557   :  { %2299 = vrot.lane.b32.xlu1 %v2273_v12, %s4906_s3 }
0x15ad   :  { %v2284_v35 = vpop.permute.xlu1 %2283 }
0x15ae   :  { %v2309_v46 = vsel %vm104_vm0, %v1554_v47, %v2284_v35 }
0x15af   :  { %v2286_v13 = vpop.permute.xlu0 %2285 }
0x15b0   :  { %v2310_v44 = vsel %vm104_vm0, %v1555_v52, %v2286_v13  ;;  %v936_v13 = vmul.f32 %v5216_v27, %v5433_v6  ;;  %v4907_v27 = vmov 0.0|0.0  }
0x15b1   :  { %4641 = vmatprep.subr.bf16.mxu0 %v4907_v27  ;;  %4647 = vmatprep.subr.bf16.mxu1 %v4907_v27 }
0x15c3   :  { %v2302_v53 = vpop.permute.xlu0 %2301 }
0x15c4   :  { %v2314_v54 = vsel %vm1291_vm1, %v2310_v44, %v2302_v53 }
0x15c9   :  { %v2300_v50 = vpop.permute.xlu1 %2299 }
0x15ca   :  { %v2313_v48 = vsel %vm1291_vm1, %v2309_v46, %v2300_v50  ;;  %v935_v46 = vmul.f32 %v5214_v32, %v5436_v20 }
0x15cb   :  { %4429 = vmatprep.mubr.msk.f32.mxu1 %vm2327_vm12, %v2313_v48 }
0x15cc   :  { %4430 = vmatmul.mubr.msk.f32.gmra.mrb[24].mxu1 %vm2327_vm12, %v2314_v54 }
0x15cd   :  { %v4428_v57 = vpop.f32.mrb[22].mxu1 }
0x15ce   :  { %v2416_v11 = vadd.f32 %v4428_v57, %v5496_v55  ;;  %v2410_v56 = vpop.f32.mrb[23].mxu1 }
0x15cf   :  { %v2411_v59 = vadd.f32 %v5496_v55, %v2410_v56 }
0x15d0   :  { %v2432_v61 = vsel %vm2218_vm6, %v2416_v11, -inf }
0x15d1   :  { %2433 = vmax.xlane.f32.xlu0 %v2432_v61  ;;  %v2429_v63 = vsel %vm2218_vm6, %v2411_v59, -inf }
0x15d2   :  { %2430 = vmax.xlane.f32.xlu1 %v2429_v63  ;;  %v534_v63 = vmul.f32 %v5433_v6, %v5151_v15 }
0x15d5   :  { %1200 = vadd.xlane.f32.xlu0 %v1199_v41 }
0x15d6   :  { %1203 = vadd.xlane.f32.xlu1 %v1202_v3 }
0x165e   :  { %v2434_v40 = vpop.xlane.xlu0 %2433 }
0x165f   :  { %v2442_v42 = vsub.f32 %v2416_v11, %v2434_v40  ;;  %v2431_v45 = vpop.xlane.xlu1 %2430  ;;  %v4909_v11 = vmov 0.0  }
0x1660   :  { %v2441_v5 = vsub.f32 %v2411_v59, %v2431_v45  ;;  %4436 = vmatprep.mubr.msk.f32.mxu0 %vm4908_vm8, %v4909_v11  ;;  %4450 = vmatprep.mubr.msk.f32.mxu1 %vm4908_vm8, %v4909_v11 }
0x1661   :  { %v2447_v17 = vmul.f32 1.442695, %v2442_v42 }
0x1662   :  { %v2445_v18 = vmul.f32 1.442695, %v2441_v5  ;;  %v1201_v22 = vpop.xlane.xlu0 %1200 }
0x1663   :  { %4823 = vpow2.f32 %v2447_v17  ;;  %v1204_v58 = vpop.xlane.xlu1 %1203  ;;  %vm1213_vm3 = vcmp.eq.f32.partialorder %v1201_v22, inf  ;;  %v1216_v30 = vand.u32 2147483648, %v1201_v22  ;;  %vm1215_vm4 = vcmp.eq.f32.partialorder %v1201_v22, 0.0 }
0x1664   :  { %4825 = vpow2.f32 %v2445_v18  ;;  %vm1220_vm5 = vcmp.eq.f32.partialorder %v1204_v58, inf  ;;  %v1223_v31 = vand.u32 2147483648, %v1204_v58  ;;  %vm1222_vm7 = vcmp.eq.f32.partialorder %v1204_v58, 0.0 }
0x1665   :  { %4827 = vrsqrt.f32 %v1201_v22 }
0x1666   :  { %4829 = vrsqrt.f32 %v1204_v58 }
0x166d   :  { %v5509_v60 = vpop.eup %4823 }
0x166e   :  { %v5511_v24 = vpop.eup %4825  ;;  %v2456_v25 = vsel %vm2218_vm6, %v5509_v60, 0.0 }
0x166f   :  { %v4828_v26 = vpop.eup %4827  ;;  %2457 = vadd.xlane.f32.xlu1 %v2456_v25  ;;  %v2453_v28 = vsel %vm2218_vm6, %v5511_v24, 0.0 }
0x1670   :  { %v4830_v33 = vpop.eup %4829  ;;  %v1212_v29 = vmul.f32 %v4828_v26, %v1201_v22  ;;  %2454 = vadd.xlane.f32.xlu0 %v2453_v28 }
0x1671   :  { %v1219_v37 = vmul.f32 %v4830_v33, %v1204_v58 }
0x1672   :  { %v1214_v9 = vsel %vm1213_vm3, %v1201_v22, %v1212_v29 }
0x1673   :  { %v1217_v0 = vsel %vm1215_vm4, %v1216_v30, %v1214_v9  ;;  %v1221_v4 = vsel %vm1220_vm5, %v1204_v58, %v1219_v37 }
0x1674   :  { %v1239_v38 = vmax.f32 %v1217_v0, 1e-12  ;;  %v1224_v39 = vsel %vm1222_vm7, %v1223_v31, %v1221_v4  ;;  %v1197_v4 = vmul.f32 %v5295_v34, %v5295_v34 }
0x1675   :  { %v1240_v12 = vmax.f32 %v1224_v39, 1e-12  ;;  %v1198_v39 = vmul.f32 %v5292_v43, %v5292_v43 }
0x1676   :  { %4831 = vrcp.f32 %v1239_v38  ;;  %v1205_v38 = vsel %vm104_vm0, %v1197_v4, 0.0 }
0x1677   :  { %4833 = vrcp.f32 %v1240_v12  ;;  %v1208_v12 = vsel %vm104_vm0, %v1198_v39, 0.0 }
0x1680   :  { %v4832_v35 = vpop.eup %4831  ;;  %1261 = vrot.lane.b32.xlu1 %v936_v13, %s4905_s11  ;;  %v938_v13 = vmul.f32 %v5222_v36, %v5474_v21 }
0x1681   :  { %v4834_v47 = vpop.eup %4833  ;;  %v1244_v52 = vmul.f32 %v4832_v35, %v1177_v8  ;;  %v4645_v35 = vpack.c.bf16 %v5322_v49, %v5336_v51 }
0x1682   :  { %v1246_v50 = vmul.f32 %v4834_v47, %v1182_v2 }
0x1683   :  { %v1251_v53 = vmul.f32 %v1244_v52, %v5436_v20 }
0x1684   :  { %v1252_v44 = vmul.f32 %v1246_v50, %v5433_v6 }
0x1685   :  { %1275 = vrot.lane.b32.xlu1 %v1251_v53, %s4906_s3 }
0x1686   :  { %1259 = vrot.lane.b32.xlu0 %v935_v46, %s4905_s11 }
0x168a   :  { %1277 = vrot.lane.b32.xlu0 %v1252_v44, %s4906_s3 }
0x169f   :  { %v4431_v48 = vpop.f32.mrb[24].mxu1 }
0x16a0   :  { %v2420_v54 = vpop.f32.mrb[25].mxu1  ;;  %v2426_v32 = vadd.f32 %v4431_v48, %v5496_v55 }
0x16a1   :  { %v2421_v8 = vadd.f32 %v5496_v55, %v2420_v54 }
0x16a2   :  { %v2438_v57 = vsel %vm2218_vm6, %v2426_v32, -inf }
0x16a3   :  { %v2435_v2 = vsel %vm2218_vm6, %v2421_v8, -inf }
0x16a9   :  { %2436 = vmax.xlane.f32.xlu0 %v2435_v2 }
0x16ad   :  { %2439 = vmax.xlane.f32.xlu0 %v2438_v57 }
0x16fc   :  { %v2458_v56 = vpop.xlane.xlu1 %2457 }
0x16fd   :  { %4835 = vrcp.f32 %v2458_v56  ;;  %v2455_v59 = vpop.xlane.xlu0 %2454 }
0x16fe   :  { %4837 = vrcp.f32 %v2455_v59 }
0x1700   :  { %v1262_v61 = vpop.permute.xlu1 %1261 }
0x1701   :  { %v1260_v55 = vpop.permute.xlu0 %1259  ;;  %v1288_v3 = vsel %vm104_vm0, %v534_v63, %v1262_v61 }
0x1702   :  { %v1287_v1 = vsel %vm104_vm0, %v533_v62, %v1260_v55 }
0x1704   :  { %v1276_v41 = vpop.permute.xlu1 %1275 }
0x1705   :  { %v1292_v40 = vsel %vm1291_vm1, %v1287_v1, %v1276_v41  ;;  %v1278_v42 = vpop.permute.xlu0 %1277 }
0x1706   :  { %v1297_v45 = vsel %vm1296_vm9, %v1292_v40, -inf  ;;  %v1293_v5 = vsel %vm1291_vm1, %v1288_v3, %v1278_v42 }
0x1707   :  { %v4836_v17 = vpop.eup %4835  ;;  %v1298_v18 = vsel %vm1296_vm9, %v1293_v5, -inf  ;;  %v4642_v10 = vpack.c.bf16 %v1293_v5, %v1292_v40 }
0x1708   :  { %v4838_v22 = vpop.eup %4837  ;;  %v5547_v58 = vmax.f32 %v1297_v45, %v1298_v18  ;;  %v2468_v15 = vmul.f32 %v4836_v17, %v5509_v60 }
0x1709   :  { %4643 = vmatpush3.bf16.msra.mxu0 %v4642_v10  ;;  %v2466_v25 = vmul.f32 %v4838_v22, %v5511_v24  ;;  %v937_v10 = vmul.f32 %v5218_v23, %v5470_v14 }
0x170a   :  { %v2474_v26 = vmul.f32 %v2468_v15, %v5433_v6  ;;  %4644 = vmatprep.subr.bf16.mxu0 %v4907_v27 }
0x170b   :  { %v2473_v28 = vmul.f32 %v2466_v25, %v5436_v20 }
0x170d   :  { %2477 = vxpose.xlu1.b32.start [1/2] (short) (narrow) %v2473_v28, 8  ;;  %v4648_v33 = vpack.c.bf16 %v2474_v26, %v2473_v28 }
0x170f   :  { %4649 = vmatpush3.bf16.msra.mxu1 %v4648_v33 }
0x1710   :  { %4653 = vmatprep.subr.bf16.mxu1 %v4907_v27 }
0x1711   :  { %2478 = vxpose.xlu1.b32.end [2/2] (short) (narrow) %v2474_v26, 8 }
0x1736   :  { %v2437_v29 = vpop.xlane.xlu0 %2436 }
0x1737   :  { %v2443_v30 = vsub.f32 %v2421_v8, %v2437_v29  ;;  %v536_v29 = vmul.f32 %v5474_v21, %v5153_v16 }
0x1739   :  { %v2449_v37 = vmul.f32 1.442695, %v2443_v30 }
0x173a   :  { %v2440_v9 = vpop.xlane.xlu0 %2439 }
0x173b   :  { %4839 = vpow2.f32 %v2449_v37  ;;  %v2444_v60 = vsub.f32 %v2426_v32, %v2440_v9  ;;  %v535_v9 = vmul.f32 %v5470_v14, %v5157_v19 }
0x173d   :  { %v2451_v31 = vmul.f32 1.442695, %v2444_v60 }
0x173f   :  { %4841 = vpow2.f32 %v2451_v31 }
0x1745   :  { %v4840_v24 = vpop.eup %4839 }
0x1746   :  { %v2459_v6 = vsel %vm2218_vm6, %v4840_v24, 0.0 }
0x1747   :  { %2460 = vadd.xlane.f32.xlu0 %v2459_v6 }
0x1749   :  { %v4842_v0 = vpop.eup %4841 }
0x174a   :  { %v2462_v20 = vsel %vm2218_vm6, %v4842_v0, 0.0 }
0x174b   :  { %2463 = vadd.xlane.f32.xlu0 %v2462_v20 }
0x174f   :  { %1206 = vadd.xlane.f32.xlu0 %v1205_v38 }
0x1753   :  { %1209 = vadd.xlane.f32.xlu0 %v1208_v12 }
0x1769   :  { %1265 = vrot.lane.b32.xlu0 %v938_v13, %s4905_s11 }
0x178d   :  { %v2493_v47 = vpop.trf.xlu1 }
0x178e   :  { %4437 = vmatmul.mubr.msk.f32.vlgmr.msra.gmra.mrb[22].mxu0 %vm104_vm0, %v2493_v47 }
0x178f   :  { %4646 = vmatpush3.bf16.msra.mxu0 %v4645_v35  ;;  %4443 = vmatprep.mubr.msk.f32.mxu0 %vm4908_vm8, %v4909_v11 }
0x1790   :  { %4650 = vmatprep.subr.bf16.mxu0 %v4907_v27 }
0x1792   :  { %4444 = vmatmul.mubr.msk.f32.vlgmr.msra.gmra.mrb[24].mxu0 %vm104_vm0, %v2493_v47 }
0x1793   :  { %4457 = vmatprep.mubr.msk.f32.mxu0 %vm4908_vm8, %v4909_v11 }
0x17d4   :  { %v2461_v36 = vpop.xlane.xlu0 %2460 }
0x17d5   :  { %4843 = vrcp.f32 %v2461_v36 }
0x17d8   :  { %v2464_v52 = vpop.xlane.xlu0 %2463 }
0x17d9   :  { %4845 = vrcp.f32 %v2464_v52 }
0x17dc   :  { %v1207_v53 = vpop.xlane.xlu0 %1206 }
0x17dd   :  { %4847 = vrsqrt.f32 %v1207_v53  ;;  %vm1227_vm10 = vcmp.eq.f32.partialorder %v1207_v53, inf  ;;  %v1230_v57 = vand.u32 2147483648, %v1207_v53  ;;  %vm1229_vm12 = vcmp.eq.f32.partialorder %v1207_v53, 0.0 }
0x17df   :  { %v4844_v49 = vpop.eup %4843 }
0x17e0   :  { %v1210_v51 = vpop.xlane.xlu0 %1209  ;;  %v2470_v46 = vmul.f32 %v4844_v49, %v4840_v24 }
0x17e1   :  { %4849 = vrsqrt.f32 %v1210_v51  ;;  %vm1234_vm13 = vcmp.eq.f32.partialorder %v1210_v51, inf  ;;  %v1237_v63 = vand.u32 2147483648, %v1210_v51  ;;  %vm1236_vm14 = vcmp.eq.f32.partialorder %v1210_v51, 0.0 }
0x17e2   :  { %v5576_v50 = vmul.f32 %v2470_v46, %v5470_v14 }
0x17e3   :  { %v4846_v44 = vpop.eup %4845 }
0x17e4   :  { %2725 = vxpose.xlu1.b32.start [1/2] (short) (narrow) %v5576_v50, 8  ;;  %v2472_v48 = vmul.f32 %v4846_v44, %v4842_v0  ;;  %v1266_v23 = vpop.permute.xlu0 %1265 }
0x17e5   :  { %v1290_v37 = vsel %vm104_vm0, %v536_v29, %v1266_v23 }
0x17e6   :  { %v5580_v54 = vmul.f32 %v2472_v48, %v5474_v21 }
0x17e7   :  { %v4848_v8 = vpop.eup %4847 }
0x17e8   :  { %v1226_v32 = vmul.f32 %v4848_v8, %v1207_v53  ;;  %2726 = vxpose.xlu1.b32.end [2/2] (short) (narrow) %v5580_v54, 8  ;;  %v4657_v2 = vpack.c.bf16 %v5580_v54, %v5576_v50 }
0x17ea   :  { %v1228_v56 = vsel %vm1227_vm10, %v1207_v53, %v1226_v32  ;;  %v2977_v32 = vld [vmem:[%s5887_s9] sm:$0xff] }
0x17eb   :  { %v4850_v59 = vpop.eup %4849  ;;  %v1231_v61 = vsel %vm1229_vm12, %v1230_v57, %v1228_v56  ;;  %v2979_v57 = vld [vmem:[%s5887_s9 + $0x10] sm:$0xff] }
0x17ec   :  { %v1241_v55 = vmax.f32 %v1231_v61, 1e-12  ;;  %v1233_v62 = vmul.f32 %v4850_v59, %v1210_v51  ;;  %v2980_v59 = vld [vmem:[%s5887_s9 + $0x18] sm:$0xff] }
0x17ed   :  { %v4663_v61 = vpack.c.bf16 %v2980_v59, %v2979_v57 }
0x17ee   :  { %4851 = vrcp.f32 %v1241_v55  ;;  %v1235_v1 = vsel %vm1234_vm13, %v1210_v51, %v1233_v62 }
0x17ef   :  { %v1238_v41 = vsel %vm1236_vm14, %v1237_v63, %v1235_v1  ;;  %vm3836_vm14 = vcmask 392196  }
0x17f0   :  { %v1242_v3 = vmax.f32 %v1238_v41, 1e-12  ;;  %v2981_v41 = vld [vmem:[%s5887_s9 + $0x20] sm:$0xff] }
0x17f2   :  { %4853 = vrcp.f32 %v1242_v3  ;;  %v2982_v3 = vld [vmem:[%s5887_s9 + $0x28] sm:$0xff] }
0x17f8   :  { %v4852_v40 = vpop.eup %4851 }
0x17f9   :  { %v1248_v42 = vmul.f32 %v4852_v40, %v5295_v34  ;;  %v4879_v34 = vld [vmem:[%s5882_s0 + $0x18] sm:$0xff]  ;;  %v4666_v40 = vpack.c.bf16 %v2982_v3, %v2981_v41  ;;  %v4130_v41 = vld [vmem:[%s5890_s30] ss:$0 sm:$0xff]  ;;  %s4044_s30 = sshll.u32 %s4911_s16, 4  ;;  %s4045_s30 = int_to_ptr.vmem [resolvable:$true] %s4044_s30 }
0x17fa   :  { %v4654_v25 = vpack.c.bf16 %v4879_v34, %v5396_v7  ;;  %v1300_v7 = vrot.slane %v5547_v58, 4  ;;  %p4885_p1 = scmp.lt.s32.totalorder %s4045_s30, %s4045_s30 }
0x17fb   :  { %v1253_v45 = vmul.f32 %v1248_v42, %v5470_v14 }
0x17fc   :  { %v4854_v5 = vpop.eup %4853  ;;  %v1301_v60 = vmax.f32 %v5547_v58, %v1300_v7 }
0x17fd   :  { %1279 = vrot.lane.b32.xlu0 %v1253_v45, %s4906_s3  ;;  %v1250_v17 = vmul.f32 %v4854_v5, %v5292_v43 }
0x17ff   :  { %v1254_v18 = vmul.f32 %v1250_v17, %v5474_v21  ;;  %v1302_v21 = vrot.slane %v1301_v60, 2 }
0x1801   :  { %1281 = vrot.lane.b32.xlu0 %v1254_v18, %s4906_s3  ;;  %v1303_v19 = vmax.f32 %v1301_v60, %v1302_v21  ;;  %v4124_v18 = vld [vmem:[%s5888_s21] ss:$0 sm:$0xff] }
0x1803   :  { %v1304_v12 = vrot.slane %v1303_v19, 1 }
0x1805   :  { %v1305_v47 = vmax.f32 %v1303_v19, %v1304_v12 }
0x1806   :  { %1263 = vrot.lane.b32.xlu1 %v937_v10, %s4905_s11 }
0x1861   :  { %v2578_v22 = vpop.f32.mrb[22].mxu0 }
0x1862   :  { %v4438_v15 = vpop.f32.mrb[23].mxu0 }
0x1864   :  { %v2741_v43 = vpop.trf.xlu1 }
0x1865   :  { %v2648_v26 = vpop.f32.mrb[24].mxu0 }
0x1866   :  { %v4445_v28 = vpop.f32.mrb[25].mxu0  ;;  %4451 = vmatmul.mubr.msk.f32.vlgmr.msra.gmra.mrb[26].mxu1 %vm104_vm0, %v2648_v26 }
0x1867   :  { %4655 = vmatpush3.bf16.msra.mxu1 %v4654_v25  ;;  %4464 = vmatprep.mubr.msk.f32.mxu1 %vm4908_vm8, %v4909_v11 }
0x1868   :  { %4474 = vmatprep.subr.mxu1 %v4909_v11 }
0x186a   :  { %4465 = vmatmul.mubr.msk.f32.vlgmr.msra.gmra.mrb[28].mxu1 %vm104_vm0, %v2741_v43 }
0x186b   :  { %4476 = vmatprep.mubr.msk.f32.mxu1 %vm4908_vm8, %v4909_v11 }
0x186f   :  { %v1280_v33 = vpop.permute.xlu0 %1279 }
0x1873   :  { %v1282_v30 = vpop.permute.xlu0 %1281 }
0x1874   :  { %v1295_v31 = vsel %vm1291_vm1, %v1290_v37, %v1282_v30 }
0x1875   :  { %v1307_v20 = vsel %vm1296_vm9, %v1295_v31, -inf }
0x1878   :  { %v1264_v24 = vpop.permute.xlu1 %1263 }
0x1879   :  { %v1289_v6 = vsel %vm104_vm0, %v535_v9, %v1264_v24 }
0x187a   :  { %v1294_v0 = vsel %vm1291_vm1, %v1289_v6, %v1280_v33 }
0x187b   :  { %v1306_v4 = vsel %vm1296_vm9, %v1294_v0, -inf  ;;  %v4651_v16 = vpack.c.bf16 %v1295_v31, %v1294_v0 }
0x187c   :  { %v1308_v38 = vmax.f32 %v1306_v4, %v1307_v20 }
0x187d   :  { %4652 = vmatpush3.bf16.msra.mxu0 %v4651_v16 }
0x187e   :  { %v1309_v39 = vrot.slane %v1308_v38, 4  ;;  %4656 = vmatprep.subr.bf16.mxu0 %v4907_v27 }
0x1880   :  { %v1310_v14 = vmax.f32 %v1308_v38, %v1309_v39  ;;  %4458 = vmatmul.mubr.msk.f32.vlgmr.msra.gmra.mrb[26].mxu0 %vm104_vm0, %v2741_v43 }
0x1881   :  { %4658 = vmatpush3.bf16.msra.mxu0 %v4657_v2  ;;  %4471 = vmatprep.mubr.msk.f32.mxu0 %vm4908_vm8, %v4909_v11  ;;  %v2978_v2 = vld [vmem:[%s5887_s9 + $0x8] sm:$0xff] }
0x1882   :  { %v1311_v58 = vrot.slane %v1310_v14, 2  ;;  %4479 = vmatprep.subr.mxu0 %v4909_v11  ;;  %v4660_v56 = vpack.c.bf16 %v2978_v2, %v2977_v32  ;;  %v3280_v32 = vld [vmem:[%s5889_s4] sm:$0xff]  ;;  %v3281_v2 = vld [vmem:[%s5889_s4 + $0x8] sm:$0xff] }
0x1883   :  { %v4669_v57 = vpack.c.bf16 %v3281_v2, %v3280_v32  ;;  %v4136_v2 = vld [vmem:[%s5892_s20] ss:$0 sm:$0xff] }
0x1884   :  { %v1312_v13 = vmax.f32 %v1310_v14, %v1311_v58 }
0x1886   :  { %v1313_v35 = vrot.slane %v1312_v13, 1 }
0x1888   :  { %v1314_v36 = vmax.f32 %v1312_v13, %v1313_v35 }
0x188a   :  { %v5626_v52 = vsel %vm1315_vm15, %v1305_v47, %v1314_v36 }
0x1939   :  { %v5628_v53 = vpop.f32.mrb[26].mxu1 }
0x193a   :  { %v4452_v49 = vpop.f32.mrb[27].mxu1 }
0x193d   :  { %v2896_v51 = vpop.f32.mrb[28].mxu1 }
0x193e   :  { %4472 = vmatmul.mubr.msk.f32.vlgmr.msra.gmra.mrb[28].mxu0 %vm104_vm0, %v2896_v51  ;;  %v4466_v46 = vpop.f32.mrb[29].mxu1 }
0x193f   :  { %4481 = vmatprep.mubr.msk.f32.mxu0 %vm4908_vm8, %v4909_v11 }
0x1953   :  { %v2826_v50 = vpop.f32.mrb[26].mxu0 }
0x1954   :  { %v2974_v44 = vrot.slane %v2826_v50, 4  ;;  %v4459_v48 = vpop.f32.mrb[27].mxu0 }
0x1956   :  { %v2976_v54 = vsel %vm2340_vm11, %v2578_v22, %v2974_v44 }
0x1957   :  { %v3060_v8 = vrot.slane %v2976_v54, 4  ;;  %4475 = vmatpush3.msk.msra.mxu1 %vm2340_vm11, %v2976_v54 }
0x1958   :  { %4477 = vmatmul.mubr.msk.f32.vlgmr.msra.gmra.mrb[30].mxu1 %vm2218_vm6, %v5628_v53  ;;  %4659 = vmatprep.subr.bf16.mxu1 %v4907_v27 }
0x1959   :  { %4480 = vmatpush3.msk.msra.mxu0 %vm2340_vm11, %v3060_v8  ;;  %4496 = vmatprep.mubr.msk.f32.mxu1 %vm4908_vm8, %v4909_v11 }
0x195a   :  { %4499 = vmatprep.subr.mxu0 %v4909_v11  ;;  %4661 = vmatpush3.bf16.msra.mxu1 %v4660_v56 }
0x195b   :  { %4662 = vmatprep.subr.bf16.mxu1 %v4907_v27 }
0x195e   :  { %4664 = vmatpush3.bf16.msra.mxu1 %v4663_v61 }
0x195f   :  { %4665 = vmatprep.subr.bf16.mxu1 %v4907_v27 }
0x1962   :  { %4667 = vmatpush3.bf16.msra.mxu1 %v4666_v40 }
0x1963   :  { %4516 = vmatprep.subr.mxu1 %v4909_v11 }
0x1a11   :  { %v5656_v55 = vpop.f32.mrb[28].mxu0 }
0x1a12   :  { %4482 = vmatmul.mubr.msk.f32.vlgmr.msra.gmra.mrb[30].mxu0 %vm2218_vm6, %v5656_v55  ;;  %v4473_v62 = vpop.f32.mrb[29].mxu0 }
0x1a13   :  { %4501 = vmatprep.mubr.msk.f32.mxu0 %vm4908_vm8, %v4909_v11 }
0x1a2b   :  { %v3056_v63 = vpop.f32.mrb[30].mxu1 }
0x1a2c   :  { %v4478_v1 = vpop.f32.mrb[31].mxu1 }
0x1ae5   :  { %v3132_v42 = vpop.f32.mrb[30].mxu0 }
0x1ae6   :  { %v3137_v45 = vrot.slane %v3132_v42, 4  ;;  %v4483_v5 = vpop.f32.mrb[31].mxu0 }
0x1ae8   :  { %v3139_v17 = vsel %vm2340_vm11, %v3056_v63, %v3137_v45 }
0x1ae9   :  { %4497 = vmatmul.mubr.msk.f32.vlgmr.msra.gmra.mrb[32].mxu1 %vm1296_vm9, %v3139_v17 }
0x1aea   :  { %4518 = vmatprep.mubr.msk.f32.mxu1 %vm4908_vm8, %v4909_v11 }
0x1bbc   :  { %v3215_v10 = vpop.f32.mrb[32].mxu1 }
0x1bbd   :  { %v3216_v22 = vadd.f32 %v4124_v18, %v3215_v10  ;;  %v4498_v15 = vpop.f32.mrb[33].mxu1 }
0x1bbf   :  { %v3219_v34 = vmul.f32 %v3216_v22, %v3216_v22 }
0x1bc1   :  { %v3220_v25 = vsel %vm104_vm0, %v3219_v34, 0.0 }
0x1bc2   :  { %3221 = vadd.xlane.f32.xlu1 %v3220_v25 }
0x1c4f   :  { %v3222_v26 = vpop.xlane.xlu1 %3221 }
0x1c50   :  { %4855 = vrsqrt.f32 %v3222_v26  ;;  %vm3225_vm2 = vcmp.eq.f32.partialorder %v3222_v26, inf  ;;  %v3228_v23 = vand.u32 2147483648, %v3222_v26  ;;  %vm3227_vm3 = vcmp.eq.f32.partialorder %v3222_v26, 0.0 }
0x1c5a   :  { %v4856_v28 = vpop.eup %4855 }
0x1c5b   :  { %v3224_v43 = vmul.f32 %v4856_v28, %v3222_v26 }
0x1c5d   :  { %v3226_v33 = vsel %vm3225_vm2, %v3222_v26, %v3224_v43 }
0x1c5e   :  { %v3229_v7 = vsel %vm3227_vm3, %v3228_v23, %v3226_v33 }
0x1c5f   :  { %v3230_v29 = vmax.f32 %v3229_v7, 1e-12 }
0x1c61   :  { %4857 = vrcp.f32 %v3230_v29 }
0x1c6b   :  { %v4858_v30 = vpop.eup %4857 }
0x1c6c   :  { %v3232_v37 = vmul.f32 %v4858_v30, %v3216_v22 }
0x1c6e   :  { %v3233_v9 = vmax.f32 %v3232_v37, 0.0 }
0x1c70   :  { %v3234_v60 = vsel %vm104_vm0, %v3233_v9, 0.0 }
0x1c71   :  { %3235 = vadd.xlane.f32.xlu0 %v3234_v60 }
0x1cfe   :  { %v3236_v31 = vpop.xlane.xlu0 %3235 }
0x1cff   :  { %v3238_v24 = vrot.slane %v3236_v31, 4 }
0x1d01   :  { %v3240_v6 = vadd.f32 %v3238_v24, %v3236_v31 }
0x1d03   :  { %v3241_v0 = vmul.f32 0.03125, %v3240_v6 }
0x1d05   :  { %v3243_v20 = vrot.slane %v3241_v0, 4 }
0x1d07   :  { %v3245_v4 = vsel %vm2340_vm11, %v3241_v0, %v3243_v20 }
0x1d08   :  { %3248 = vperm.xlu0 %4709, %v3245_v4  }
0x1d87   :  { %v3249_v16 = vpop.permute.xlu0 %3248 }
0x1d88   :  { %v3251_v21 = vsub.f32 %v3233_v9, %v3249_v16 }
0x1d8a   :  { %v3252_v38 = vmul.f32 %v3251_v21, %v3251_v21 }
0x1d8c   :  { %v3253_v39 = vsel %vm104_vm0, %v3252_v38, 0.0 }
0x1d8d   :  { %3254 = vadd.xlane.f32.xlu1 %v3253_v39 }
0x1e1a   :  { %v3255_v19 = vpop.xlane.xlu1 %3254 }
0x1e1b   :  { %v3257_v14 = vrot.slane %v3255_v19, 4 }
0x1e1d   :  { %v3259_v58 = vadd.f32 %v3257_v14, %v3255_v19 }
0x1e1f   :  { %v3260_v12 = vmul.f32 0.03125, %v3259_v58 }
0x1e21   :  { %v3262_v13 = vrot.slane %v3260_v12, 4 }
0x1e23   :  { %v3264_v35 = vsel %vm2340_vm11, %v3260_v12, %v3262_v13 }
0x1e24   :  { %v3265_v47 = vadd.f32 1e-05, %v3264_v35 }
0x1e26   :  { %4859 = vrsqrt.f32 %v3265_v47  ;;  %vm3268_vm4 = vcmp.eq.f32.partialorder %v3265_v47, inf  ;;  %v3271_v51 = vand.u32 2147483648, %v3265_v47  ;;  %vm3270_vm5 = vcmp.eq.f32.partialorder %v3265_v47, 0.0 }
0x1e30   :  { %v4860_v36 = vpop.eup %4859 }
0x1e31   :  { %v3267_v49 = vmul.f32 %v4860_v36, %v3265_v47 }
0x1e33   :  { %v3269_v46 = vsel %vm3268_vm4, %v3265_v47, %v3267_v49 }
0x1e34   :  { %v3272_v50 = vsel %vm3270_vm5, %v3271_v51, %v3269_v46  ;;  %v3573_v51 = vld [vmem:[%s5891_s22] sm:$0xff] }
0x1e35   :  { %3275 = vperm.xlu1 %4710, %v3272_v50  }
0x1eb4   :  { %v3276_v44 = vpop.permute.xlu1 %3275 }
0x1eb5   :  { %4861 = vrcp.f32 %v3276_v44 }
0x1ebf   :  { %v4862_v48 = vpop.eup %4861 }
0x1ec0   :  { %v5681_v54 = vmul.f32 %v4862_v48, %v3251_v21 }
0x1ec2   :  { %4500 = vmatpush3.msk.msra.mxu0 %vm2340_vm11, %v5681_v54  ;;  %v3356_v8 = vrot.slane %v5681_v54, 4 }
0x1ec3   :  { %4502 = vmatmul.mubr.msk.f32.vlgmr.msra.gmra.mrb[32].mxu0 %vm2218_vm6, %v5628_v53  ;;  %4504 = vmatprep.subr.mxu0 %v4909_v11 }
0x1ec4   :  { %4505 = vmatpush3.msk.msra.mxu0 %vm2340_vm11, %v3356_v8  ;;  %4506 = vmatprep.mubr.msk.f32.mxu0 %vm4908_vm8, %v4909_v11 }
0x1ec5   :  { %4668 = vmatprep.subr.bf16.mxu0 %v4907_v27 }
0x1ec7   :  { %4507 = vmatmul.mubr.msk.f32.vlgmr.msra.gmra.mrb[34].mxu0 %vm2218_vm6, %v5656_v55 }
0x1ec8   :  { %4513 = vmatprep.mubr.msk.f32.mxu0 %vm4908_vm8, %v4909_v11  ;;  %4670 = vmatpush3.bf16.msra.mxu0 %v4669_v57 }
0x1ec9   :  { %4521 = vmatprep.subr.mxu0 %v4909_v11 }
0x1f96   :  { %v3352_v56 = vpop.f32.mrb[32].mxu0 }
0x1f97   :  { %v4503_v59 = vpop.f32.mrb[33].mxu0 }
0x1f9a   :  { %v3425_v61 = vpop.f32.mrb[34].mxu0 }
0x1f9b   :  { %v3430_v62 = vrot.slane %v3425_v61, 4  ;;  %v4508_v63 = vpop.f32.mrb[35].mxu0 }
0x1f9d   :  { %v3432_v1 = vsel %vm2340_vm11, %v3352_v56, %v3430_v62 }
0x1f9e   :  { %4514 = vmatmul.mubr.msk.f32.vlgmr.msra.gmra.mrb[36].mxu0 %vm104_vm0, %v3432_v1 }
0x1f9f   :  { %4523 = vmatprep.mubr.msk.f32.mxu0 %vm4908_vm8, %v4909_v11 }
0x2071   :  { %v3508_v3 = vpop.f32.mrb[36].mxu0 }
0x2072   :  { %v3509_v40 = vadd.f32 %v4130_v41, %v3508_v3  ;;  %v4515_v42 = vpop.f32.mrb[37].mxu0 }
0x2074   :  { %v3512_v45 = vmul.f32 %v3509_v40, %v3509_v40 }
0x2076   :  { %v3513_v5 = vsel %vm104_vm0, %v3512_v45, 0.0 }
0x2077   :  { %3514 = vadd.xlane.f32.xlu0 %v3513_v5 }
0x2104   :  { %v3515_v17 = vpop.xlane.xlu0 %3514 }
0x2105   :  { %4863 = vrsqrt.f32 %v3515_v17  ;;  %vm3518_vm7 = vcmp.eq.f32.partialorder %v3515_v17, inf  ;;  %v3521_v22 = vand.u32 2147483648, %v3515_v17  ;;  %vm3520_vm10 = vcmp.eq.f32.partialorder %v3515_v17, 0.0 }
0x210f   :  { %v4864_v18 = vpop.eup %4863 }
0x2110   :  { %v3517_v10 = vmul.f32 %v4864_v18, %v3515_v17  ;;  %v3850_v18 = vld [vmem:[%s5859_s25] sm:$0xff] }
0x2112   :  { %v3519_v15 = vsel %vm3518_vm7, %v3515_v17, %v3517_v10  ;;  %v3851_v10 = vld [vmem:[%s5859_s25 + $0x8] sm:$0xff] }
0x2113   :  { %v3522_v34 = vsel %vm3520_vm10, %v3521_v22, %v3519_v15  ;;  %v3852_v22 = vld [vmem:[%s5859_s25 + $0x10] sm:$0xff]  ;;  %v4675_v15 = vpack.c.bf16 %v3851_v10, %v3850_v18 }
0x2114   :  { %v3523_v25 = vmax.f32 %v3522_v34, 1e-12  ;;  %v3853_v34 = vld [vmem:[%s5859_s25 + $0x18] sm:$0xff] }
0x2116   :  { %4865 = vrcp.f32 %v3523_v25  ;;  %v4678_v25 = vpack.c.bf16 %v3853_v34, %v3852_v22 }
0x2120   :  { %v4866_v26 = vpop.eup %4865 }
0x2121   :  { %v3525_v28 = vmul.f32 %v4866_v26, %v3509_v40  ;;  %v3854_v26 = vld [vmem:[%s5859_s25 + $0x20] sm:$0xff] }
0x2123   :  { %v3526_v43 = vmax.f32 %v3525_v28, 0.0  ;;  %v3855_v28 = vld [vmem:[%s5859_s25 + $0x28] sm:$0xff] }
0x2125   :  { %v3527_v23 = vsel %vm104_vm0, %v3526_v43, 0.0 }
0x2126   :  { %3528 = vadd.xlane.f32.xlu1 %v3527_v23  ;;  %v3856_v23 = vld [vmem:[%s5859_s25 + $0x30] sm:$0xff] }
0x21b3   :  { %v3529_v33 = vpop.xlane.xlu1 %3528 }
0x21b4   :  { %v3531_v7 = vrot.slane %v3529_v33, 4 }
0x21b6   :  { %v3533_v29 = vadd.f32 %v3531_v7, %v3529_v33  ;;  %v3857_v33 = vld [vmem:[%s5859_s25 + $0x38] sm:$0xff] }
0x21b7   :  { %v4684_v7 = vpack.c.bf16 %v3857_v33, %v3856_v23 }
0x21b8   :  { %v3534_v30 = vmul.f32 0.03125, %v3533_v29  ;;  %v3858_v29 = vld [vmem:[%s5859_s25 + $0x40] sm:$0xff] }
0x21ba   :  { %v3536_v37 = vrot.slane %v3534_v30, 4 }
0x21bc   :  { %v3538_v9 = vsel %vm2340_vm11, %v3534_v30, %v3536_v37  ;;  %v3859_v30 = vld [vmem:[%s5859_s25 + $0x48] sm:$0xff] }
0x21bd   :  { %3541 = vperm.xlu0 %4709, %v3538_v9   ;;  %v4687_v37 = vpack.c.bf16 %v3859_v30, %v3858_v29  ;;  %v3860_v9 = vld [vmem:[%s5859_s25 + $0x50] sm:$0xff] }
0x223c   :  { %v3542_v60 = vpop.permute.xlu0 %3541 }
0x223d   :  { %v3544_v31 = vsub.f32 %v3526_v43, %v3542_v60  ;;  %v4681_v43 = vpack.c.bf16 %v3855_v28, %v3854_v26  ;;  %v3861_v60 = vld [vmem:[%s5859_s25 + $0x58] sm:$0xff] }
0x223f   :  { %v3545_v24 = vmul.f32 %v3544_v31, %v3544_v31 }
0x2241   :  { %v3546_v6 = vsel %vm104_vm0, %v3545_v24, 0.0 }
0x2242   :  { %3547 = vadd.xlane.f32.xlu1 %v3546_v6 }
0x22cf   :  { %v3548_v0 = vpop.xlane.xlu1 %3547 }
0x22d0   :  { %v3550_v20 = vrot.slane %v3548_v0, 4 }
0x22d2   :  { %v3552_v4 = vadd.f32 %v3550_v20, %v3548_v0 }
0x22d4   :  { %v3553_v16 = vmul.f32 0.03125, %v3552_v4 }
0x22d6   :  { %v3555_v21 = vrot.slane %v3553_v16, 4 }
0x22d8   :  { %v3557_v38 = vsel %vm2340_vm11, %v3553_v16, %v3555_v21 }
0x22d9   :  { %v3558_v39 = vadd.f32 1e-05, %v3557_v38 }
0x22db   :  { %4867 = vrsqrt.f32 %v3558_v39  ;;  %vm3561_vm12 = vcmp.eq.f32.partialorder %v3558_v39, inf  ;;  %v3564_v58 = vand.u32 2147483648, %v3558_v39  ;;  %vm3563_vm13 = vcmp.eq.f32.partialorder %v3558_v39, 0.0 }
0x22e5   :  { %v4868_v19 = vpop.eup %4867 }
0x22e6   :  { %v3560_v14 = vmul.f32 %v4868_v19, %v3558_v39  ;;  %v3864_v19 = vld [vmem:[%s5860_s26 + $0x8] sm:$0xff] }
0x22e8   :  { %v3562_v12 = vsel %vm3561_vm12, %v3558_v39, %v3560_v14  ;;  %v3863_v39 = vld [vmem:[%s5860_s26] sm:$0xff]  ;;  %v3865_v14 = vld [vmem:[%s5860_s26 + $0x10] sm:$0xff] }
0x22e9   :  { %v3565_v13 = vsel %vm3563_vm13, %v3564_v58, %v3562_v12  ;;  %v4693_v12 = vpack.c.bf16 %v3864_v19, %v3863_v39 }
0x22ea   :  { %3568 = vperm.xlu1 %4710, %v3565_v13   ;;  %v3866_v13 = vld [vmem:[%s5860_s26 + $0x18] sm:$0xff] }
0x2369   :  { %v3569_v35 = vpop.permute.xlu1 %3568 }
0x236a   :  { %4869 = vrcp.f32 %v3569_v35 }
0x2374   :  { %v4870_v47 = vpop.eup %4869 }
0x2375   :  { %v3572_v36 = vmul.f32 %v4870_v47, %v3544_v31  ;;  %v4690_v31 = vpack.c.bf16 %v3861_v60, %v3860_v9 }
0x2377   :  { %3819 = vrot.lane.b32.xlu1 %v3572_v36, %s4905_s11  ;;  %4517 = vmatpush3.msk.msra.mxu1 %vm2340_vm11, %v3572_v36  ;;  %v3649_v49 = vrot.slane %v3572_v36, 4  ;;  %v4696_v36 = vpack.c.bf16 %v3866_v13, %v3865_v14 }
0x2378   :  { %4519 = vmatmul.mubr.msk.f32.vlgmr.msra.gmra.mrb[34].mxu1 %vm2218_vm6, %v5628_v53  ;;  %4671 = vmatprep.subr.bf16.mxu1 %v4907_v27  ;;  %v3574_v53 = vld [vmem:[%s5891_s22 + $0x8] sm:$0xff] }
0x2379   :  { %4522 = vmatpush3.msk.msra.mxu0 %vm2340_vm11, %v3649_v49  ;;  %4530 = vmatprep.mubr.msk.f32.mxu1 %vm4908_vm8, %v4909_v11  ;;  %v4672_v46 = vpack.c.bf16 %v3574_v53, %v3573_v51 }
0x237a   :  { %4524 = vmatmul.mubr.msk.f32.vlgmr.msra.gmra.mrb[38].mxu0 %vm2218_vm6, %v5656_v55  ;;  %4674 = vmatprep.subr.bf16.mxu0 %v4907_v27 }
0x237b   :  { %4557 = vmatprep.mubr.msk.f32.mxu0 %vm4908_vm8, %v4909_v11  ;;  %4673 = vmatpush3.bf16.msra.mxu1 %v4672_v46 }
0x237c   :  { %4692 = vmatprep.subr.bf16.mxu1 %v4907_v27  ;;  %4676 = vmatpush3.bf16.msra.mxu0 %v4675_v15 }
0x237d   :  { %4677 = vmatprep.subr.bf16.mxu0 %v4907_v27 }
0x2380   :  { %4679 = vmatpush3.bf16.msra.mxu0 %v4678_v25 }
0x2381   :  { %4680 = vmatprep.subr.bf16.mxu0 %v4907_v27 }
0x2384   :  { %4682 = vmatpush3.bf16.msra.mxu0 %v4681_v43 }
0x2385   :  { %4683 = vmatprep.subr.bf16.mxu0 %v4907_v27 }
0x2388   :  { %4685 = vmatpush3.bf16.msra.mxu0 %v4684_v7 }
0x2389   :  { %4686 = vmatprep.subr.bf16.mxu0 %v4907_v27 }
0x238c   :  { %4688 = vmatpush3.bf16.msra.mxu0 %v4687_v37 }
0x238d   :  { %4689 = vmatprep.subr.bf16.mxu0 %v4907_v27 }
0x2390   :  { %4691 = vmatpush3.bf16.msra.mxu0 %v4690_v31 }
0x23e9   :  { %v3820_v24 = vpop.permute.xlu1 %3819 }
0x23ea   :  { %v3826_v6 = vsel %vm104_vm0, %v5681_v54, %v3820_v24 }
0x244b   :  { %v3645_v50 = vpop.f32.mrb[34].mxu1 }
0x244c   :  { %v4520_v44 = vpop.f32.mrb[35].mxu1 }
0x244d   :  { %v3718_v55 = vpop.f32.mrb[38].mxu0 }
0x244e   :  { %v3723_v48 = vrot.slane %v3718_v55, 4  ;;  %v4525_v8 = vpop.f32.mrb[39].mxu0 }
0x2450   :  { %v3725_v32 = vsel %vm2340_vm11, %v3645_v50, %v3723_v48 }
0x2451   :  { %4531 = vmatmul.mubr.msk.f32.vlgmr.msra.gmra.mrb[36].mxu1 %vm104_vm0, %v3725_v32  ;;  %v3867_v32 = vld [vmem:[%s5860_s26 + $0x20] sm:$0xff] }
0x2452   :  { %4574 = vmatprep.mubr.msk.f32.mxu1 %vm4908_vm8, %v4909_v11  ;;  %vm3828_vm8 = vcmask 388096   ;;  %4694 = vmatpush3.bf16.msra.mxu1 %v4693_v12 }
0x2453   :  { %4695 = vmatprep.subr.bf16.mxu1 %v4907_v27 }
0x2456   :  { %4697 = vmatpush3.bf16.msra.mxu1 %v4696_v36 }
0x2457   :  { %4698 = vmatprep.subr.bf16.mxu1 %v4907_v27  ;;  %v3868_v27 = vld [vmem:[%s5860_s26 + $0x28] sm:$0xff] }
0x2524   :  { %v3801_v57 = vpop.f32.mrb[36].mxu1 }
0x2525   :  { %v3802_v56 = vadd.f32 %v4136_v2, %v3801_v57  ;;  %v4532_v59 = vpop.f32.mrb[37].mxu1  ;;  %v4699_v2 = vpack.c.bf16 %v3868_v27, %v3867_v32  ;;  %v3869_v57 = vld [vmem:[%s5860_s26 + $0x30] sm:$0x3]  ;;  %s4880_s26 = scalar_lea.vmem %s4045_s30, 32 }
0x2526   :  { %p4881_p0 = scmp.ne.s32.totalorder %s4045_s30, %s4880_s26  ;;  %p4886_p2 = scmp.lt.s32.totalorder %s4880_s26, %s4880_s26 }
0x2527   :  { %v3805_v61 = vmul.f32 %v3802_v56, %v3802_v56  ;;  %4700 = vmatpush3.bf16.msra.mxu1 %v4699_v2 }
0x2528   :  { %4572 = vmatprep.subr.mxu1 %v4909_v11  ;;  %v4140_v11 = vld [vmem:[%s5858_s24] ss:$0 sm:$0xff]  ;;  %p4887_p3 = por %p4886_p2, %p4885_p1 }
0x2529   :  { %v3806_v62 = vsel %vm104_vm0, %v3805_v61, 0.0  ;;  %vm3877_vm0 = vcmask 785408  }
0x252a   :  { %3807 = vadd.xlane.f32.xlu0 %v3806_v62  ;;  %p4888_p4 = pnand %p4887_p3, %p4881_p0 }
0x25b7   :  { %v3808_v63 = vpop.xlane.xlu0 %3807 }
0x25b8   :  { %4871 = vrsqrt.f32 %v3808_v63  ;;  %vm3811_vm6 = vcmp.eq.f32.partialorder %v3808_v63, inf  ;;  %v3814_v3 = vand.u32 2147483648, %v3808_v63  ;;  %vm3813_vm11 = vcmp.eq.f32.partialorder %v3808_v63, 0.0 }
0x25c2   :  { %v4872_v1 = vpop.eup %4871 }
0x25c3   :  { %v3810_v41 = vmul.f32 %v4872_v1, %v3808_v63 }
0x25c5   :  { %v3812_v40 = vsel %vm3811_vm6, %v3808_v63, %v3810_v41 }
0x25c6   :  { %v3815_v42 = vsel %vm3813_vm11, %v3814_v3, %v3812_v40 }
0x25c7   :  { %v3816_v45 = vmax.f32 %v3815_v42, 1e-12 }
0x25c9   :  { %4873 = vrcp.f32 %v3816_v45 }
0x25d3   :  { %v4874_v5 = vpop.eup %4873 }
0x25d4   :  { %v3818_v17 = vmul.f32 %v4874_v5, %v3802_v56 }
0x25d6   :  { %3823 = vrot.lane.b32.xlu1 %v3818_v17, %s4906_s3 }
0x2648   :  { %v3824_v0 = vpop.permute.xlu1 %3823 }
0x2649   :  { %v3827_v20 = vsel %vm1291_vm1, %v3826_v6, %v3824_v0  ;;  %vm3962_vm1 = vcmask 1041408  }
0x264a   :  { %v3829_v4 = vsel %vm3828_vm8, %v3827_v20, -inf  ;;  %v3837_v16 = vsel %vm3836_vm14, %v3827_v20, -inf  ;;  %4573 = vmatpush3.msk.msra.mxu1 %vm3962_vm1, %v3869_v57 }
0x264b   :  { %v3830_v21 = vrot.slane %v3829_v4, 4  ;;  %v3838_v38 = vrot.slane %v3837_v16, 4 }
0x264d   :  { %v3831_v54 = vmax.f32 %v3829_v4, %v3830_v21  ;;  %v3839_v58 = vmax.f32 %v3837_v16, %v3838_v38 }
0x264f   :  { %v3832_v35 = vrot.slane %v3831_v54, 2  ;;  %v3840_v47 = vrot.slane %v3839_v58, 2 }
0x2651   :  { %v3833_v49 = vmax.f32 %v3831_v54, %v3832_v35  ;;  %v3841_v51 = vmax.f32 %v3839_v58, %v3840_v47 }
0x2653   :  { %v3834_v53 = vrot.slane %v3833_v49, 1  ;;  %v3842_v46 = vrot.slane %v3841_v51, 1 }
0x2655   :  { %v3835_v50 = vmax.f32 %v3833_v49, %v3834_v53  ;;  %v3843_v44 = vmax.f32 %v3841_v51, %v3842_v46 }
0x2657   :  { %v3844_v55 = vsel %vm1315_vm15, %v3835_v50, %v3843_v44  ;;  %vm4036_vm15 = vcmask 25600  }
0x2658   :  { %3846 = vrot.lane.b32.xlu1 %v3844_v55, %s4910_s18 }
0x26ca   :  { %v3847_v48 = vpop.permute.xlu1 %3846 }
0x26cb   :  { %v3849_v8 = vsel %vm1296_vm9, %v5626_v52, %v3847_v48  ;;  %v4138_v52 = vld [vmem:[%s5857_s23] ss:$0 sm:$0xff]  ;;  %vm3958_vm9 = vcmask 408576  }
0x26cc   :  { %4558 = vmatmul.mubr.msk.f32.vlgmr.msra.gmra.mrb[40].mxu0 %vm3877_vm0, %v3849_v8 }
0x279f   :  { %v3947_v56 = vpop.f32.mrb[40].mxu0 }
0x27a0   :  { %v3948_v59 = vadd.f32 %v4138_v52, %v3947_v56  ;;  %v4559_v61 = vpop.f32.mrb[41].mxu0 }
0x27a2   :  { %v3951_v62 = vmax.f32 %v3948_v59, 0.0 }
0x27a4   :  { %4575 = vmatmul.mubr.msk.f32.vlgmr.msra.gmra.mrb[38].mxu1 %vm3958_vm9, %v3951_v62 }
0x2877   :  { %v4032_v63 = vpop.f32.mrb[38].mxu1 }
0x2878   :  { %v4033_v1 = vadd.f32 %v4140_v11, %v4032_v63  ;;  %v4576_v41 = vpop.f32.mrb[39].mxu1 }
0x287a   :  { %4037 = vst.msk [vmem:[#allocation2] sm:$0x3] %vm4036_vm15, %v4033_v1 }
0x287b   :  { %4891 = shalt.err (!%p4888_p4)
}
0x287c   :  { %s4892_s0 = scalar_lea.hbm %s5861_s27, 32 }
0x287d   :  { %p4893_p5 = scmp.ne.s32.totalorder %s5861_s27, %s4892_s0  ;;  %p4896_p6 = scmp.lt.u32.totalorder %s4892_s0, %s5861_s27 }
0x287f   :  { %p4898_p7 = pnand %p4896_p6, %p4893_p5 }
0x2881   :  { %4901 = shalt.err (!%p4898_p7)
}
0x2882   :  { %4047 = dma.vmem_to_hbm [thread:$0]  %s4045_s30, 32, %s5861_s27, [#allocation3]  }
0x2883   :  { %4902 = dma.done.wait [#allocation3], 32  }
0x2884   :  { %4903 = vsyncadd [#allocation3], 4294967264 }
0x2885   :  { %4051 = vsyncpa [#allocation3], 1 }

</bundles_post_ra>
